<compile_context>
chip_gen: v7x
topology: tpu7x:2x2x1
jax: 0.10.0
libtpu: 0.0.40
codegen_flags: <defaults>
</compile_context>

<pallas_src>
import functools

import jax
import jax.numpy as jnp
from jax import lax
from jax.experimental import pallas as pl
from jax.experimental.pallas import tpu as pltpu
from jax.scipy.linalg import block_diag


# ------------------------------ slab layouts ---------------------------------

def _round8(r):
    return ((r + 7) // 8) * 8


def _make_layout(entries):
    """entries: [(name, rows, cols)] -> ({name: (row0, rows, cols)}, total_rows)."""
    layout, row = {}, 0
    for name, r, c in entries:
        layout[name] = (row, r, c)
        row += _round8(r)
    return layout, _round8(row)


def _param_entries(feat, heads):
    ent = [("theta_m", 1, feat), ("theta_m2", 1, feat), ("theta_v2", 1, 1)]
    c_in = [feat, heads * feat, heads * feat, heads * feat, heads * feat]
    c_out = [feat, feat, feat, feat, 1]
    for i in range(5):
        ent += [(f"w{i + 1}", c_in[i], heads * c_out[i]),
                (f"att{i + 1}", heads * c_out[i], 2 * heads),
                (f"b{i + 1}", 1, heads * c_out[i] if i < 4 else 1)]
    return ent


def _graph_entries(n, mn):
    return [("a_e", n, n), ("a_p", n, n), ("c", n, 1), ("notj_col", n, 1),
            ("notj_row", 1, mn), ("os_t", mn, 1)]


def _fill_slab(layout, rows, width, arrays):
    slab = jnp.zeros((rows, width), jnp.float32)
    for name, arr in arrays.items():
        r0, nr, nc = layout[name]
        slab = slab.at[r0:r0 + nr, 0:nc].set(jnp.asarray(arr, jnp.float32))
    return slab


def _att_block(att_l, att_r):
    """(H, C) att_l / att_r -> (H*C, 2H) block matrix so that
    xl_all @ att_block gives per-head [a_l, a_r] score columns."""
    h, c = att_l.shape
    blk = jnp.zeros((h * c, 2 * h), jnp.float32)
    for i in range(h):
        blk = blk.at[i * c:(i + 1) * c, 2 * i].set(att_l[i])
        blk = blk.at[i * c:(i + 1) * c, 2 * i + 1].set(att_r[i])
    return blk


# --------------------------------- kernel ------------------------------------

def _net_mlp_kernel(v_ref, adj_ref, g_ref, p_ref, o_ref, *, n, n_mach, feat,
                    heads, neg_slope, g_off, p_off):
    mn = n * n_mach

    def gld(name):
        r0, nr, nc = g_off[name]
        return g_ref[r0:r0 + nr, 0:nc]

    def pld(name):
        r0, nr, nc = p_off[name]
        return p_ref[r0:r0 + nr, 0:nc]

    # ---- prep: c1 (EmbedC, add), c2 (EmbeddingPrecedence * notj), c_final ----
    a_e = gld("a_e")                                        # (N, N)
    a_p = gld("a_p")                                        # (N, N)
    c = gld("c")                                            # (N, 1)
    notj_col = gld("notj_col")                              # (N, 1), pre-mask
    c1 = jnp.dot(a_e, c, preferred_element_type=jnp.float32)
    c2 = jnp.sum(a_p, axis=-1, keepdims=True) * notj_col
    c_final = jnp.maximum(c1, c2)                           # torch.max(c1, c2)
    c_final_t = jnp.concatenate([c_final] * n_mach, axis=0)  # (MN, 1)

    # ---- g.notj[v] = 0 applied in-kernel from the runtime SMEM scalar -------
    v = v_ref[0]
    lane_n = lax.broadcasted_iota(jnp.int32, (1, n), 1)
    notv_n = jnp.where(lane_n != v, 1.0, 0.0)                # (1, N)
    notv_row = jnp.concatenate([notv_n] * n_mach, axis=1)    # (1, MN)
    notj_row = gld("notj_row") * notv_row                    # masked notj, row

    # ---- EmbedWeight / EmbeddingMachine2 on the block-diag machine graph ----
    adj_m_sl = adj_ref[0]      # (MN, MN) machine adj + self loops
    adj_p_sl = adj_ref[1]      # (MN, MN) precedence adj + self loops
    adj_m = adj_ref[2]         # machine adj (no self loops)
    adj_mpt = adj_ref[3]       # machine adj * PT

    os_t = gld("os_t")                                       # (MN, 1)
    mu_first = (jnp.dot(adj_mpt, os_t, preferred_element_type=jnp.float32)
                + jnp.dot(adj_m, c_final_t, preferred_element_type=jnp.float32))
    mu_total = jnp.dot(notj_row, adj_mpt,
                       preferred_element_type=jnp.float32).T  # (MN, 1)

    # mu_final = relu(theta_m(mu_first) + theta_m2(mu_total)) : (MN, F)
    x = jnp.maximum(mu_first * pld("theta_m") + mu_total * pld("theta_m2"), 0.0)

    # ---- five GAT layers, all machines at once (block-diag adjacency) -------
    ones_col = jnp.ones((mn, 1), jnp.float32)
    layer_cfg = (("w1", "att1", "b1", feat, True, adj_m_sl),
                 ("w2", "att2", "b2", feat, True, adj_p_sl),
                 ("w3", "att3", "b3", feat, True, adj_m_sl),
                 ("w4", "att4", "b4", feat, True, adj_p_sl),
                 ("w5", "att5", "b5", 1, False, adj_m_sl))
    for wn, an, bn, c_out, concat, adj in layer_cfg:
        w, att, b = pld(wn), pld(an), pld(bn)
        xl_all = jnp.dot(x, w, preferred_element_type=jnp.float32)   # (MN, H*Co)
        scores = jnp.dot(xl_all, att, preferred_element_type=jnp.float32)  # (MN, 2H)
        head_out, mean_acc = [], None
        for hh in range(heads):                                       # H unrolled
            xl = xl_all[:, hh * c_out:(hh + 1) * c_out]               # (MN, Co)
            a_l = scores[:, 2 * hh:2 * hh + 1]                        # src score col
            a_r = scores[:, 2 * hh + 1:2 * hh + 2]                    # dst score col
            s = a_r + a_l.T                                           # s[dst, src]
            s = jnp.where(s >= 0, s, neg_slope * s)                   # leaky_relu
            s = jnp.where(adj > 0, s, -1e30)                          # mask non-edges
            s = s - jnp.max(s, axis=-1, keepdims=True)                # stable softmax
            p = jnp.exp(s) * adj
            agg = jnp.dot(p, jnp.concatenate([xl, ones_col], axis=-1),
                          preferred_element_type=jnp.float32)         # (MN, Co+1)
            out_h = agg[:, :c_out] * pl.reciprocal(agg[:, c_out:c_out + 1],
                                                   approx=True)
            if concat:
                head_out.append(out_h)
            else:
                mean_acc = out_h if mean_acc is None else mean_acc + out_h
        if concat:
            x = jnp.concatenate(head_out, axis=-1) + b                # (MN, H*Co)
        else:
            x = mean_acc * (1.0 / heads) + b                          # (MN, 1)

    # ---- min over machines, relu, max over nodes, theta_v2 ------------------
    mu_min = x[0:n, :]
    for m in range(1, n_mach):
        mu_min = jnp.minimum(mu_min, x[m * n:(m + 1) * n, :])
    mu_min = jnp.maximum(mu_min, 0.0)
    o_ref[...] = jnp.max(mu_min, axis=0, keepdims=True) * pld("theta_v2")


# -------------------------------- wrapper -------------------------------------

def net_mlp_forward(params, graph, v, e_adj, m_sel, negative_slope=0.2):
    del m_sel  # only affects the dead c_others path (see TODO below)
    A_m, PT, A_P = graph["A_m"], graph["PT"], graph["A_P"]
    c, O_s, notj = graph["c"], graph["O_s"], graph["notj"]
    M, N, _ = A_m.shape
    MN = M * N
    F = params["theta_m"].shape[1]
    H = params["gat"]["att_l"].shape[0]

    # TODO(synk): c_others = gat_c(g, other_machine_edge) * g.c2 * g.notj passes the
    # graph object itself into GATConv (ill-typed in the source) and its result is
    # never used downstream; skipped. The batch_size > 1 branch references undefined
    # attributes (embedfinal, theta7, g.mu, g.batch); only batch_size == 1 is done.
    # Attention dropout is eval-mode / 0. edge_index_P assumed non-empty and every
    # machine assumed to have > 1 edge (matches the dense example construction).

    eye = jnp.eye(N, dtype=jnp.float32)
    A_m_sl = jnp.where(eye[None, :, :] > 0, 1.0, A_m)    # remove_+add_self_loops
    A_p_sl = jnp.where(eye > 0, 1.0, A_P)
    A_mpt = A_m * PT

    # Block-diagonal "all machines at once" adjacencies (one stacked DMA).
    adj_stack = jnp.stack([
        block_diag(*[A_m_sl[m] for m in range(M)]),
        block_diag(*([A_p_sl] * M)),
        block_diag(*[A_m[m] for m in range(M)]),
        block_diag(*[A_mpt[m] for m in range(M)]),
    ], axis=0).astype(jnp.float32)

    # Graph slab (one DMA): A_e, A_P, c, notj (column + tiled row), tiled O_s.
    g_layout, g_rows = _make_layout(_graph_entries(N, MN))
    gslab = _fill_slab(g_layout, g_rows, max(128, MN), {
        "a_e": e_adj, "a_p": A_P, "c": c, "notj_col": notj,
        "notj_row": jnp.tile(jnp.reshape(notj, (1, N)), (1, M)),
        "os_t": jnp.tile(O_s, (M, 1)),
    })

    # Parameter slab (one DMA): thetas + per-layer W / att_block / bias.
    p_layout, p_rows = _make_layout(_param_entries(F, H))
    p_arrays = {"theta_m": params["theta_m"], "theta_m2": params["theta_m2"],
                "theta_v2": params["theta_v2"]}
    for i, nm in enumerate(("gat", "gat2", "gat3", "gat4", "gat5"), start=1):
        gp = params[nm]
        p_arrays[f"w{i}"] = gp["w"]
        p_arrays[f"att{i}"] = _att_block(gp["att_l"], gp["att_r"])
        p_arrays[f"b{i}"] = gp["bias"]
    pslab = _fill_slab(p_layout, p_rows, 128, p_arrays)

    v_arr = jnp.asarray(v, jnp.int32).reshape(1)

    kernel = functools.partial(_net_mlp_kernel, n=N, n_mach=M, feat=F, heads=H,
                               neg_slope=negative_slope, g_off=g_layout,
                               p_off=p_layout)
    q = pl.pallas_call(
        kernel,
        out_shape=jax.ShapeDtypeStruct((1, 1), jnp.float32),
        in_specs=[
            pl.BlockSpec(memory_space=pltpu.MemorySpace.SMEM),   # v (runtime scalar)
            pl.BlockSpec(memory_space=pltpu.MemorySpace.VMEM),   # adjacency stack
            pl.BlockSpec(memory_space=pltpu.MemorySpace.VMEM),   # graph slab
            pl.BlockSpec(memory_space=pltpu.MemorySpace.VMEM),   # parameter slab
        ],
        out_specs=pl.BlockSpec(memory_space=pltpu.MemorySpace.VMEM),
    )(v_arr, adj_stack, gslab, pslab)
    return q.reshape(1)


# --------------------------- parameter creation -------------------------------

def _glorot(key, shape):
    fan_in, fan_out = shape[0], shape[-1]
    s = (6.0 / (fan_in + fan_out)) ** 0.5
    return jax.random.uniform(key, shape, minval=-s, maxval=s, dtype=jnp.float32)


def _gat_params(key, c_in, c_out, heads, concat):
    k1, k2, k3 = jax.random.split(key, 3)
    return dict(
        w=_glorot(k1, (c_in, heads * c_out)),          # = torch lin_l.weight.T
        att_l=_glorot(k2, (heads, c_out)),
        att_r=_glorot(k3, (heads, c_out)),
        bias=jnp.zeros((1, heads * c_out) if concat else (1, c_out), jnp.float32),
    )


def init_params(key, num_feats, heads):
    ks = jax.random.split(key, 8)
    F = num_feats
    return dict(
        theta_m=_glorot(ks[0], (1, F)),                # Linear(1, F, bias=False).T
        theta_m2=_glorot(ks[1], (1, F)),
        theta_v2=_glorot(ks[2], (1, 1)),
        gat=_gat_params(ks[3], F, F, heads, True),
        gat2=_gat_params(ks[4], F * heads, F, heads, True),
        gat3=_gat_params(ks[5], F * heads, F, heads, True),
        gat4=_gat_params(ks[6], F * heads, F, heads, True),
        gat5=_gat_params(ks[7], F * heads, 1, heads, False),
    )


# ----------------------------------- main --------------------------------------

if __name__ == "__main__":
    key = jax.random.PRNGKey(0)
    N, F, H, M = 16, 8, 2, 3                           # nodes, num_feats, heads, machines
    ks = jax.random.split(key, 8)

    eye = jnp.eye(N, dtype=jnp.float32)
    # machine disjunctive edges (no self loops); guarantee > 1 edge per machine
    A_m = (jax.random.uniform(ks[0], (M, N, N)) < 0.3).astype(jnp.float32) * (1.0 - eye)
    A_m = A_m.at[:, 0, 1].set(1.0).at[:, 1, 2].set(1.0)
    PT = jax.random.uniform(ks[1], (M, N, N), minval=1.0, maxval=5.0) * A_m
    # precedence edges (nonempty)
    A_P = (jax.random.uniform(ks[2], (N, N)) < 0.2).astype(jnp.float32) * (1.0 - eye)
    A_P = A_P.at[1, 0].set(1.0)
    # edge index e[0] used by EmbedC
    A_e = (jax.random.uniform(ks[3], (N, N)) < 0.25).astype(jnp.float32) * (1.0 - eye)

    c = jax.random.uniform(ks[4], (N, 1), dtype=jnp.float32)
    O_s = jax.random.uniform(ks[5], (N, 1), dtype=jnp.float32)
    notj = jnp.ones((N, 1), jnp.float32)

    params = init_params(ks[6], F, H)
    graph = dict(A_m=A_m, PT=PT, A_P=A_P, c=c, O_s=O_s, notj=notj)

    v = 3          # node picked for g.notj[v] = 0 (runtime SMEM scalar, no recompile)
    m_sel = 1      # machine argument (only affects the dead c_others path)

    Q = net_mlp_forward(params, graph, v, A_e, m_sel)
    Q = jax.block_until_ready(Q)
    assert Q.shape == (1,) and Q.dtype == jnp.float32
    print("KERNEL_OK")
</pallas_src>

<mosaic_0001>
module attributes {stable_mosaic.version = 11 : i64} {
  func.func @_net_mlp_kernel(%arg0: memref<1xi32, #tpu.memory_space<smem>>, %arg1: memref<4x48x48xf32, #tpu.memory_space<vmem>>, %arg2: memref<120x128xf32, #tpu.memory_space<vmem>>, %arg3: memref<208x128xf32, #tpu.memory_space<vmem>>, %arg4: memref<1x1xf32, #tpu.memory_space<vmem>>) attributes {dimension_semantics = [], scalar_prefetch = 0 : i64, scratch_operands = 0 : i64, tpu.core_type = #tpu.core_type<tc>} {
    %c0 = arith.constant 0 : index
    %c0_0 = arith.constant 0 : index
    %0 = vector.load %arg2[%c0, %c0_0] : memref<120x128xf32, #tpu.memory_space<vmem>>, vector<16x16xf32>
    %c16 = arith.constant 16 : index
    %c0_1 = arith.constant 0 : index
    %1 = vector.load %arg2[%c16, %c0_1] : memref<120x128xf32, #tpu.memory_space<vmem>>, vector<16x16xf32>
    %c32 = arith.constant 32 : index
    %c0_2 = arith.constant 0 : index
    %2 = vector.load %arg2[%c32, %c0_2] : memref<120x128xf32, #tpu.memory_space<vmem>>, vector<16x1xf32>
    %c48 = arith.constant 48 : index
    %c0_3 = arith.constant 0 : index
    %3 = vector.load %arg2[%c48, %c0_3] : memref<120x128xf32, #tpu.memory_space<vmem>>, vector<16x1xf32>
    %cst = arith.constant dense<0.000000e+00> : vector<16x1xf32>
    %4 = tpu.matmul %0, %2, %cst {dimension_numbers = #tpu.dot_dimension_numbers<[1], [0], [0], [1], [0, 0, 1, 1], [], []>} : vector<16x16xf32>, vector<16x1xf32>, vector<16x1xf32> -> vector<16x1xf32>
    %cst_4 = arith.constant dense<0.000000e+00> : vector<16xf32>
    %5 = vector.multi_reduction <add>, %1, %cst_4 [1] : vector<16x16xf32> to vector<16xf32>
    %6 = vector.shape_cast %5 : vector<16xf32> to vector<16x1xf32>
    %7 = arith.mulf %6, %3 : vector<16x1xf32>
    %8 = arith.maximumf %4, %7 : vector<16x1xf32>
    %9 = tpu.concatenate %8, %8, %8 in 0 : vector<16x1xf32>, vector<16x1xf32>, vector<16x1xf32> -> vector<48x1xf32>
    %c0_5 = arith.constant 0 : index
    %10 = memref.load %arg0[%c0_5] : memref<1xi32, #tpu.memory_space<smem>>
    %11 = tpu.iota {dimensions = array<i32: 1>} : vector<1x16xi32>
    %12 = vector.broadcast %10 : i32 to vector<1x16xi32>
    %13 = arith.cmpi ne, %11, %12 : vector<1x16xi32>
    %cst_6 = arith.constant 1.000000e+00 : f32
    %cst_7 = arith.constant 0.000000e+00 : f32
    %14 = vector.broadcast %cst_6 : f32 to vector<1x16xf32>
    %15 = vector.broadcast %cst_7 : f32 to vector<1x16xf32>
    %16 = arith.select %13, %14, %15 : vector<1x16xi1>, vector<1x16xf32>
    %17 = tpu.concatenate %16, %16, %16 in 1 : vector<1x16xf32>, vector<1x16xf32>, vector<1x16xf32> -> vector<1x48xf32>
    %c64 = arith.constant 64 : index
    %c0_8 = arith.constant 0 : index
    %18 = vector.load %arg2[%c64, %c0_8] : memref<120x128xf32, #tpu.memory_space<vmem>>, vector<1x48xf32>
    %19 = arith.mulf %18, %17 : vector<1x48xf32>
    %c0_9 = arith.constant 0 : index
    %c0_10 = arith.constant 0 : index
    %c0_11 = arith.constant 0 : index
    %20 = vector.load %arg1[%c0_9, %c0_10, %c0_11] : memref<4x48x48xf32, #tpu.memory_space<vmem>>, vector<1x48x48xf32>
    %21 = vector.shape_cast %20 : vector<1x48x48xf32> to vector<48x48xf32>
    %c1 = arith.constant 1 : index
    %c0_12 = arith.constant 0 : index
    %c0_13 = arith.constant 0 : index
    %22 = vector.load %arg1[%c1, %c0_12, %c0_13] : memref<4x48x48xf32, #tpu.memory_space<vmem>>, vector<1x48x48xf32>
    %23 = vector.shape_cast %22 : vector<1x48x48xf32> to vector<48x48xf32>
    %c2 = arith.constant 2 : index
    %c0_14 = arith.constant 0 : index
    %c0_15 = arith.constant 0 : index
    %24 = vector.load %arg1[%c2, %c0_14, %c0_15] : memref<4x48x48xf32, #tpu.memory_space<vmem>>, vector<1x48x48xf32>
    %25 = vector.shape_cast %24 : vector<1x48x48xf32> to vector<48x48xf32>
    %c3 = arith.constant 3 : index
    %c0_16 = arith.constant 0 : index
    %c0_17 = arith.constant 0 : index
    %26 = vector.load %arg1[%c3, %c0_16, %c0_17] : memref<4x48x48xf32, #tpu.memory_space<vmem>>, vector<1x48x48xf32>
    %27 = vector.shape_cast %26 : vector<1x48x48xf32> to vector<48x48xf32>
    %c72 = arith.constant 72 : index
    %c0_18 = arith.constant 0 : index
    %28 = vector.load %arg2[%c72, %c0_18] : memref<120x128xf32, #tpu.memory_space<vmem>>, vector<48x1xf32>
    %cst_19 = arith.constant dense<0.000000e+00> : vector<48x1xf32>
    %29 = tpu.matmul %27, %28, %cst_19 {dimension_numbers = #tpu.dot_dimension_numbers<[1], [0], [0], [1], [0, 0, 1, 1], [], []>} : vector<48x48xf32>, vector<48x1xf32>, vector<48x1xf32> -> vector<48x1xf32>
    %cst_20 = arith.constant dense<0.000000e+00> : vector<48x1xf32>
    %30 = tpu.matmul %25, %9, %cst_20 {dimension_numbers = #tpu.dot_dimension_numbers<[1], [0], [0], [1], [0, 0, 1, 1], [], []>} : vector<48x48xf32>, vector<48x1xf32>, vector<48x1xf32> -> vector<48x1xf32>
    %31 = arith.addf %29, %30 : vector<48x1xf32>
    %cst_21 = arith.constant dense<0.000000e+00> : vector<1x48xf32>
    %32 = tpu.matmul %19, %27, %cst_21 {dimension_numbers = #tpu.dot_dimension_numbers<[1], [0], [0], [1], [0, 0, 1, 1], [], []>} : vector<1x48xf32>, vector<48x48xf32>, vector<1x48xf32> -> vector<1x48xf32>
    %33 = tpu.transpose %32, [1, 0] : vector<1x48xf32> -> vector<48x1xf32>
    %c0_22 = arith.constant 0 : index
    %c0_23 = arith.constant 0 : index
    %34 = vector.load %arg3[%c0_22, %c0_23] : memref<208x128xf32, #tpu.memory_space<vmem>>, vector<1x8xf32>
    %35 = vector.broadcast %31 : vector<48x1xf32> to vector<48x8xf32>
    %36 = vector.broadcast %34 : vector<1x8xf32> to vector<48x8xf32>
    %37 = arith.mulf %35, %36 : vector<48x8xf32>
    %c8 = arith.constant 8 : index
    %c0_24 = arith.constant 0 : index
    %38 = vector.load %arg3[%c8, %c0_24] : memref<208x128xf32, #tpu.memory_space<vmem>>, vector<1x8xf32>
    %39 = vector.broadcast %33 : vector<48x1xf32> to vector<48x8xf32>
    %40 = vector.broadcast %38 : vector<1x8xf32> to vector<48x8xf32>
    %41 = arith.mulf %39, %40 : vector<48x8xf32>
    %42 = arith.addf %37, %41 : vector<48x8xf32>
    %cst_25 = arith.constant 0.000000e+00 : f32
    %43 = vector.broadcast %cst_25 : f32 to vector<48x8xf32>
    %44 = arith.maximumf %42, %43 : vector<48x8xf32>
    %cst_26 = arith.constant 1.000000e+00 : f32
    %45 = vector.broadcast %cst_26 : f32 to vector<48x1xf32>
    %c24 = arith.constant 24 : index
    %c0_27 = arith.constant 0 : index
    %46 = vector.load %arg3[%c24, %c0_27] : memref<208x128xf32, #tpu.memory_space<vmem>>, vector<8x16xf32>
    %c32_28 = arith.constant 32 : index
    %c0_29 = arith.constant 0 : index
    %47 = vector.load %arg3[%c32_28, %c0_29] : memref<208x128xf32, #tpu.memory_space<vmem>>, vector<16x4xf32>
    %c48_30 = arith.constant 48 : index
    %c0_31 = arith.constant 0 : index
    %48 = vector.load %arg3[%c48_30, %c0_31] : memref<208x128xf32, #tpu.memory_space<vmem>>, vector<1x16xf32>
    %cst_32 = arith.constant dense<0.000000e+00> : vector<48x16xf32>
    %49 = tpu.matmul %44, %46, %cst_32 {dimension_numbers = #tpu.dot_dimension_numbers<[1], [0], [0], [1], [0, 0, 1, 1], [], []>} : vector<48x8xf32>, vector<8x16xf32>, vector<48x16xf32> -> vector<48x16xf32>
    %cst_33 = arith.constant dense<0.000000e+00> : vector<48x4xf32>
    %50 = tpu.matmul %49, %47, %cst_33 {dimension_numbers = #tpu.dot_dimension_numbers<[1], [0], [0], [1], [0, 0, 1, 1], [], []>} : vector<48x16xf32>, vector<16x4xf32>, vector<48x4xf32> -> vector<48x4xf32>
    %51 = vector.extract_strided_slice %49 {offsets = [0, 0], sizes = [48, 8], strides = [1, 1]} : vector<48x16xf32> to vector<48x8xf32>
    %52 = vector.extract_strided_slice %50 {offsets = [0, 0], sizes = [48, 1], strides = [1, 1]} : vector<48x4xf32> to vector<48x1xf32>
    %53 = vector.extract_strided_slice %50 {offsets = [0, 1], sizes = [48, 1], strides = [1, 1]} : vector<48x4xf32> to vector<48x1xf32>
    %54 = tpu.transpose %52, [1, 0] : vector<48x1xf32> -> vector<1x48xf32>
    %55 = vector.broadcast %53 : vector<48x1xf32> to vector<48x48xf32>
    %56 = vector.broadcast %54 : vector<1x48xf32> to vector<48x48xf32>
    %57 = arith.addf %55, %56 : vector<48x48xf32>
    %cst_34 = arith.constant 0.000000e+00 : f32
    %58 = vector.broadcast %cst_34 : f32 to vector<48x48xf32>
    %59 = arith.cmpf oge, %57, %58 : vector<48x48xf32>
    %cst_35 = arith.constant 2.000000e-01 : f32
    %60 = vector.broadcast %cst_35 : f32 to vector<48x48xf32>
    %61 = arith.mulf %60, %57 : vector<48x48xf32>
    %62 = arith.select %59, %57, %61 : vector<48x48xi1>, vector<48x48xf32>
    %cst_36 = arith.constant 0.000000e+00 : f32
    %63 = vector.broadcast %cst_36 : f32 to vector<48x48xf32>
    %64 = arith.cmpf ogt, %21, %63 : vector<48x48xf32>
    %cst_37 = arith.constant -1.000000e+30 : f32
    %65 = vector.broadcast %cst_37 : f32 to vector<48x48xf32>
    %66 = arith.select %64, %62, %65 : vector<48x48xi1>, vector<48x48xf32>
    %cst_38 = arith.constant dense<0xFF800000> : vector<48xf32>
    %67 = vector.multi_reduction <maximumf>, %66, %cst_38 [1] : vector<48x48xf32> to vector<48xf32>
    %68 = vector.shape_cast %67 : vector<48xf32> to vector<48x1xf32>
    %69 = vector.broadcast %68 : vector<48x1xf32> to vector<48x48xf32>
    %70 = arith.subf %66, %69 : vector<48x48xf32>
    %71 = math.exp %70 : vector<48x48xf32>
    %72 = arith.mulf %71, %21 : vector<48x48xf32>
    %73 = tpu.concatenate %51, %45 in 1 : vector<48x8xf32>, vector<48x1xf32> -> vector<48x9xf32>
    %cst_39 = arith.constant dense<0.000000e+00> : vector<48x9xf32>
    %74 = tpu.matmul %72, %73, %cst_39 {dimension_numbers = #tpu.dot_dimension_numbers<[1], [0], [0], [1], [0, 0, 1, 1], [], []>} : vector<48x48xf32>, vector<48x9xf32>, vector<48x9xf32> -> vector<48x9xf32>
    %75 = vector.extract_strided_slice %74 {offsets = [0, 0], sizes = [48, 8], strides = [1, 1]} : vector<48x9xf32> to vector<48x8xf32>
    %76 = vector.extract_strided_slice %74 {offsets = [0, 8], sizes = [48, 1], strides = [1, 1]} : vector<48x9xf32> to vector<48x1xf32>
    %77 = tpu.reciprocal %76 {approx = true} : vector<48x1xf32> -> vector<48x1xf32>
    %78 = vector.broadcast %77 : vector<48x1xf32> to vector<48x8xf32>
    %79 = arith.mulf %75, %78 : vector<48x8xf32>
    %80 = vector.extract_strided_slice %49 {offsets = [0, 8], sizes = [48, 8], strides = [1, 1]} : vector<48x16xf32> to vector<48x8xf32>
    %81 = vector.extract_strided_slice %50 {offsets = [0, 2], sizes = [48, 1], strides = [1, 1]} : vector<48x4xf32> to vector<48x1xf32>
    %82 = vector.extract_strided_slice %50 {offsets = [0, 3], sizes = [48, 1], strides = [1, 1]} : vector<48x4xf32> to vector<48x1xf32>
    %83 = tpu.transpose %81, [1, 0] : vector<48x1xf32> -> vector<1x48xf32>
    %84 = vector.broadcast %82 : vector<48x1xf32> to vector<48x48xf32>
    %85 = vector.broadcast %83 : vector<1x48xf32> to vector<48x48xf32>
    %86 = arith.addf %84, %85 : vector<48x48xf32>
    %cst_40 = arith.constant 0.000000e+00 : f32
    %87 = vector.broadcast %cst_40 : f32 to vector<48x48xf32>
    %88 = arith.cmpf oge, %86, %87 : vector<48x48xf32>
    %cst_41 = arith.constant 2.000000e-01 : f32
    %89 = vector.broadcast %cst_41 : f32 to vector<48x48xf32>
    %90 = arith.mulf %89, %86 : vector<48x48xf32>
    %91 = arith.select %88, %86, %90 : vector<48x48xi1>, vector<48x48xf32>
    %cst_42 = arith.constant 0.000000e+00 : f32
    %92 = vector.broadcast %cst_42 : f32 to vector<48x48xf32>
    %93 = arith.cmpf ogt, %21, %92 : vector<48x48xf32>
    %cst_43 = arith.constant -1.000000e+30 : f32
    %94 = vector.broadcast %cst_43 : f32 to vector<48x48xf32>
    %95 = arith.select %93, %91, %94 : vector<48x48xi1>, vector<48x48xf32>
    %cst_44 = arith.constant dense<0xFF800000> : vector<48xf32>
    %96 = vector.multi_reduction <maximumf>, %95, %cst_44 [1] : vector<48x48xf32> to vector<48xf32>
    %97 = vector.shape_cast %96 : vector<48xf32> to vector<48x1xf32>
    %98 = vector.broadcast %97 : vector<48x1xf32> to vector<48x48xf32>
    %99 = arith.subf %95, %98 : vector<48x48xf32>
    %100 = math.exp %99 : vector<48x48xf32>
    %101 = arith.mulf %100, %21 : vector<48x48xf32>
    %102 = tpu.concatenate %80, %45 in 1 : vector<48x8xf32>, vector<48x1xf32> -> vector<48x9xf32>
    %cst_45 = arith.constant dense<0.000000e+00> : vector<48x9xf32>
    %103 = tpu.matmul %101, %102, %cst_45 {dimension_numbers = #tpu.dot_dimension_numbers<[1], [0], [0], [1], [0, 0, 1, 1], [], []>} : vector<48x48xf32>, vector<48x9xf32>, vector<48x9xf32> -> vector<48x9xf32>
    %104 = vector.extract_strided_slice %103 {offsets = [0, 0], sizes = [48, 8], strides = [1, 1]} : vector<48x9xf32> to vector<48x8xf32>
    %105 = vector.extract_strided_slice %103 {offsets = [0, 8], sizes = [48, 1], strides = [1, 1]} : vector<48x9xf32> to vector<48x1xf32>
    %106 = tpu.reciprocal %105 {approx = true} : vector<48x1xf32> -> vector<48x1xf32>
    %107 = vector.broadcast %106 : vector<48x1xf32> to vector<48x8xf32>
    %108 = arith.mulf %104, %107 : vector<48x8xf32>
    %109 = tpu.concatenate %79, %108 in 1 : vector<48x8xf32>, vector<48x8xf32> -> vector<48x16xf32>
    %110 = vector.broadcast %48 : vector<1x16xf32> to vector<48x16xf32>
    %111 = arith.addf %109, %110 : vector<48x16xf32>
    %c56 = arith.constant 56 : index
    %c0_46 = arith.constant 0 : index
    %112 = vector.load %arg3[%c56, %c0_46] : memref<208x128xf32, #tpu.memory_space<vmem>>, vector<16x16xf32>
    %c72_47 = arith.constant 72 : index
    %c0_48 = arith.constant 0 : index
    %113 = vector.load %arg3[%c72_47, %c0_48] : memref<208x128xf32, #tpu.memory_space<vmem>>, vector<16x4xf32>
    %c88 = arith.constant 88 : index
    %c0_49 = arith.constant 0 : index
    %114 = vector.load %arg3[%c88, %c0_49] : memref<208x128xf32, #tpu.memory_space<vmem>>, vector<1x16xf32>
    %cst_50 = arith.constant dense<0.000000e+00> : vector<48x16xf32>
    %115 = tpu.matmul %111, %112, %cst_50 {dimension_numbers = #tpu.dot_dimension_numbers<[1], [0], [0], [1], [0, 0, 1, 1], [], []>} : vector<48x16xf32>, vector<16x16xf32>, vector<48x16xf32> -> vector<48x16xf32>
    %cst_51 = arith.constant dense<0.000000e+00> : vector<48x4xf32>
    %116 = tpu.matmul %115, %113, %cst_51 {dimension_numbers = #tpu.dot_dimension_numbers<[1], [0], [0], [1], [0, 0, 1, 1], [], []>} : vector<48x16xf32>, vector<16x4xf32>, vector<48x4xf32> -> vector<48x4xf32>
    %117 = vector.extract_strided_slice %115 {offsets = [0, 0], sizes = [48, 8], strides = [1, 1]} : vector<48x16xf32> to vector<48x8xf32>
    %118 = vector.extract_strided_slice %116 {offsets = [0, 0], sizes = [48, 1], strides = [1, 1]} : vector<48x4xf32> to vector<48x1xf32>
    %119 = vector.extract_strided_slice %116 {offsets = [0, 1], sizes = [48, 1], strides = [1, 1]} : vector<48x4xf32> to vector<48x1xf32>
    %120 = tpu.transpose %118, [1, 0] : vector<48x1xf32> -> vector<1x48xf32>
    %121 = vector.broadcast %119 : vector<48x1xf32> to vector<48x48xf32>
    %122 = vector.broadcast %120 : vector<1x48xf32> to vector<48x48xf32>
    %123 = arith.addf %121, %122 : vector<48x48xf32>
    %cst_52 = arith.constant 0.000000e+00 : f32
    %124 = vector.broadcast %cst_52 : f32 to vector<48x48xf32>
    %125 = arith.cmpf oge, %123, %124 : vector<48x48xf32>
    %cst_53 = arith.constant 2.000000e-01 : f32
    %126 = vector.broadcast %cst_53 : f32 to vector<48x48xf32>
    %127 = arith.mulf %126, %123 : vector<48x48xf32>
    %128 = arith.select %125, %123, %127 : vector<48x48xi1>, vector<48x48xf32>
    %cst_54 = arith.constant 0.000000e+00 : f32
    %129 = vector.broadcast %cst_54 : f32 to vector<48x48xf32>
    %130 = arith.cmpf ogt, %23, %129 : vector<48x48xf32>
    %cst_55 = arith.constant -1.000000e+30 : f32
    %131 = vector.broadcast %cst_55 : f32 to vector<48x48xf32>
    %132 = arith.select %130, %128, %131 : vector<48x48xi1>, vector<48x48xf32>
    %cst_56 = arith.constant dense<0xFF800000> : vector<48xf32>
    %133 = vector.multi_reduction <maximumf>, %132, %cst_56 [1] : vector<48x48xf32> to vector<48xf32>
    %134 = vector.shape_cast %133 : vector<48xf32> to vector<48x1xf32>
    %135 = vector.broadcast %134 : vector<48x1xf32> to vector<48x48xf32>
    %136 = arith.subf %132, %135 : vector<48x48xf32>
    %137 = math.exp %136 : vector<48x48xf32>
    %138 = arith.mulf %137, %23 : vector<48x48xf32>
    %139 = tpu.concatenate %117, %45 in 1 : vector<48x8xf32>, vector<48x1xf32> -> vector<48x9xf32>
    %cst_57 = arith.constant dense<0.000000e+00> : vector<48x9xf32>
    %140 = tpu.matmul %138, %139, %cst_57 {dimension_numbers = #tpu.dot_dimension_numbers<[1], [0], [0], [1], [0, 0, 1, 1], [], []>} : vector<48x48xf32>, vector<48x9xf32>, vector<48x9xf32> -> vector<48x9xf32>
    %141 = vector.extract_strided_slice %140 {offsets = [0, 0], sizes = [48, 8], strides = [1, 1]} : vector<48x9xf32> to vector<48x8xf32>
    %142 = vector.extract_strided_slice %140 {offsets = [0, 8], sizes = [48, 1], strides = [1, 1]} : vector<48x9xf32> to vector<48x1xf32>
    %143 = tpu.reciprocal %142 {approx = true} : vector<48x1xf32> -> vector<48x1xf32>
    %144 = vector.broadcast %143 : vector<48x1xf32> to vector<48x8xf32>
    %145 = arith.mulf %141, %144 : vector<48x8xf32>
    %146 = vector.extract_strided_slice %115 {offsets = [0, 8], sizes = [48, 8], strides = [1, 1]} : vector<48x16xf32> to vector<48x8xf32>
    %147 = vector.extract_strided_slice %116 {offsets = [0, 2], sizes = [48, 1], strides = [1, 1]} : vector<48x4xf32> to vector<48x1xf32>
    %148 = vector.extract_strided_slice %116 {offsets = [0, 3], sizes = [48, 1], strides = [1, 1]} : vector<48x4xf32> to vector<48x1xf32>
    %149 = tpu.transpose %147, [1, 0] : vector<48x1xf32> -> vector<1x48xf32>
    %150 = vector.broadcast %148 : vector<48x1xf32> to vector<48x48xf32>
    %151 = vector.broadcast %149 : vector<1x48xf32> to vector<48x48xf32>
    %152 = arith.addf %150, %151 : vector<48x48xf32>
    %cst_58 = arith.constant 0.000000e+00 : f32
    %153 = vector.broadcast %cst_58 : f32 to vector<48x48xf32>
    %154 = arith.cmpf oge, %152, %153 : vector<48x48xf32>
    %cst_59 = arith.constant 2.000000e-01 : f32
    %155 = vector.broadcast %cst_59 : f32 to vector<48x48xf32>
    %156 = arith.mulf %155, %152 : vector<48x48xf32>
    %157 = arith.select %154, %152, %156 : vector<48x48xi1>, vector<48x48xf32>
    %cst_60 = arith.constant 0.000000e+00 : f32
    %158 = vector.broadcast %cst_60 : f32 to vector<48x48xf32>
    %159 = arith.cmpf ogt, %23, %158 : vector<48x48xf32>
    %cst_61 = arith.constant -1.000000e+30 : f32
    %160 = vector.broadcast %cst_61 : f32 to vector<48x48xf32>
    %161 = arith.select %159, %157, %160 : vector<48x48xi1>, vector<48x48xf32>
    %cst_62 = arith.constant dense<0xFF800000> : vector<48xf32>
    %162 = vector.multi_reduction <maximumf>, %161, %cst_62 [1] : vector<48x48xf32> to vector<48xf32>
    %163 = vector.shape_cast %162 : vector<48xf32> to vector<48x1xf32>
    %164 = vector.broadcast %163 : vector<48x1xf32> to vector<48x48xf32>
    %165 = arith.subf %161, %164 : vector<48x48xf32>
    %166 = math.exp %165 : vector<48x48xf32>
    %167 = arith.mulf %166, %23 : vector<48x48xf32>
    %168 = tpu.concatenate %146, %45 in 1 : vector<48x8xf32>, vector<48x1xf32> -> vector<48x9xf32>
    %cst_63 = arith.constant dense<0.000000e+00> : vector<48x9xf32>
    %169 = tpu.matmul %167, %168, %cst_63 {dimension_numbers = #tpu.dot_dimension_numbers<[1], [0], [0], [1], [0, 0, 1, 1], [], []>} : vector<48x48xf32>, vector<48x9xf32>, vector<48x9xf32> -> vector<48x9xf32>
    %170 = vector.extract_strided_slice %169 {offsets = [0, 0], sizes = [48, 8], strides = [1, 1]} : vector<48x9xf32> to vector<48x8xf32>
    %171 = vector.extract_strided_slice %169 {offsets = [0, 8], sizes = [48, 1], strides = [1, 1]} : vector<48x9xf32> to vector<48x1xf32>
    %172 = tpu.reciprocal %171 {approx = true} : vector<48x1xf32> -> vector<48x1xf32>
    %173 = vector.broadcast %172 : vector<48x1xf32> to vector<48x8xf32>
    %174 = arith.mulf %170, %173 : vector<48x8xf32>
    %175 = tpu.concatenate %145, %174 in 1 : vector<48x8xf32>, vector<48x8xf32> -> vector<48x16xf32>
    %176 = vector.broadcast %114 : vector<1x16xf32> to vector<48x16xf32>
    %177 = arith.addf %175, %176 : vector<48x16xf32>
    %c96 = arith.constant 96 : index
    %c0_64 = arith.constant 0 : index
    %178 = vector.load %arg3[%c96, %c0_64] : memref<208x128xf32, #tpu.memory_space<vmem>>, vector<16x16xf32>
    %c112 = arith.constant 112 : index
    %c0_65 = arith.constant 0 : index
    %179 = vector.load %arg3[%c112, %c0_65] : memref<208x128xf32, #tpu.memory_space<vmem>>, vector<16x4xf32>
    %c128 = arith.constant 128 : index
    %c0_66 = arith.constant 0 : index
    %180 = vector.load %arg3[%c128, %c0_66] : memref<208x128xf32, #tpu.memory_space<vmem>>, vector<1x16xf32>
    %cst_67 = arith.constant dense<0.000000e+00> : vector<48x16xf32>
    %181 = tpu.matmul %177, %178, %cst_67 {dimension_numbers = #tpu.dot_dimension_numbers<[1], [0], [0], [1], [0, 0, 1, 1], [], []>} : vector<48x16xf32>, vector<16x16xf32>, vector<48x16xf32> -> vector<48x16xf32>
    %cst_68 = arith.constant dense<0.000000e+00> : vector<48x4xf32>
    %182 = tpu.matmul %181, %179, %cst_68 {dimension_numbers = #tpu.dot_dimension_numbers<[1], [0], [0], [1], [0, 0, 1, 1], [], []>} : vector<48x16xf32>, vector<16x4xf32>, vector<48x4xf32> -> vector<48x4xf32>
    %183 = vector.extract_strided_slice %181 {offsets = [0, 0], sizes = [48, 8], strides = [1, 1]} : vector<48x16xf32> to vector<48x8xf32>
    %184 = vector.extract_strided_slice %182 {offsets = [0, 0], sizes = [48, 1], strides = [1, 1]} : vector<48x4xf32> to vector<48x1xf32>
    %185 = vector.extract_strided_slice %182 {offsets = [0, 1], sizes = [48, 1], strides = [1, 1]} : vector<48x4xf32> to vector<48x1xf32>
    %186 = tpu.transpose %184, [1, 0] : vector<48x1xf32> -> vector<1x48xf32>
    %187 = vector.broadcast %185 : vector<48x1xf32> to vector<48x48xf32>
    %188 = vector.broadcast %186 : vector<1x48xf32> to vector<48x48xf32>
    %189 = arith.addf %187, %188 : vector<48x48xf32>
    %cst_69 = arith.constant 0.000000e+00 : f32
    %190 = vector.broadcast %cst_69 : f32 to vector<48x48xf32>
    %191 = arith.cmpf oge, %189, %190 : vector<48x48xf32>
    %cst_70 = arith.constant 2.000000e-01 : f32
    %192 = vector.broadcast %cst_70 : f32 to vector<48x48xf32>
    %193 = arith.mulf %192, %189 : vector<48x48xf32>
    %194 = arith.select %191, %189, %193 : vector<48x48xi1>, vector<48x48xf32>
    %cst_71 = arith.constant 0.000000e+00 : f32
    %195 = vector.broadcast %cst_71 : f32 to vector<48x48xf32>
    %196 = arith.cmpf ogt, %21, %195 : vector<48x48xf32>
    %cst_72 = arith.constant -1.000000e+30 : f32
    %197 = vector.broadcast %cst_72 : f32 to vector<48x48xf32>
    %198 = arith.select %196, %194, %197 : vector<48x48xi1>, vector<48x48xf32>
    %cst_73 = arith.constant dense<0xFF800000> : vector<48xf32>
    %199 = vector.multi_reduction <maximumf>, %198, %cst_73 [1] : vector<48x48xf32> to vector<48xf32>
    %200 = vector.shape_cast %199 : vector<48xf32> to vector<48x1xf32>
    %201 = vector.broadcast %200 : vector<48x1xf32> to vector<48x48xf32>
    %202 = arith.subf %198, %201 : vector<48x48xf32>
    %203 = math.exp %202 : vector<48x48xf32>
    %204 = arith.mulf %203, %21 : vector<48x48xf32>
    %205 = tpu.concatenate %183, %45 in 1 : vector<48x8xf32>, vector<48x1xf32> -> vector<48x9xf32>
    %cst_74 = arith.constant dense<0.000000e+00> : vector<48x9xf32>
    %206 = tpu.matmul %204, %205, %cst_74 {dimension_numbers = #tpu.dot_dimension_numbers<[1], [0], [0], [1], [0, 0, 1, 1], [], []>} : vector<48x48xf32>, vector<48x9xf32>, vector<48x9xf32> -> vector<48x9xf32>
    %207 = vector.extract_strided_slice %206 {offsets = [0, 0], sizes = [48, 8], strides = [1, 1]} : vector<48x9xf32> to vector<48x8xf32>
    %208 = vector.extract_strided_slice %206 {offsets = [0, 8], sizes = [48, 1], strides = [1, 1]} : vector<48x9xf32> to vector<48x1xf32>
    %209 = tpu.reciprocal %208 {approx = true} : vector<48x1xf32> -> vector<48x1xf32>
    %210 = vector.broadcast %209 : vector<48x1xf32> to vector<48x8xf32>
    %211 = arith.mulf %207, %210 : vector<48x8xf32>
    %212 = vector.extract_strided_slice %181 {offsets = [0, 8], sizes = [48, 8], strides = [1, 1]} : vector<48x16xf32> to vector<48x8xf32>
    %213 = vector.extract_strided_slice %182 {offsets = [0, 2], sizes = [48, 1], strides = [1, 1]} : vector<48x4xf32> to vector<48x1xf32>
    %214 = vector.extract_strided_slice %182 {offsets = [0, 3], sizes = [48, 1], strides = [1, 1]} : vector<48x4xf32> to vector<48x1xf32>
    %215 = tpu.transpose %213, [1, 0] : vector<48x1xf32> -> vector<1x48xf32>
    %216 = vector.broadcast %214 : vector<48x1xf32> to vector<48x48xf32>
    %217 = vector.broadcast %215 : vector<1x48xf32> to vector<48x48xf32>
    %218 = arith.addf %216, %217 : vector<48x48xf32>
    %cst_75 = arith.constant 0.000000e+00 : f32
    %219 = vector.broadcast %cst_75 : f32 to vector<48x48xf32>
    %220 = arith.cmpf oge, %218, %219 : vector<48x48xf32>
    %cst_76 = arith.constant 2.000000e-01 : f32
    %221 = vector.broadcast %cst_76 : f32 to vector<48x48xf32>
    %222 = arith.mulf %221, %218 : vector<48x48xf32>
    %223 = arith.select %220, %218, %222 : vector<48x48xi1>, vector<48x48xf32>
    %cst_77 = arith.constant 0.000000e+00 : f32
    %224 = vector.broadcast %cst_77 : f32 to vector<48x48xf32>
    %225 = arith.cmpf ogt, %21, %224 : vector<48x48xf32>
    %cst_78 = arith.constant -1.000000e+30 : f32
    %226 = vector.broadcast %cst_78 : f32 to vector<48x48xf32>
    %227 = arith.select %225, %223, %226 : vector<48x48xi1>, vector<48x48xf32>
    %cst_79 = arith.constant dense<0xFF800000> : vector<48xf32>
    %228 = vector.multi_reduction <maximumf>, %227, %cst_79 [1] : vector<48x48xf32> to vector<48xf32>
    %229 = vector.shape_cast %228 : vector<48xf32> to vector<48x1xf32>
    %230 = vector.broadcast %229 : vector<48x1xf32> to vector<48x48xf32>
    %231 = arith.subf %227, %230 : vector<48x48xf32>
    %232 = math.exp %231 : vector<48x48xf32>
    %233 = arith.mulf %232, %21 : vector<48x48xf32>
    %234 = tpu.concatenate %212, %45 in 1 : vector<48x8xf32>, vector<48x1xf32> -> vector<48x9xf32>
    %cst_80 = arith.constant dense<0.000000e+00> : vector<48x9xf32>
    %235 = tpu.matmul %233, %234, %cst_80 {dimension_numbers = #tpu.dot_dimension_numbers<[1], [0], [0], [1], [0, 0, 1, 1], [], []>} : vector<48x48xf32>, vector<48x9xf32>, vector<48x9xf32> -> vector<48x9xf32>
    %236 = vector.extract_strided_slice %235 {offsets = [0, 0], sizes = [48, 8], strides = [1, 1]} : vector<48x9xf32> to vector<48x8xf32>
    %237 = vector.extract_strided_slice %235 {offsets = [0, 8], sizes = [48, 1], strides = [1, 1]} : vector<48x9xf32> to vector<48x1xf32>
    %238 = tpu.reciprocal %237 {approx = true} : vector<48x1xf32> -> vector<48x1xf32>
    %239 = vector.broadcast %238 : vector<48x1xf32> to vector<48x8xf32>
    %240 = arith.mulf %236, %239 : vector<48x8xf32>
    %241 = tpu.concatenate %211, %240 in 1 : vector<48x8xf32>, vector<48x8xf32> -> vector<48x16xf32>
    %242 = vector.broadcast %180 : vector<1x16xf32> to vector<48x16xf32>
    %243 = arith.addf %241, %242 : vector<48x16xf32>
    %c136 = arith.constant 136 : index
    %c0_81 = arith.constant 0 : index
    %244 = vector.load %arg3[%c136, %c0_81] : memref<208x128xf32, #tpu.memory_space<vmem>>, vector<16x16xf32>
    %c152 = arith.constant 152 : index
    %c0_82 = arith.constant 0 : index
    %245 = vector.load %arg3[%c152, %c0_82] : memref<208x128xf32, #tpu.memory_space<vmem>>, vector<16x4xf32>
    %c168 = arith.constant 168 : index
    %c0_83 = arith.constant 0 : index
    %246 = vector.load %arg3[%c168, %c0_83] : memref<208x128xf32, #tpu.memory_space<vmem>>, vector<1x16xf32>
    %cst_84 = arith.constant dense<0.000000e+00> : vector<48x16xf32>
    %247 = tpu.matmul %243, %244, %cst_84 {dimension_numbers = #tpu.dot_dimension_numbers<[1], [0], [0], [1], [0, 0, 1, 1], [], []>} : vector<48x16xf32>, vector<16x16xf32>, vector<48x16xf32> -> vector<48x16xf32>
    %cst_85 = arith.constant dense<0.000000e+00> : vector<48x4xf32>
    %248 = tpu.matmul %247, %245, %cst_85 {dimension_numbers = #tpu.dot_dimension_numbers<[1], [0], [0], [1], [0, 0, 1, 1], [], []>} : vector<48x16xf32>, vector<16x4xf32>, vector<48x4xf32> -> vector<48x4xf32>
    %249 = vector.extract_strided_slice %247 {offsets = [0, 0], sizes = [48, 8], strides = [1, 1]} : vector<48x16xf32> to vector<48x8xf32>
    %250 = vector.extract_strided_slice %248 {offsets = [0, 0], sizes = [48, 1], strides = [1, 1]} : vector<48x4xf32> to vector<48x1xf32>
    %251 = vector.extract_strided_slice %248 {offsets = [0, 1], sizes = [48, 1], strides = [1, 1]} : vector<48x4xf32> to vector<48x1xf32>
    %252 = tpu.transpose %250, [1, 0] : vector<48x1xf32> -> vector<1x48xf32>
    %253 = vector.broadcast %251 : vector<48x1xf32> to vector<48x48xf32>
    %254 = vector.broadcast %252 : vector<1x48xf32> to vector<48x48xf32>
    %255 = arith.addf %253, %254 : vector<48x48xf32>
    %cst_86 = arith.constant 0.000000e+00 : f32
    %256 = vector.broadcast %cst_86 : f32 to vector<48x48xf32>
    %257 = arith.cmpf oge, %255, %256 : vector<48x48xf32>
    %cst_87 = arith.constant 2.000000e-01 : f32
    %258 = vector.broadcast %cst_87 : f32 to vector<48x48xf32>
    %259 = arith.mulf %258, %255 : vector<48x48xf32>
    %260 = arith.select %257, %255, %259 : vector<48x48xi1>, vector<48x48xf32>
    %cst_88 = arith.constant 0.000000e+00 : f32
    %261 = vector.broadcast %cst_88 : f32 to vector<48x48xf32>
    %262 = arith.cmpf ogt, %23, %261 : vector<48x48xf32>
    %cst_89 = arith.constant -1.000000e+30 : f32
    %263 = vector.broadcast %cst_89 : f32 to vector<48x48xf32>
    %264 = arith.select %262, %260, %263 : vector<48x48xi1>, vector<48x48xf32>
    %cst_90 = arith.constant dense<0xFF800000> : vector<48xf32>
    %265 = vector.multi_reduction <maximumf>, %264, %cst_90 [1] : vector<48x48xf32> to vector<48xf32>
    %266 = vector.shape_cast %265 : vector<48xf32> to vector<48x1xf32>
    %267 = vector.broadcast %266 : vector<48x1xf32> to vector<48x48xf32>
    %268 = arith.subf %264, %267 : vector<48x48xf32>
    %269 = math.exp %268 : vector<48x48xf32>
    %270 = arith.mulf %269, %23 : vector<48x48xf32>
    %271 = tpu.concatenate %249, %45 in 1 : vector<48x8xf32>, vector<48x1xf32> -> vector<48x9xf32>
    %cst_91 = arith.constant dense<0.000000e+00> : vector<48x9xf32>
    %272 = tpu.matmul %270, %271, %cst_91 {dimension_numbers = #tpu.dot_dimension_numbers<[1], [0], [0], [1], [0, 0, 1, 1], [], []>} : vector<48x48xf32>, vector<48x9xf32>, vector<48x9xf32> -> vector<48x9xf32>
    %273 = vector.extract_strided_slice %272 {offsets = [0, 0], sizes = [48, 8], strides = [1, 1]} : vector<48x9xf32> to vector<48x8xf32>
    %274 = vector.extract_strided_slice %272 {offsets = [0, 8], sizes = [48, 1], strides = [1, 1]} : vector<48x9xf32> to vector<48x1xf32>
    %275 = tpu.reciprocal %274 {approx = true} : vector<48x1xf32> -> vector<48x1xf32>
    %276 = vector.broadcast %275 : vector<48x1xf32> to vector<48x8xf32>
    %277 = arith.mulf %273, %276 : vector<48x8xf32>
    %278 = vector.extract_strided_slice %247 {offsets = [0, 8], sizes = [48, 8], strides = [1, 1]} : vector<48x16xf32> to vector<48x8xf32>
    %279 = vector.extract_strided_slice %248 {offsets = [0, 2], sizes = [48, 1], strides = [1, 1]} : vector<48x4xf32> to vector<48x1xf32>
    %280 = vector.extract_strided_slice %248 {offsets = [0, 3], sizes = [48, 1], strides = [1, 1]} : vector<48x4xf32> to vector<48x1xf32>
    %281 = tpu.transpose %279, [1, 0] : vector<48x1xf32> -> vector<1x48xf32>
    %282 = vector.broadcast %280 : vector<48x1xf32> to vector<48x48xf32>
    %283 = vector.broadcast %281 : vector<1x48xf32> to vector<48x48xf32>
    %284 = arith.addf %282, %283 : vector<48x48xf32>
    %cst_92 = arith.constant 0.000000e+00 : f32
    %285 = vector.broadcast %cst_92 : f32 to vector<48x48xf32>
    %286 = arith.cmpf oge, %284, %285 : vector<48x48xf32>
    %cst_93 = arith.constant 2.000000e-01 : f32
    %287 = vector.broadcast %cst_93 : f32 to vector<48x48xf32>
    %288 = arith.mulf %287, %284 : vector<48x48xf32>
    %289 = arith.select %286, %284, %288 : vector<48x48xi1>, vector<48x48xf32>
    %cst_94 = arith.constant 0.000000e+00 : f32
    %290 = vector.broadcast %cst_94 : f32 to vector<48x48xf32>
    %291 = arith.cmpf ogt, %23, %290 : vector<48x48xf32>
    %cst_95 = arith.constant -1.000000e+30 : f32
    %292 = vector.broadcast %cst_95 : f32 to vector<48x48xf32>
    %293 = arith.select %291, %289, %292 : vector<48x48xi1>, vector<48x48xf32>
    %cst_96 = arith.constant dense<0xFF800000> : vector<48xf32>
    %294 = vector.multi_reduction <maximumf>, %293, %cst_96 [1] : vector<48x48xf32> to vector<48xf32>
    %295 = vector.shape_cast %294 : vector<48xf32> to vector<48x1xf32>
    %296 = vector.broadcast %295 : vector<48x1xf32> to vector<48x48xf32>
    %297 = arith.subf %293, %296 : vector<48x48xf32>
    %298 = math.exp %297 : vector<48x48xf32>
    %299 = arith.mulf %298, %23 : vector<48x48xf32>
    %300 = tpu.concatenate %278, %45 in 1 : vector<48x8xf32>, vector<48x1xf32> -> vector<48x9xf32>
    %cst_97 = arith.constant dense<0.000000e+00> : vector<48x9xf32>
    %301 = tpu.matmul %299, %300, %cst_97 {dimension_numbers = #tpu.dot_dimension_numbers<[1], [0], [0], [1], [0, 0, 1, 1], [], []>} : vector<48x48xf32>, vector<48x9xf32>, vector<48x9xf32> -> vector<48x9xf32>
    %302 = vector.extract_strided_slice %301 {offsets = [0, 0], sizes = [48, 8], strides = [1, 1]} : vector<48x9xf32> to vector<48x8xf32>
    %303 = vector.extract_strided_slice %301 {offsets = [0, 8], sizes = [48, 1], strides = [1, 1]} : vector<48x9xf32> to vector<48x1xf32>
    %304 = tpu.reciprocal %303 {approx = true} : vector<48x1xf32> -> vector<48x1xf32>
    %305 = vector.broadcast %304 : vector<48x1xf32> to vector<48x8xf32>
    %306 = arith.mulf %302, %305 : vector<48x8xf32>
    %307 = tpu.concatenate %277, %306 in 1 : vector<48x8xf32>, vector<48x8xf32> -> vector<48x16xf32>
    %308 = vector.broadcast %246 : vector<1x16xf32> to vector<48x16xf32>
    %309 = arith.addf %307, %308 : vector<48x16xf32>
    %c176 = arith.constant 176 : index
    %c0_98 = arith.constant 0 : index
    %310 = vector.load %arg3[%c176, %c0_98] : memref<208x128xf32, #tpu.memory_space<vmem>>, vector<16x2xf32>
    %c192 = arith.constant 192 : index
    %c0_99 = arith.constant 0 : index
    %311 = vector.load %arg3[%c192, %c0_99] : memref<208x128xf32, #tpu.memory_space<vmem>>, vector<2x4xf32>
    %c200 = arith.constant 200 : index
    %c0_100 = arith.constant 0 : index
    %312 = vector.load %arg3[%c200, %c0_100] : memref<208x128xf32, #tpu.memory_space<vmem>>, vector<1x1xf32>
    %cst_101 = arith.constant dense<0.000000e+00> : vector<48x2xf32>
    %313 = tpu.matmul %309, %310, %cst_101 {dimension_numbers = #tpu.dot_dimension_numbers<[1], [0], [0], [1], [0, 0, 1, 1], [], []>} : vector<48x16xf32>, vector<16x2xf32>, vector<48x2xf32> -> vector<48x2xf32>
    %cst_102 = arith.constant dense<0.000000e+00> : vector<48x4xf32>
    %314 = tpu.matmul %313, %311, %cst_102 {dimension_numbers = #tpu.dot_dimension_numbers<[1], [0], [0], [1], [0, 0, 1, 1], [], []>} : vector<48x2xf32>, vector<2x4xf32>, vector<48x4xf32> -> vector<48x4xf32>
    %315 = vector.extract_strided_slice %313 {offsets = [0, 0], sizes = [48, 1], strides = [1, 1]} : vector<48x2xf32> to vector<48x1xf32>
    %316 = vector.extract_strided_slice %314 {offsets = [0, 0], sizes = [48, 1], strides = [1, 1]} : vector<48x4xf32> to vector<48x1xf32>
    %317 = vector.extract_strided_slice %314 {offsets = [0, 1], sizes = [48, 1], strides = [1, 1]} : vector<48x4xf32> to vector<48x1xf32>
    %318 = tpu.transpose %316, [1, 0] : vector<48x1xf32> -> vector<1x48xf32>
    %319 = vector.broadcast %317 : vector<48x1xf32> to vector<48x48xf32>
    %320 = vector.broadcast %318 : vector<1x48xf32> to vector<48x48xf32>
    %321 = arith.addf %319, %320 : vector<48x48xf32>
    %cst_103 = arith.constant 0.000000e+00 : f32
    %322 = vector.broadcast %cst_103 : f32 to vector<48x48xf32>
    %323 = arith.cmpf oge, %321, %322 : vector<48x48xf32>
    %cst_104 = arith.constant 2.000000e-01 : f32
    %324 = vector.broadcast %cst_104 : f32 to vector<48x48xf32>
    %325 = arith.mulf %324, %321 : vector<48x48xf32>
    %326 = arith.select %323, %321, %325 : vector<48x48xi1>, vector<48x48xf32>
    %cst_105 = arith.constant 0.000000e+00 : f32
    %327 = vector.broadcast %cst_105 : f32 to vector<48x48xf32>
    %328 = arith.cmpf ogt, %21, %327 : vector<48x48xf32>
    %cst_106 = arith.constant -1.000000e+30 : f32
    %329 = vector.broadcast %cst_106 : f32 to vector<48x48xf32>
    %330 = arith.select %328, %326, %329 : vector<48x48xi1>, vector<48x48xf32>
    %cst_107 = arith.constant dense<0xFF800000> : vector<48xf32>
    %331 = vector.multi_reduction <maximumf>, %330, %cst_107 [1] : vector<48x48xf32> to vector<48xf32>
    %332 = vector.shape_cast %331 : vector<48xf32> to vector<48x1xf32>
    %333 = vector.broadcast %332 : vector<48x1xf32> to vector<48x48xf32>
    %334 = arith.subf %330, %333 : vector<48x48xf32>
    %335 = math.exp %334 : vector<48x48xf32>
    %336 = arith.mulf %335, %21 : vector<48x48xf32>
    %337 = tpu.concatenate %315, %45 in 1 : vector<48x1xf32>, vector<48x1xf32> -> vector<48x2xf32>
    %cst_108 = arith.constant dense<0.000000e+00> : vector<48x2xf32>
    %338 = tpu.matmul %336, %337, %cst_108 {dimension_numbers = #tpu.dot_dimension_numbers<[1], [0], [0], [1], [0, 0, 1, 1], [], []>} : vector<48x48xf32>, vector<48x2xf32>, vector<48x2xf32> -> vector<48x2xf32>
    %339 = vector.extract_strided_slice %338 {offsets = [0, 0], sizes = [48, 1], strides = [1, 1]} : vector<48x2xf32> to vector<48x1xf32>
    %340 = vector.extract_strided_slice %338 {offsets = [0, 1], sizes = [48, 1], strides = [1, 1]} : vector<48x2xf32> to vector<48x1xf32>
    %341 = tpu.reciprocal %340 {approx = true} : vector<48x1xf32> -> vector<48x1xf32>
    %342 = arith.mulf %339, %341 : vector<48x1xf32>
    %343 = vector.extract_strided_slice %313 {offsets = [0, 1], sizes = [48, 1], strides = [1, 1]} : vector<48x2xf32> to vector<48x1xf32>
    %344 = vector.extract_strided_slice %314 {offsets = [0, 2], sizes = [48, 1], strides = [1, 1]} : vector<48x4xf32> to vector<48x1xf32>
    %345 = vector.extract_strided_slice %314 {offsets = [0, 3], sizes = [48, 1], strides = [1, 1]} : vector<48x4xf32> to vector<48x1xf32>
    %346 = tpu.transpose %344, [1, 0] : vector<48x1xf32> -> vector<1x48xf32>
    %347 = vector.broadcast %345 : vector<48x1xf32> to vector<48x48xf32>
    %348 = vector.broadcast %346 : vector<1x48xf32> to vector<48x48xf32>
    %349 = arith.addf %347, %348 : vector<48x48xf32>
    %cst_109 = arith.constant 0.000000e+00 : f32
    %350 = vector.broadcast %cst_109 : f32 to vector<48x48xf32>
    %351 = arith.cmpf oge, %349, %350 : vector<48x48xf32>
    %cst_110 = arith.constant 2.000000e-01 : f32
    %352 = vector.broadcast %cst_110 : f32 to vector<48x48xf32>
    %353 = arith.mulf %352, %349 : vector<48x48xf32>
    %354 = arith.select %351, %349, %353 : vector<48x48xi1>, vector<48x48xf32>
    %cst_111 = arith.constant 0.000000e+00 : f32
    %355 = vector.broadcast %cst_111 : f32 to vector<48x48xf32>
    %356 = arith.cmpf ogt, %21, %355 : vector<48x48xf32>
    %cst_112 = arith.constant -1.000000e+30 : f32
    %357 = vector.broadcast %cst_112 : f32 to vector<48x48xf32>
    %358 = arith.select %356, %354, %357 : vector<48x48xi1>, vector<48x48xf32>
    %cst_113 = arith.constant dense<0xFF800000> : vector<48xf32>
    %359 = vector.multi_reduction <maximumf>, %358, %cst_113 [1] : vector<48x48xf32> to vector<48xf32>
    %360 = vector.shape_cast %359 : vector<48xf32> to vector<48x1xf32>
    %361 = vector.broadcast %360 : vector<48x1xf32> to vector<48x48xf32>
    %362 = arith.subf %358, %361 : vector<48x48xf32>
    %363 = math.exp %362 : vector<48x48xf32>
    %364 = arith.mulf %363, %21 : vector<48x48xf32>
    %365 = tpu.concatenate %343, %45 in 1 : vector<48x1xf32>, vector<48x1xf32> -> vector<48x2xf32>
    %cst_114 = arith.constant dense<0.000000e+00> : vector<48x2xf32>
    %366 = tpu.matmul %364, %365, %cst_114 {dimension_numbers = #tpu.dot_dimension_numbers<[1], [0], [0], [1], [0, 0, 1, 1], [], []>} : vector<48x48xf32>, vector<48x2xf32>, vector<48x2xf32> -> vector<48x2xf32>
    %367 = vector.extract_strided_slice %366 {offsets = [0, 0], sizes = [48, 1], strides = [1, 1]} : vector<48x2xf32> to vector<48x1xf32>
    %368 = vector.extract_strided_slice %366 {offsets = [0, 1], sizes = [48, 1], strides = [1, 1]} : vector<48x2xf32> to vector<48x1xf32>
    %369 = tpu.reciprocal %368 {approx = true} : vector<48x1xf32> -> vector<48x1xf32>
    %370 = arith.mulf %367, %369 : vector<48x1xf32>
    %371 = arith.addf %342, %370 : vector<48x1xf32>
    %cst_115 = arith.constant 5.000000e-01 : f32
    %372 = vector.broadcast %cst_115 : f32 to vector<48x1xf32>
    %373 = arith.mulf %371, %372 : vector<48x1xf32>
    %374 = vector.broadcast %312 : vector<1x1xf32> to vector<48x1xf32>
    %375 = arith.addf %373, %374 : vector<48x1xf32>
    %376 = vector.extract_strided_slice %375 {offsets = [0, 0], sizes = [16, 1], strides = [1, 1]} : vector<48x1xf32> to vector<16x1xf32>
    %377 = vector.extract_strided_slice %375 {offsets = [16, 0], sizes = [16, 1], strides = [1, 1]} : vector<48x1xf32> to vector<16x1xf32>
    %378 = arith.minimumf %376, %377 : vector<16x1xf32>
    %379 = vector.extract_strided_slice %375 {offsets = [32, 0], sizes = [16, 1], strides = [1, 1]} : vector<48x1xf32> to vector<16x1xf32>
    %380 = arith.minimumf %378, %379 : vector<16x1xf32>
    %cst_116 = arith.constant 0.000000e+00 : f32
    %381 = vector.broadcast %cst_116 : f32 to vector<16x1xf32>
    %382 = arith.maximumf %380, %381 : vector<16x1xf32>
    %cst_117 = arith.constant dense<0xFF800000> : vector<1xf32>
    %383 = vector.multi_reduction <maximumf>, %382, %cst_117 [0] : vector<16x1xf32> to vector<1xf32>
    %384 = vector.shape_cast %383 : vector<1xf32> to vector<1x1xf32>
    %c16_118 = arith.constant 16 : index
    %c0_119 = arith.constant 0 : index
    %385 = vector.load %arg3[%c16_118, %c0_119] : memref<208x128xf32, #tpu.memory_space<vmem>>, vector<1x1xf32>
    %386 = arith.mulf %384, %385 : vector<1x1xf32>
    %c0_120 = arith.constant 0 : index
    %c0_121 = arith.constant 0 : index
    %387 = vector.load %arg4[%c0_120, %c0_121] : memref<1x1xf32, #tpu.memory_space<vmem>>, vector<1x1xf32>
    tpu.vector_store %arg4[%c0_120, %c0_121], %386 {strides = array<i32>} : memref<1x1xf32, #tpu.memory_space<vmem>>, vector<1x1xf32>,
    return
  }
}

</mosaic_0001>

<bundles_post_ra>
// kernel: tpu_custom_call.1
= control target key start
LH: loop header
LB: loop body
LE: loop exit
PB: predicated region body
PF: predicated region fallthrough
CT: control target
= control target key end

     0   :  { %10 = vsyncpa [#allocation4], 0  ;;  %s7920_s0 = inlined_call_operand.<no memory space> [shape: s32[1], index: 0, kind: input, shape index: {}]   ;;  %s7921_s1 = inlined_call_operand.hbm [shape: f32[4,48,48], index: 1, kind: input, shape index: {}]   ;;  %s7922_s2 = inlined_call_operand.hbm [shape: f32[120,128], index: 2, kind: input, shape index: {}]   ;;  %s7923_s3 = inlined_call_operand.hbm [shape: f32[208,128], index: 3, kind: input, shape index: {}]   ;;  %s7924_s4 = inlined_call_operand.hbm [shape: f32[1,1], index: 4, kind: output, shape index: {}]  }
   0x1   :  { %11 = vsyncpa [#allocation7], 0 }
   0x2   :  { %12 = vsyncpa [#allocation5], 0  ;;  %s6608_s15 = smov [#allocation6]   ;;  %s6609_s17 = smov [#allocation3]  }
   0x3   :  { %s32_s16 = sshll.u32 %s6608_s15, 4  ;;  %s20_s18 = sshll.u32 %s6609_s17, 4  ;;  %s33_s16 = int_to_ptr.vmem [resolvable:$true] %s32_s16  ;;  %s6651_s18 = int_to_ptr.vmem [resolvable:$true] %s20_s18 }
   0x4   :  { %s6514_s21 = scalar_lea.hbm %s7922_s2, 1920 }
   0x5   :  { %p6515_p0 = scmp.ne.s32.totalorder %s7922_s2, %s6514_s21  ;;  %p6518_p1 = scmp.lt.u32.totalorder %s6514_s21, %s7922_s2 }
   0x7   :  { %p6520_p2 = pnand %p6518_p1, %p6515_p0 }
   0x9   :  { %6523 = shalt.err (!%p6520_p2)
}
   0xa   :  { %s6524_s26 = scalar_lea.vmem %s33_s16, 1920  ;;  %p6529_p4 = scmp.lt.s32.totalorder %s33_s16, %s33_s16 }
   0xb   :  { %p6525_p3 = scmp.ne.s32.totalorder %s33_s16, %s6524_s26  ;;  %p6530_p5 = scmp.lt.s32.totalorder %s6524_s26, %s6524_s26 }
   0xd   :  { %p6531_p6 = por %p6530_p5, %p6529_p4 }
   0xf   :  { %p6532_p7 = pnand %p6531_p6, %p6525_p3 }
  0x11   :  { %6535 = shalt.err (!%p6532_p7)
}
  0x12   :  { %s6610_s27 = smov 128   ;;  %s6611_s28 = smov 8  }
  0x13   :  { %38 = dma.hbm_to_vmem [thread:$0]  %s7922_s2, 1920, %s33_s16, [#allocation7], %s6610_s27, %s6610_s27, %s6611_s28  }
  0x14   :  { %s6536_s7 = scalar_lea.hbm %s7921_s1, 3072 }
  0x15   :  { %p6537_p8 = scmp.ne.s32.totalorder %s7921_s1, %s6536_s7  ;;  %p6540_p9 = scmp.lt.u32.totalorder %s6536_s7, %s7921_s1 }
  0x17   :  { %p6542_p10 = pnand %p6540_p9, %p6537_p8 }
  0x19   :  { %6545 = shalt.err (!%p6542_p10)
}
  0x1a   :  { %s6546_s12 = scalar_lea.vmem %s6651_s18, 3072  ;;  %p6551_p12 = scmp.lt.s32.totalorder %s6651_s18, %s6651_s18 }
  0x1b   :  { %p6547_p11 = scmp.ne.s32.totalorder %s6651_s18, %s6546_s12  ;;  %p6552_p13 = scmp.lt.s32.totalorder %s6546_s12, %s6546_s12 }
  0x1d   :  { %p6553_p0 = por %p6552_p13, %p6551_p12 }
  0x1f   :  { %p6554_p1 = pnand %p6553_p0, %p6547_p11 }
  0x21   :  { %6557 = shalt.err (!%p6554_p1)
}
  0x22   :  { %26 = dma.hbm_to_vmem [thread:$0]  %s7921_s1, 3072, %s6651_s18, [#allocation4], %s6610_s27, %s6610_s27, %s6611_s28  }
  0x23   :  { %s6612_s14 = smov [#allocation8]   ;;  %s6558_s19 = scalar_lea.hbm %s7923_s3, 3328 }
  0x24   :  { %s44_s15 = sshll.u32 %s6612_s14, 4  ;;  %p6559_p2 = scmp.ne.s32.totalorder %s7923_s3, %s6558_s19  ;;  %s45_s15 = int_to_ptr.vmem [resolvable:$true] %s44_s15 }
  0x25   :  { %p6562_p3 = scmp.lt.u32.totalorder %s6558_s19, %s7923_s3 }
  0x27   :  { %p6564_p4 = pnand %p6562_p3, %p6559_p2 }
  0x29   :  { %6567 = shalt.err (!%p6564_p4)
}
  0x2a   :  { %s6568_s24 = scalar_lea.vmem %s45_s15, 3328  ;;  %p6573_p6 = scmp.lt.s32.totalorder %s45_s15, %s45_s15 }
  0x2b   :  { %p6569_p5 = scmp.ne.s32.totalorder %s45_s15, %s6568_s24  ;;  %p6574_p7 = scmp.lt.s32.totalorder %s6568_s24, %s6568_s24 }
  0x2d   :  { %p6575_p8 = por %p6574_p7, %p6573_p6 }
  0x2f   :  { %p6576_p9 = pnand %p6575_p8, %p6569_p5 }
  0x31   :  { %6579 = shalt.err (!%p6576_p9)
}
  0x32   :  { %50 = dma.hbm_to_vmem [thread:$0]  %s7923_s3, 3328, %s45_s15, [#allocation7], %s6610_s27, %s6610_s27, %s6611_s28  }
  0x33   :  { %6602 = dma.done.wait [#allocation4], 3072  }
  0x34   :  { %6603 = vsyncadd [#allocation4], 4294964224  ;;  %v161_v0 = vlaneseq }
  0x35   :  { %6604 = dma.done.wait [#allocation7], 5248  }
  0x36   :  { %6605 = vsyncadd [#allocation7], 4294962048  ;;  %v163_v1 = vstv %s7920_s0  ;;  %v162_v2 = vand.u32 127, %v161_v0  ;;  %v6613_v3 = vmov 0.0|0.0   ;;  %vm6614_vm0 = vmmov 0   ;;  %s6616_s3 = smov 16  }
  0x37   :  { %5958 = vmatprep.subr.bf16.mxu0 %v6613_v3  ;;  %v6615_v4 = vmov 0.0   ;;  %vm68_vm2 = vcmask 130048   ;;  %v64_v6 = vld [vmem:[#allocation6 + $0x20] sm:$0xff]  ;;  %v65_v7 = vld [vmem:[#allocation6 + $0x28] sm:$0xff]  ;;  %v62_v10 = vld [vmem:[#allocation6 + $0x10] sm:$0xff]  ;;  %s6617_s0 = smov 32  }
  0x38   :  { %5591 = vmatprep.mubr.msk.f32.mxu0 %vm6614_vm0, %v6615_v4  ;;  %vm164_vm1 = vcmp.ne.s32.totalorder %v162_v2, %v163_v1  ;;  %v60_v8 = vld [vmem:[#allocation6] sm:$0xff]  ;;  %v5930_v9 = vpack.c.bf16 %v65_v7, %v64_v6  ;;  %v63_v11 = vld [vmem:[#allocation6 + $0x18] sm:$0xff]  ;;  %v150_v12 = vsel %vm68_vm2, %v62_v10, 0.0  ;;  %v6709_v13 = vld [vmem:[#allocation3 + $0x90] sm:$0xff]  ;;  %vm211_vm3 = vcmask 392192   ;;  %s6621_s27 = smov 126  }
  0x39   :  { %v165_v5 = vsel %vm164_vm1, 1.0, %v6615_v4  ;;  %5534 = vmatprep.mubr.msk.f32.mxu1 %vm68_vm2, %v60_v8  ;;  %v6711_v14 = vld [vmem:[#allocation3 + $0x98] sm:$0xff]  ;;  %v6713_v15 = vld [vmem:[#allocation3 + $0xa0] sm:$0xff]  ;;  %v6717_v17 = vld [vmem:[#allocation3 + $0xa8] sm:$0xff]  ;;  %151 = vadd.xlane.f32.xlu0 %v150_v12  ;;  %v153_v19 = vsel %vm68_vm2, %v63_v11, 0.0  ;;  %vm174_vm4 = vcmask 261120  }
  0x3a   :  { %167 = vrot.lane.b32.xlu1 %v165_v5, %s6616_s3  ;;  %5931 = vmatprep.subr.bf16.mxu1 %v5930_v9  ;;  %v5959_v16 = vpack.c.bf16 %v6711_v14, %v6709_v13  ;;  %v61_v18 = vld [vmem:[#allocation6 + $0x8] sm:$0xff]  ;;  %v5962_v20 = vpack.c.bf16 %v6717_v17, %v6713_v15  ;;  %v6722_v21 = vld [vmem:[#allocation3 + $0xb0] sm:$0xff]  ;;  %v6724_v22 = vld [vmem:[#allocation3 + $0xb8] sm:$0xff]  ;;  %v6618_v32 = vmov 0   ;;  %vm641_vm5 = vcmask 64512   ;;  %s6622_s29 = smov 120  }
  0x3b   :  { %5933 = vmatpush3.bf16.msra.mxu1 %v5930_v9  ;;  %v5965_v23 = vpack.c.bf16 %v6724_v22, %v6722_v21  ;;  %v192_v24 = vld [vmem:[#allocation3 + $0x60] sm:$0xff]  ;;  %6143 = vset.pattern.permute.xlu1 %v6618_v32  ;;  %v67_v33 = vld [vmem:[#allocation6 + $0x38] sm:$0xff]  ;;  %v66_v35 = vld [vmem:[#allocation6 + $0x30] sm:$0xff]  ;;  %s6625_s30 = smov [#allocation9]  }
  0x3c   :  { %5960 = vmatpush3.bf16.msra.mxu0 %v5959_v16  ;;  %v176_v26 = vld [vmem:[#allocation6 + $0x40] sm:$0x1]  ;;  %v205_v43 = vld [vmem:[#allocation6 + $0x48] sm:$0xff]  ;;  %v206_v44 = vld [vmem:[#allocation6 + $0x50] sm:$0xff]  ;;  %s5144_s5 = sshll.u32 %s6625_s30, 4  ;;  %s5145_s5 = int_to_ptr.vmem [resolvable:$true] %s5144_s5 }
  0x3d   :  { %5961 = vmatprep.subr.bf16.mxu0 %v6613_v3  ;;  %154 = vadd.xlane.f32.xlu0 %v153_v19  ;;  %v5946_v45 = vpack.c.bf16 %v206_v44, %v205_v43  ;;  %v207_v46 = vld [vmem:[#allocation6 + $0x58] sm:$0xff]  ;;  %v208_v47 = vld [vmem:[#allocation6 + $0x60] sm:$0xff]  ;;  %v193_v48 = vld [vmem:[#allocation3 + $0x68] sm:$0xff]  ;;  %s6580_s6 = scalar_lea.vmem %s5145_s5, 16  ;;  %s6584_s7 = scalar_lea.vmem %s5145_s5, 32 }
  0x3e   :  { %170 = vrot.lane.b32.xlu1 %v165_v5, %s6617_s0  ;;  %5535 = vmatmul.mubr.msk.f32.vlgmr.msra.gmra.mrb[0].mxu1 %vm68_vm2, %v61_v18  ;;  %v194_v49 = vld [vmem:[#allocation3 + $0x70] sm:$0xff]  ;;  %v5950_v50 = vpack.c.bf16 %v208_v47, %v207_v46  ;;  %v209_v51 = vld [vmem:[#allocation6 + $0x68] sm:$0xff]  ;;  %v195_v53 = vld [vmem:[#allocation3 + $0x78] sm:$0xff]  ;;  %p6581_p10 = scmp.ne.s32.totalorder %s5145_s5, %s6580_s6  ;;  %p6585_p11 = scmp.lt.s32.totalorder %s5145_s5, %s5145_s5 }
  0x3f   :  { %5549 = vmatprep.mubr.msk.f32.mxu1 %vm211_vm3, %v192_v24  ;;  %v210_v52 = vld [vmem:[#allocation6 + $0x70] sm:$0xff]  ;;  %v196_v54 = vld [vmem:[#allocation3 + $0x80] sm:$0xff]  ;;  %v197_v56 = vld [vmem:[#allocation3 + $0x88] sm:$0xff]  ;;  %p6586_p12 = scmp.lt.s32.totalorder %s6584_s7, %s6580_s6 }
  0x40   :  { %5963 = vmatpush3.bf16.msra.mxu0 %v5962_v20  ;;  %v5954_v55 = vpack.c.bf16 %v210_v52, %v209_v51  ;;  %v637_v7 = vld [vmem:[#allocation8 + $0x18] sm:$0xff]  ;;  %v638_v9 = vld [vmem:[#allocation8 + $0x20] sm:$0xff]  ;;  %v639_v10 = vld [vmem:[#allocation8 + $0x28] sm:$0xff] }
  0x41   :  { %5964 = vmatprep.subr.bf16.mxu0 %v6613_v3  ;;  %v5967_v11 = vpack.c.bf16 %v639_v10, %v638_v9  ;;  %v5170_v19 = vld [vmem:[#allocation8 + $0x8] ss:$0 sm:$0xff]  ;;  %p6587_p13 = por %p6586_p12, %p6585_p11 }
  0x43   :  { %p6588_p0 = pnand %p6587_p13, %p6581_p10 }
  0x44   :  { %5966 = vmatpush3.bf16.msra.mxu0 %v5965_v23 }
  0x45   :  { %5594 = vmatprep.subr.mxu0 %v637_v7 }
  0xac   :  { %v168_v25 = vpop.permute.xlu1 %167 }
  0xad   :  { %v173_v27 = vsel %vm68_vm2, %v165_v5, %v168_v25 }
  0xb0   :  { %v171_v28 = vpop.permute.xlu1 %170 }
  0xb1   :  { %v175_v29 = vsel %vm174_vm4, %v173_v27, %v171_v28 }
  0xb2   :  { %v177_v30 = vmul.f32 %v176_v26, %v175_v29 }
  0xb4   :  { %5592 = vmatmul.mubr.msk.f32.vlgmr.msra.gmra.mrb[0].mxu0 %vm211_vm3, %v177_v30 }
  0xb5   :  { %5595 = vmatpush3.msra.mxu0 %v637_v7 }
  0xb6   :  { %5968 = vmatprep.subr.bf16.mxu0 %v5967_v11 }
  0xc6   :  { %v152_v31 = vpop.xlane.xlu0 %151 }
  0xc7   :  { %v156_v37 = vmul.f32 %v152_v31, %v66_v35 }
  0xca   :  { %v155_v34 = vpop.xlane.xlu0 %154 }
  0xcb   :  { %v157_v36 = vmul.f32 %v155_v34, %v67_v33 }
 0x111   :  { %v5536_v38 = vpop.f32.mrb[0].mxu1 }
 0x112   :  { %v159_v39 = vmax.f32 %v5536_v38, %v157_v36  ;;  %v141_v40 = vpop.f32.mrb[1].mxu1 }
 0x113   :  { %v158_v41 = vmax.f32 %v141_v40, %v156_v37 }
 0x115   :  { %v5934_v42 = vpack.c.bf16 %v159_v39, %v158_v41 }
 0x117   :  { %5935 = vmatprep.subr.bf16.mxu1 %v5934_v42 }
 0x118   :  { %5937 = vmatpush3.bf16.msra.mxu1 %v5934_v42 }
 0x119   :  { %5939 = vmatprep.subr.bf16.mxu1 %v5934_v42 }
 0x11c   :  { %5941 = vmatpush3.bf16.msra.mxu1 %v5934_v42 }
 0x11d   :  { %5943 = vmatprep.subr.bf16.mxu1 %v5934_v42 }
 0x120   :  { %5945 = vmatpush3.bf16.msra.mxu1 %v5934_v42 }
 0x121   :  { %5947 = vmatprep.subr.bf16.mxu1 %v5946_v45 }
 0x123   :  { %5550 = vmatmul.mubr.msk.f32.vlgmr.msra.gmra.mrb[2].mxu1 %vm211_vm3, %v193_v48 }
 0x124   :  { %5949 = vmatpush3.bf16.msra.mxu1 %v5946_v45  ;;  %5552 = vmatprep.mubr.msk.f32.mxu1 %vm211_vm3, %v194_v49 }
 0x125   :  { %5951 = vmatprep.subr.bf16.mxu1 %v5950_v50 }
 0x127   :  { %5553 = vmatmul.mubr.msk.f32.gmra.mrb[4].mxu1 %vm211_vm3, %v195_v53 }
 0x128   :  { %5953 = vmatpush3.bf16.msra.mxu1 %v5950_v50  ;;  %5555 = vmatprep.mubr.msk.f32.mxu1 %vm211_vm3, %v196_v54  ;;  %v6619_v50 = vmov 1  }
 0x129   :  { %5955 = vmatprep.subr.bf16.mxu1 %v5954_v55 }
 0x12b   :  { %5556 = vmatmul.mubr.msk.f32.gmra.mrb[6].mxu1 %vm211_vm3, %v197_v56 }
 0x12c   :  { %5957 = vmatpush3.bf16.msra.mxu1 %v5954_v55  ;;  %5570 = vmatprep.mubr.msk.f32.mxu1 %vm211_vm3, %v6709_v13 }
 0x12f   :  { %5571 = vmatmul.mubr.msk.f32.vlgmr.msra.gmra.mrb[2].mxu1 %vm211_vm3, %v6711_v14 }
 0x130   :  { %5573 = vmatprep.mubr.msk.f32.mxu1 %vm211_vm3, %v6713_v15 }
 0x133   :  { %5574 = vmatmul.mubr.msk.f32.gmra.mrb[4].mxu1 %vm211_vm3, %v6717_v17  ;;  %v5169_v17 = vld [vmem:[#allocation8] ss:$0 sm:$0xff] }
 0x134   :  { %5576 = vmatprep.mubr.msk.f32.mxu1 %vm211_vm3, %v6722_v21 }
 0x137   :  { %5577 = vmatmul.mubr.msk.f32.gmra.mrb[6].mxu1 %vm211_vm3, %v6724_v22 }
 0x187   :  { %v507_v57 = vpop.f32.mrb[0].mxu0 }
 0x188   :  { %v5593_v58 = vpop.f32.mrb[1].mxu0  ;;  %511 = vxpose.xlu0.b32.start.end [1/1] (short) (narrow) %v507_v57, 48 }
 0x1b1   :  { %6145 = vset.pattern.permute.xlu0 %v6619_v50 }
 0x202   :  { %v5572_v59 = vpop.f32.mrb[2].mxu1 }
 0x203   :  { %v409_v60 = vpop.f32.mrb[3].mxu1 }
 0x206   :  { %v5575_v62 = vpop.f32.mrb[4].mxu1 }
 0x207   :  { %v419_v63 = vpop.f32.mrb[5].mxu1 }
 0x208   :  { %v527_v61 = vpop.trf.xlu0 }
 0x209   :  { %587 = vperm.xlu1 %6143, %v527_v61  }
 0x20a   :  { %v5578_v2 = vpop.f32.mrb[6].mxu1 }
 0x20b   :  { %v429_v3 = vpop.f32.mrb[7].mxu1 }
 0x20c   :  { %v528_v1 = vpop.trf.xlu0 }
 0x20d   :  { %592 = vperm.xlu1 %6143, %v528_v1  }
 0x210   :  { %v529_v4 = vpop.trf.xlu0 }
 0x211   :  { %597 = vperm.xlu1 %6143, %v529_v4  }
 0x214   :  { %v530_v5 = vpop.trf.xlu0 }
 0x215   :  { %602 = vperm.xlu1 %6143, %v530_v5  }
 0x218   :  { %v531_v6 = vpop.trf.xlu0 }
 0x219   :  { %607 = vperm.xlu1 %6143, %v531_v6   ;;  %v6620_v6 = vmov 3  }
 0x21c   :  { %v532_v8 = vpop.trf.xlu0 }
 0x21d   :  { %551 = vperm.xlu1 %6143, %v5572_v59  }
 0x221   :  { %546 = vperm.xlu1 %6143, %v409_v60  }
 0x225   :  { %561 = vperm.xlu1 %6143, %v5575_v62  }
 0x229   :  { %556 = vperm.xlu1 %6143, %v419_v63  }
 0x22d   :  { %571 = vperm.xlu1 %6143, %v5578_v2  }
 0x231   :  { %566 = vperm.xlu1 %6143, %v429_v3  }
 0x235   :  { %612 = vperm.xlu1 %6143, %v532_v8  }
 0x239   :  { %6144 = vset.pattern.permute.xlu1 %v6620_v6 }
 0x288   :  { %v588_v12 = vpop.permute.xlu1 %587 }
 0x289   :  { %v619_v23 = vmul.f32 %v5170_v19, %v588_v12 }
 0x28c   :  { %v593_v13 = vpop.permute.xlu1 %592 }
 0x28d   :  { %v620_v21 = vmul.f32 %v5170_v19, %v593_v13 }
 0x290   :  { %v598_v14 = vpop.permute.xlu1 %597 }
 0x291   :  { %v621_v33 = vmul.f32 %v5170_v19, %v598_v14 }
 0x294   :  { %v603_v15 = vpop.permute.xlu1 %602 }
 0x295   :  { %v622_v31 = vmul.f32 %v5170_v19, %v603_v15 }
 0x298   :  { %v608_v16 = vpop.permute.xlu1 %607 }
 0x299   :  { %v623_v41 = vmul.f32 %v5170_v19, %v608_v16 }
 0x29c   :  { %v552_v18 = vpop.permute.xlu1 %551 }
 0x29d   :  { %v579_v20 = vmul.f32 %v5169_v17, %v552_v18 }
 0x29f   :  { %v626_v25 = vadd.f32 %v620_v21, %v579_v20 }
 0x2a0   :  { %v547_v22 = vpop.permute.xlu1 %546 }
 0x2a1   :  { %v578_v24 = vmul.f32 %v5169_v17, %v547_v22  ;;  %v632_v29 = vmax.f32 %v626_v25, 0.0  ;;  %v931_v25 = vshrl.u32 %v161_v0, 7 }
 0x2a3   :  { %v625_v26 = vadd.f32 %v619_v23, %v578_v24 }
 0x2a4   :  { %v562_v27 = vpop.permute.xlu1 %561 }
 0x2a5   :  { %v631_v28 = vmax.f32 %v625_v26, 0.0  ;;  %v581_v30 = vmul.f32 %v5169_v17, %v562_v27  ;;  %v6838_v27 = vsub.s32 0, %v931_v25 }
 0x2a7   :  { %5596 = vmatprep.mubr.msk.f32.mxu0 %vm641_vm5, %v631_v28  ;;  %v628_v35 = vadd.f32 %v622_v31, %v581_v30  ;;  %v6841_v30 = vld [vmem:[#allocation3 + $0x8] sm:$0xff]  ;;  %v6843_v31 = vld [vmem:[#allocation3] sm:$0xff] }
 0x2a8   :  { %5597 = vmatmul.mubr.msk.f32.vlgmr.msra.gmra.mrb[2].mxu0 %vm641_vm5, %v632_v29  ;;  %v557_v32 = vpop.permute.xlu1 %556  ;;  %vm959_vm6 = vcmp.gt.f32.partialorder %v6841_v30, 0.0  ;;  %vm958_vm7 = vcmp.gt.f32.partialorder %v6843_v31, 0.0 }
 0x2a9   :  { %v580_v34 = vmul.f32 %v5169_v17, %v557_v32  ;;  %5970 = vmatpush3.bf16.msra.mxu0 %v5967_v11  ;;  %v634_v39 = vmax.f32 %v628_v35, 0.0 }
 0x2ab   :  { %v627_v36 = vadd.f32 %v621_v33, %v580_v34  ;;  %v6845_v34 = vld [vmem:[#allocation3 + $0x10] sm:$0xff] }
 0x2ac   :  { %v572_v37 = vpop.permute.xlu1 %571  ;;  %vm960_vm10 = vcmp.gt.f32.partialorder %v6845_v34, 0.0 }
 0x2ad   :  { %v633_v38 = vmax.f32 %v627_v36, 0.0  ;;  %v583_v45 = vmul.f32 %v5169_v17, %v572_v37 }
 0x2af   :  { %5599 = vmatprep.mubr.msk.f32.mxu0 %vm641_vm5, %v633_v38 }
 0x2b0   :  { %5600 = vmatmul.mubr.msk.f32.gmra.mrb[4].mxu0 %vm641_vm5, %v634_v39  ;;  %v567_v40 = vpop.permute.xlu1 %566 }
 0x2b1   :  { %v582_v42 = vmul.f32 %v5169_v17, %v567_v40 }
 0x2b3   :  { %v629_v43 = vadd.f32 %v623_v41, %v582_v42 }
 0x2b4   :  { %v613_v44 = vpop.permute.xlu1 %612 }
 0x2b5   :  { %v635_v46 = vmax.f32 %v629_v43, 0.0  ;;  %v624_v47 = vmul.f32 %v5170_v19, %v613_v44 }
 0x2b7   :  { %v630_v48 = vadd.f32 %v624_v47, %v583_v45  ;;  %5602 = vmatprep.mubr.msk.f32.mxu0 %vm641_vm5, %v635_v46  ;;  %v6854_v46 = vld [vmem:[#allocation3 + $0x18] sm:$0xff] }
 0x2b8   :  { %vm7927_vm13 = vcmp.gt.f32.partialorder %v6854_v46, 0.0 }
 0x2b9   :  { %v636_v49 = vmax.f32 %v630_v48, 0.0 }
 0x2bb   :  { %5603 = vmatmul.mubr.msk.f32.gmra.mrb[6].mxu0 %vm641_vm5, %v636_v49 }
 0x37b   :  { %v6756_v51 = vpop.f32.mrb[2].mxu0 }
 0x37c   :  { %v1013_v52 = vsel %vm641_vm5, %v6756_v51, 1.0  ;;  %v6760_v53 = vpop.f32.mrb[3].mxu0 }
 0x37d   :  { %v6146_v54 = vpack.i.bf16 %v6756_v51, %v6760_v53  ;;  %v1012_v55 = vsel %vm641_vm5, %v6760_v53, 1.0  ;;  %5609 = vmatprep.mubr.msk.f32.mxu0 %vm68_vm2, %v6760_v53 }
 0x37e   :  { %5610 = vmatmul.mubr.msk.f32.vlgmr.msra.gmra.mrb[8].mxu0 %vm68_vm2, %v6756_v51  ;;  %v5971_v56 = vpack.c.bf16 %v1013_v52, %v1012_v55 }
 0x380   :  { %5972 = vmatprep.subr.bf16.mxu1 %v5971_v56 }
 0x381   :  { %5974 = vmatpush3.bf16.msra.mxu1 %v5971_v56 }
 0x383   :  { %v6770_v57 = vpop.f32.mrb[4].mxu0 }
 0x384   :  { %v1015_v58 = vsel %vm641_vm5, %v6770_v57, 1.0  ;;  %v6774_v59 = vpop.f32.mrb[5].mxu0 }
 0x385   :  { %v6151_v60 = vpack.i.bf16 %v6770_v57, %v6774_v59  ;;  %v1014_v61 = vsel %vm641_vm5, %v6774_v59, 1.0  ;;  %5612 = vmatprep.mubr.msk.f32.mxu0 %vm68_vm2, %v6774_v59 }
 0x386   :  { %5613 = vmatmul.mubr.msk.f32.gmra.mrb[10].mxu0 %vm68_vm2, %v6770_v57  ;;  %v5975_v62 = vpack.c.bf16 %v1015_v58, %v1014_v61  ;;  %v6861_v58 = vld [vmem:[#allocation3 + $0x20] sm:$0xff] }
 0x387   :  { %vm7926_vm15 = vcmp.gt.f32.partialorder %v6861_v58, 0.0 }
 0x388   :  { %5976 = vmatprep.subr.bf16.mxu1 %v5975_v62 }
 0x389   :  { %5978 = vmatpush3.bf16.msra.mxu1 %v5975_v62 }
 0x38e   :  { %v6784_v63 = vpop.f32.mrb[6].mxu0 }
 0x38f   :  { %v1017_v1 = vsel %vm641_vm5, %v6784_v63, 1.0  ;;  %v6788_v2 = vpop.f32.mrb[7].mxu0 }
 0x390   :  { %v6156_v3 = vpack.i.bf16 %v6784_v63, %v6788_v2  ;;  %v1016_v4 = vsel %vm641_vm5, %v6788_v2, 1.0  ;;  %5615 = vmatprep.mubr.msk.f32.mxu0 %vm68_vm2, %v6788_v2 }
 0x391   :  { %5616 = vmatmul.mubr.msk.f32.gmra.mrb[12].mxu0 %vm68_vm2, %v6784_v63  ;;  %v5979_v5 = vpack.c.bf16 %v1017_v1, %v1016_v4 }
 0x393   :  { %5980 = vmatprep.subr.bf16.mxu1 %v5979_v5 }
 0x394   :  { %5982 = vmatpush3.bf16.msra.mxu1 %v5979_v5  ;;  %v6867_v5 = vld [vmem:[#allocation3 + $0x28] sm:$0xff] }
 0x395   :  { %vm7925_vm1 = vcmp.gt.f32.partialorder %v6867_v5, 0.0 }
 0x451   :  { %v6799_v7 = vpop.f32.mrb[8].mxu0 }
 0x452   :  { %907 = vperm.xlu0 %6145, %v6799_v7   ;;  %1175 = vrot.lane.b32.xlu1 %v6799_v7, %s6621_s27  ;;  %v6804_v8 = vpop.f32.mrb[9].mxu0 }
 0x456   :  { %1228 = vperm.xlu1 %6144, %v6799_v7   ;;  %1173 = vrot.lane.b32.xlu0 %v6804_v8, %s6621_s27 }
 0x459   :  { %v6809_v9 = vpop.f32.mrb[10].mxu0 }
 0x45a   :  { %1224 = vperm.xlu1 %6144, %v6804_v8   ;;  %902 = vperm.xlu0 %6145, %v6804_v8   ;;  %v6813_v10 = vpop.f32.mrb[11].mxu0 }
 0x45e   :  { %917 = vperm.xlu0 %6145, %v6809_v9   ;;  %1179 = vrot.lane.b32.xlu1 %v6809_v9, %s6621_s27 }
 0x462   :  { %1236 = vperm.xlu1 %6144, %v6809_v9   ;;  %912 = vperm.xlu0 %6145, %v6813_v10  }
 0x464   :  { %v6820_v11 = vpop.f32.mrb[12].mxu0 }
 0x465   :  { %v6822_v12 = vpop.f32.mrb[13].mxu0 }
 0x466   :  { %1177 = vrot.lane.b32.xlu1 %v6813_v10, %s6621_s27  ;;  %927 = vperm.xlu0 %6145, %v6820_v11  }
 0x46a   :  { %1232 = vperm.xlu1 %6144, %v6813_v10   ;;  %922 = vperm.xlu0 %6145, %v6822_v12  }
 0x46e   :  { %1183 = vrot.lane.b32.xlu1 %v6820_v11, %s6621_s27 }
 0x472   :  { %1244 = vperm.xlu1 %6144, %v6820_v11  }
 0x476   :  { %1181 = vrot.lane.b32.xlu1 %v6822_v12, %s6621_s27 }
 0x47a   :  { %1240 = vperm.xlu1 %6144, %v6822_v12  }
 0x4c4   :  { %v1176_v13 = vpop.permute.xlu1 %1175 }
 0x4d1   :  { %v6835_v14 = vpop.permute.xlu0 %907 }
 0x4d5   :  { %v1229_v15 = vpop.permute.xlu1 %1228  ;;  %v1174_v16 = vpop.permute.xlu0 %1173 }
 0x4d6   :  { %1191 = vxpose.xlu1.b32.start [1/6] (short) (narrow) %v1174_v16, 8 }
 0x4d9   :  { %v1225_v17 = vpop.permute.xlu1 %1224  ;;  %v6898_v51 = vpop.permute.xlu0 %902 }
 0x4da   :  { %1192 = vxpose.xlu1.b32.cont [2/6] (short) (narrow) %v1176_v13, 8 }
 0x4dd   :  { %v1180_v18 = vpop.permute.xlu1 %1179  ;;  %v6900_v53 = vpop.permute.xlu0 %917 }
 0x4e1   :  { %v1237_v19 = vpop.permute.xlu1 %1236 }
 0x4e5   :  { %v1178_v20 = vpop.permute.xlu1 %1177 }
 0x4e6   :  { %1193 = vxpose.xlu1.b32.cont [3/6] (short) (narrow) %v1178_v20, 8 }
 0x4e9   :  { %v1233_v21 = vpop.permute.xlu1 %1232 }
 0x4ea   :  { %1194 = vxpose.xlu1.b32.cont [4/6] (short) (narrow) %v1180_v18, 8 }
 0x4ed   :  { %v1184_v22 = vpop.permute.xlu1 %1183 }
 0x4f1   :  { %v1245_v23 = vpop.permute.xlu1 %1244 }
 0x4f5   :  { %v1182_v24 = vpop.permute.xlu1 %1181 }
 0x4f6   :  { %1195 = vxpose.xlu1.b32.cont [5/6] (short) (narrow) %v1182_v24, 8 }
 0x4f9   :  { %v1241_v26 = vpop.permute.xlu1 %1240 }
 0x4fa   :  { %1196 = vxpose.xlu1.b32.end [6/6] (short) (narrow) %v1184_v22, 8 }
 0x566   :  { %v1207_v28 = vpop.trf.xlu1 }
 0x567   :  { %v1250_v29 = vrot.slane %v1207_v28, %v6838_v27 }
 0x569   :  { %v1252_v32 = vadd.f32 %v1250_v29, %v1229_v15  ;;  %v1251_v33 = vadd.f32 %v1250_v29, %v1225_v17  ;;  %v1253_v35 = vadd.f32 %v1250_v29, %v1233_v21  ;;  %v1254_v36 = vadd.f32 %v1250_v29, %v1237_v19 }
 0x56a   :  { %v1255_v42 = vadd.f32 %v1250_v29, %v1241_v26  ;;  %v1256_v56 = vadd.f32 %v1250_v29, %v1245_v23 }
 0x56b   :  { %vm1258_vm8 = vcmp.ge.f32.partialorder %v1252_v32, 0.0  ;;  %v1264_v0 = vmul.f32 0.2, %v1252_v32  ;;  %vm1257_vm9 = vcmp.ge.f32.partialorder %v1251_v33, 0.0  ;;  %v1263_v37 = vmul.f32 0.2, %v1251_v33 }
 0x56c   :  { %vm1259_vm11 = vcmp.ge.f32.partialorder %v1253_v35, 0.0  ;;  %v1265_v38 = vmul.f32 0.2, %v1253_v35  ;;  %v1266_v41 = vmul.f32 0.2, %v1254_v36  ;;  %vm1260_vm12 = vcmp.ge.f32.partialorder %v1254_v36, 0.0 }
 0x56d   :  { %v1270_v39 = vsel %vm1258_vm8, %v1252_v32, %v1264_v0  ;;  %v1269_v40 = vsel %vm1257_vm9, %v1251_v33, %v1263_v37  ;;  %v1267_v55 = vmul.f32 0.2, %v1255_v42  ;;  %vm1261_vm14 = vcmp.ge.f32.partialorder %v1255_v42, 0.0 }
 0x56e   :  { %v1276_v43 = vsel %vm959_vm6, %v1270_v39, -1e+30  ;;  %v1275_v44 = vsel %vm958_vm7, %v1269_v40, -1e+30  ;;  %v1271_v45 = vsel %vm1259_vm11, %v1253_v35, %v1265_v38  ;;  %v1272_v52 = vsel %vm1260_vm12, %v1254_v36, %v1266_v41 }
 0x56f   :  { %v1284_v47 = vsel %vm211_vm3, %v1276_v43, -inf  ;;  %v1281_v48 = vsel %vm211_vm3, %v1275_v44, -inf  ;;  %v1277_v49 = vsel %vm960_vm10, %v1271_v45, -1e+30  ;;  %v1278_v62 = vsel %vm7927_vm13, %v1272_v52, -1e+30 }
 0x570   :  { %1285 = vmax.xlane.f32.xlu1 %v1284_v47  ;;  %1282 = vmax.xlane.f32.xlu0 %v1281_v48  ;;  %v1287_v61 = vsel %vm211_vm3, %v1277_v49, -inf  ;;  %v1273_v1 = vsel %vm1261_vm14, %v1255_v42, %v1267_v55  ;;  %v1268_v4 = vmul.f32 0.2, %v1256_v56  ;;  %vm1262_vm0 = vcmp.ge.f32.partialorder %v1256_v56, 0.0 }
 0x571   :  { %v1290_v13 = vsel %vm211_vm3, %v1278_v62, -inf  ;;  %v1279_v15 = vsel %vm7926_vm15, %v1273_v1, -1e+30 }
 0x572   :  { %v1274_v16 = vsel %vm1262_vm0, %v1256_v56, %v1268_v4  ;;  %v1293_v17 = vsel %vm211_vm3, %v1279_v15, -inf }
 0x573   :  { %v6876_v18 = vsel %vm7925_vm1, %v1274_v16, -1e+30 }
 0x574   :  { %1288 = vmax.xlane.f32.xlu0 %v1287_v61  ;;  %v1296_v19 = vsel %vm211_vm3, %v6876_v18, -inf }
 0x578   :  { %1291 = vmax.xlane.f32.xlu0 %v1290_v13 }
 0x57c   :  { %1294 = vmax.xlane.f32.xlu0 %v1293_v17 }
 0x580   :  { %1297 = vmax.xlane.f32.xlu0 %v1296_v19 }
 0x581   :  { %6147 = vrot.lane.b32.xlu1 %v6146_v54, %s6622_s29  ;;  %v6902_v54 = vpop.permute.xlu0 %912 }
 0x585   :  { %6152 = vrot.lane.b32.xlu1 %v6151_v60, %s6622_s29  ;;  %v6904_v57 = vpop.permute.xlu0 %927 }
 0x589   :  { %6157 = vrot.lane.b32.xlu1 %v6156_v3, %s6622_s29  ;;  %v6906_v59 = vpop.permute.xlu0 %922 }
 0x5ad   :  { %868 = vxpose.xlu0.b32.start [1/6] (short) (narrow) %v6804_v8, 8 }
 0x5b1   :  { %869 = vxpose.xlu0.b32.cont [2/6] (short) (narrow) %v6799_v7, 8 }
 0x5b5   :  { %870 = vxpose.xlu0.b32.cont [3/6] (short) (narrow) %v6813_v10, 8 }
 0x5b9   :  { %871 = vxpose.xlu0.b32.cont [4/6] (short) (narrow) %v6809_v9, 8 }
 0x5bd   :  { %872 = vxpose.xlu0.b32.cont [5/6] (short) (narrow) %v6822_v12, 8 }
 0x5c1   :  { %873 = vxpose.xlu0.b32.end [6/6] (short) (narrow) %v6820_v11, 8 }
 0x5fd   :  { %v1286_v60 = vpop.xlane.xlu1 %1285  ;;  %v1283_v63 = vpop.xlane.xlu0 %1282 }
 0x5fe   :  { %v1300_v2 = vsub.f32 %v1276_v43, %v1286_v60  ;;  %v1299_v3 = vsub.f32 %v1275_v44, %v1283_v63 }
 0x600   :  { %v1307_v7 = vmul.f32 1.442695, %v1300_v2  ;;  %v1305_v8 = vmul.f32 1.442695, %v1299_v3 }
 0x601   :  { %v6148_v9 = vpop.permute.xlu1 %6147  ;;  %v1289_v10 = vpop.xlane.xlu0 %1288 }
 0x602   :  { %v6150_v12 = vunpack.i.h.bf16 %v6148_v9  ;;  %v6149_v11 = vunpack.i.l.bf16 %v6148_v9  ;;  %v1301_v20 = vsub.f32 %v1277_v49, %v1289_v10  ;;  %6256 = vpow2.f32 %v1305_v8 }
 0x603   :  { %6258 = vpow2.f32 %v1307_v7 }
 0x604   :  { %v1309_v21 = vmul.f32 1.442695, %v1301_v20  ;;  %v1341_v22 = vsel %vm641_vm5, %v6149_v11, 1.0  ;;  %v1342_v23 = vsel %vm641_vm5, %v6150_v12, 1.0 }
 0x605   :  { %v6153_v24 = vpop.permute.xlu1 %6152  ;;  %v1292_v25 = vpop.xlane.xlu0 %1291  ;;  %v5983_v26 = vpack.c.bf16 %v1342_v23, %v1341_v22 }
 0x606   :  { %6260 = vpow2.f32 %v1309_v21  ;;  %v6155_v28 = vunpack.i.h.bf16 %v6153_v24  ;;  %v6154_v29 = vunpack.i.l.bf16 %v6153_v24  ;;  %v1302_v32 = vsub.f32 %v1278_v62, %v1292_v25 }
 0x607   :  { %5984 = vmatprep.subr.bf16.mxu0 %v5983_v26 }
 0x608   :  { %v1311_v33 = vmul.f32 1.442695, %v1302_v32  ;;  %5986 = vmatpush3.bf16.msra.mxu0 %v5983_v26  ;;  %v1343_v35 = vsel %vm641_vm5, %v6154_v29, 1.0  ;;  %v1344_v36 = vsel %vm641_vm5, %v6155_v28, 1.0 }
 0x609   :  { %v6158_v0 = vpop.permute.xlu1 %6157  ;;  %v1295_v37 = vpop.xlane.xlu0 %1294  ;;  %v5987_v38 = vpack.c.bf16 %v1344_v36, %v1343_v35 }
 0x60a   :  { %6262 = vpow2.f32 %v1311_v33  ;;  %v6160_v39 = vunpack.i.h.bf16 %v6158_v0  ;;  %v6159_v40 = vunpack.i.l.bf16 %v6158_v0  ;;  %v1303_v41 = vsub.f32 %v1279_v15, %v1295_v37 }
 0x60b   :  { %5988 = vmatprep.subr.bf16.mxu0 %v5987_v38 }
 0x60c   :  { %v1313_v42 = vmul.f32 1.442695, %v1303_v41  ;;  %5990 = vmatpush3.bf16.msra.mxu0 %v5987_v38  ;;  %v1345_v43 = vsel %vm641_vm5, %v6159_v40, 1.0  ;;  %v1346_v44 = vsel %vm641_vm5, %v6160_v39, 1.0  ;;  %v6257_v45 = vpop.eup %6256  ;;  %v6623_v38 = vmov 8  }
 0x60d   :  { %v1298_v47 = vpop.xlane.xlu0 %1297  ;;  %v5991_v48 = vpack.c.bf16 %v1346_v44, %v1345_v43  ;;  %v6259_v49 = vpop.eup %6258  ;;  %v1317_v55 = vmul.f32 %v6257_v45, %v6843_v31  ;;  %6161 = vset.pattern.permute.xlu1 %v6623_v38  ;;  %6162 = vset.pattern.permute.xlu0 %v6623_v38 }
 0x60e   :  { %6264 = vpow2.f32 %v1313_v42  ;;  %v1304_v52 = vsub.f32 %v6876_v18, %v1298_v47  ;;  %v1318_v62 = vmul.f32 %v6259_v49, %v6841_v30 }
 0x60f   :  { %5992 = vmatprep.subr.bf16.mxu0 %v5991_v48  ;;  %5651 = vmatprep.mubr.msk.f32.mxu0 %vm211_vm3, %v1317_v55 }
 0x610   :  { %v6261_v56 = vpop.eup %6260  ;;  %v1315_v61 = vmul.f32 1.442695, %v1304_v52  ;;  %5994 = vmatpush3.bf16.msra.mxu0 %v5991_v48 }
 0x611   :  { %v1319_v1 = vmul.f32 %v6261_v56, %v6845_v34 }
 0x612   :  { %6266 = vpow2.f32 %v1315_v61 }
 0x613   :  { %5652 = vmatmul.mubr.msk.f32.vlgmr.msra.gmra.mrb[14].mxu0 %vm211_vm3, %v1318_v62 }
 0x614   :  { %v6263_v4 = vpop.eup %6262  ;;  %5654 = vmatprep.mubr.msk.f32.mxu0 %vm211_vm3, %v1319_v1 }
 0x615   :  { %v1320_v13 = vmul.f32 %v6263_v4, %v6854_v46 }
 0x617   :  { %5655 = vmatmul.mubr.msk.f32.gmra.mrb[16].mxu0 %vm211_vm3, %v1320_v13 }
 0x618   :  { %v6265_v15 = vpop.eup %6264 }
 0x619   :  { %v1321_v16 = vmul.f32 %v6265_v15, %v6861_v58 }
 0x61b   :  { %5657 = vmatprep.mubr.msk.f32.mxu0 %vm211_vm3, %v1321_v16 }
 0x61c   :  { %v6267_v17 = vpop.eup %6266 }
 0x61d   :  { %v1322_v18 = vmul.f32 %v6267_v17, %v6867_v5 }
 0x61f   :  { %5658 = vmatmul.mubr.msk.f32.gmra.mrb[18].mxu0 %vm211_vm3, %v1322_v18 }
 0x62d   :  { %v884_v19 = vpop.trf.xlu0 }
 0x62e   :  { %v933_v60 = vrot.slane %v884_v19, %v6838_v27 }
 0x630   :  { %v935_v63 = vadd.f32 %v933_v60, %v6835_v14  ;;  %v934_v2 = vadd.f32 %v933_v60, %v6898_v51  ;;  %v936_v3 = vadd.f32 %v933_v60, %v6902_v54  ;;  %v937_v7 = vadd.f32 %v933_v60, %v6900_v53 }
 0x631   :  { %v938_v21 = vadd.f32 %v933_v60, %v6906_v59  ;;  %v939_v59 = vadd.f32 %v933_v60, %v6904_v57 }
 0x632   :  { %vm941_vm4 = vcmp.ge.f32.partialorder %v935_v63, 0.0  ;;  %v947_v8 = vmul.f32 0.2, %v935_v63  ;;  %vm940_vm8 = vcmp.ge.f32.partialorder %v934_v2, 0.0  ;;  %v946_v9 = vmul.f32 0.2, %v934_v2 }
 0x633   :  { %vm942_vm9 = vcmp.ge.f32.partialorder %v936_v3, 0.0  ;;  %v948_v10 = vmul.f32 0.2, %v936_v3  ;;  %v949_v20 = vmul.f32 0.2, %v937_v7  ;;  %vm943_vm11 = vcmp.ge.f32.partialorder %v937_v7, 0.0 }
 0x634   :  { %v953_v12 = vsel %vm941_vm4, %v935_v63, %v947_v8  ;;  %v952_v11 = vsel %vm940_vm8, %v934_v2, %v946_v9  ;;  %v950_v25 = vmul.f32 0.2, %v938_v21  ;;  %vm944_vm12 = vcmp.ge.f32.partialorder %v938_v21, 0.0 }
 0x635   :  { %v965_v14 = vsel %vm959_vm6, %v953_v12, -1e+30  ;;  %v964_v51 = vsel %vm958_vm7, %v952_v11, -1e+30  ;;  %v954_v54 = vsel %vm942_vm9, %v936_v3, %v948_v10  ;;  %v955_v24 = vsel %vm943_vm11, %v937_v7, %v949_v20 }
 0x636   :  { %v973_v53 = vsel %vm211_vm3, %v965_v14, -inf  ;;  %v970_v22 = vsel %vm211_vm3, %v964_v51, -inf  ;;  %v966_v23 = vsel %vm960_vm10, %v954_v54, -1e+30  ;;  %v967_v28 = vsel %vm7927_vm13, %v955_v24, -1e+30 }
 0x637   :  { %974 = vmax.xlane.f32.xlu0 %v973_v53  ;;  %971 = vmax.xlane.f32.xlu1 %v970_v22  ;;  %v976_v26 = vsel %vm211_vm3, %v966_v23, -inf  ;;  %v956_v29 = vsel %vm944_vm12, %v938_v21, %v950_v25  ;;  %v951_v32 = vmul.f32 0.2, %v939_v59  ;;  %vm945_vm14 = vcmp.ge.f32.partialorder %v939_v59, 0.0 }
 0x638   :  { %v979_v33 = vsel %vm211_vm3, %v967_v28, -inf  ;;  %v968_v35 = vsel %vm7926_vm15, %v956_v29, -1e+30 }
 0x639   :  { %v957_v36 = vsel %vm945_vm14, %v939_v59, %v951_v32  ;;  %v982_v0 = vsel %vm211_vm3, %v968_v35, -inf }
 0x63a   :  { %v969_v57 = vsel %vm7925_vm1, %v957_v36, -1e+30 }
 0x63b   :  { %977 = vmax.xlane.f32.xlu1 %v976_v26  ;;  %v985_v37 = vsel %vm211_vm3, %v969_v57, -inf }
 0x63f   :  { %980 = vmax.xlane.f32.xlu1 %v979_v33 }
 0x643   :  { %983 = vmax.xlane.f32.xlu1 %v982_v0 }
 0x647   :  { %986 = vmax.xlane.f32.xlu1 %v985_v37 }
 0x6c4   :  { %v975_v39 = vpop.xlane.xlu0 %974  ;;  %v972_v40 = vpop.xlane.xlu1 %971 }
 0x6c5   :  { %v989_v41 = vsub.f32 %v965_v14, %v975_v39  ;;  %v988_v42 = vsub.f32 %v964_v51, %v972_v40 }
 0x6c7   :  { %v996_v43 = vmul.f32 1.442695, %v989_v41  ;;  %v994_v44 = vmul.f32 1.442695, %v988_v42 }
 0x6c8   :  { %v978_v45 = vpop.xlane.xlu1 %977 }
 0x6c9   :  { %6268 = vpow2.f32 %v996_v43  ;;  %v990_v47 = vsub.f32 %v966_v23, %v978_v45 }
 0x6ca   :  { %6270 = vpow2.f32 %v994_v44 }
 0x6cb   :  { %v998_v48 = vmul.f32 1.442695, %v990_v47 }
 0x6cc   :  { %v981_v49 = vpop.xlane.xlu1 %980 }
 0x6cd   :  { %6272 = vpow2.f32 %v998_v48  ;;  %v991_v52 = vsub.f32 %v967_v28, %v981_v49  ;;  %v1542_v49 = vld [vmem:[#allocation8 + $0x38] sm:$0xff] }
 0x6cf   :  { %v1000_v55 = vmul.f32 1.442695, %v991_v52  ;;  %v1543_v52 = vld [vmem:[#allocation8 + $0x40] sm:$0xff] }
 0x6d0   :  { %v984_v56 = vpop.xlane.xlu1 %983 }
 0x6d1   :  { %6274 = vpow2.f32 %v1000_v55  ;;  %v992_v61 = vsub.f32 %v968_v35, %v984_v56  ;;  %v5995_v55 = vpack.c.bf16 %v1543_v52, %v1542_v49 }
 0x6d3   :  { %v6269_v62 = vpop.eup %6268  ;;  %v1002_v1 = vmul.f32 1.442695, %v992_v61  ;;  %5996 = vmatprep.subr.bf16.mxu1 %v5995_v55 }
 0x6d4   :  { %v6271_v4 = vpop.eup %6270  ;;  %v1007_v13 = vmul.f32 %v6269_v62, %v6841_v30  ;;  %v987_v15 = vpop.xlane.xlu1 %986 }
 0x6d5   :  { %6276 = vpow2.f32 %v1002_v1  ;;  %v993_v16 = vsub.f32 %v969_v57, %v987_v15  ;;  %v1006_v17 = vmul.f32 %v6271_v4, %v6843_v31  ;;  %v1544_v1 = vld [vmem:[#allocation8 + $0x48] sm:$0xff]  ;;  %v1545_v4 = vld [vmem:[#allocation8 + $0x50] sm:$0xff] }
 0x6d7   :  { %v6273_v18 = vpop.eup %6272  ;;  %v1004_v19 = vmul.f32 1.442695, %v993_v16  ;;  %5630 = vmatprep.mubr.msk.f32.mxu1 %vm211_vm3, %v1006_v17 }
 0x6d8   :  { %5631 = vmatmul.mubr.msk.f32.vlgmr.msra.gmra.mrb[8].mxu1 %vm211_vm3, %v1007_v13  ;;  %v1008_v60 = vmul.f32 %v6273_v18, %v6845_v34  ;;  %v5999_v13 = vpack.c.bf16 %v1545_v4, %v1544_v1 }
 0x6d9   :  { %6278 = vpow2.f32 %v1004_v19  ;;  %5998 = vmatpush3.bf16.msra.mxu1 %v5995_v55 }
 0x6da   :  { %5633 = vmatprep.mubr.msk.f32.mxu1 %vm211_vm3, %v1008_v60  ;;  %6000 = vmatprep.subr.bf16.mxu0 %v5999_v13 }
 0x6db   :  { %v6275_v63 = vpop.eup %6274  ;;  %6002 = vmatpush3.bf16.msra.mxu0 %v5999_v13 }
 0x6dc   :  { %v1009_v2 = vmul.f32 %v6275_v63, %v6854_v46 }
 0x6de   :  { %5634 = vmatmul.mubr.msk.f32.gmra.mrb[10].mxu1 %vm211_vm3, %v1009_v2 }
 0x6df   :  { %v6277_v3 = vpop.eup %6276 }
 0x6e0   :  { %v1010_v7 = vmul.f32 %v6277_v3, %v6861_v58 }
 0x6e2   :  { %5636 = vmatprep.mubr.msk.f32.mxu1 %vm211_vm3, %v1010_v7 }
 0x6e3   :  { %v6279_v8 = vpop.eup %6278 }
 0x6e4   :  { %v1011_v9 = vmul.f32 %v6279_v8, %v6867_v5 }
 0x6e6   :  { %5637 = vmatmul.mubr.msk.f32.gmra.mrb[12].mxu1 %vm211_vm3, %v1011_v9  ;;  %v5653_v10 = vpop.f32.mrb[14].mxu0 }
 0x6e7   :  { %6280 = vrcp.f32 %v5653_v10  ;;  %v6966_v12 = vpop.f32.mrb[15].mxu0 }
 0x6e8   :  { %6282 = vrcp.f32 %v6966_v12 }
 0x6ea   :  { %v5656_v11 = vpop.f32.mrb[16].mxu0 }
 0x6eb   :  { %6284 = vrcp.f32 %v5656_v11  ;;  %v6969_v20 = vpop.f32.mrb[17].mxu0 }
 0x6ec   :  { %6286 = vrcp.f32 %v6969_v20 }
 0x6f1   :  { %v6281_v21 = vpop.eup %6280 }
 0x6f2   :  { %v5659_v14 = vpop.f32.mrb[18].mxu0  ;;  %1473 = vperm.xlu1 %6161, %v6281_v21   ;;  %v6283_v54 = vpop.eup %6282 }
 0x6f3   :  { %v1451_v51 = vpop.f32.mrb[19].mxu0 }
 0x6f4   :  { %6288 = vrcp.f32 %v1451_v51 }
 0x6f5   :  { %v6285_v53 = vpop.eup %6284  ;;  %6290 = vrcp.f32 %v5659_v14 }
 0x6f6   :  { %1483 = vperm.xlu0 %6162, %v6285_v53   ;;  %1468 = vperm.xlu1 %6161, %v6283_v54   ;;  %v6287_v22 = vpop.eup %6286 }
 0x6fa   :  { %1478 = vperm.xlu1 %6161, %v6287_v22   ;;  %6163 = vset.pattern.permute.xlu0 %v6620_v6 }
 0x6fe   :  { %v6289_v23 = vpop.eup %6288 }
 0x6ff   :  { %1488 = vperm.xlu1 %6161, %v6289_v23   ;;  %v6291_v24 = vpop.eup %6290 }
 0x703   :  { %1493 = vperm.xlu1 %6161, %v6291_v24  }
 0x771   :  { %v1474_v25 = vpop.permute.xlu1 %1473 }
 0x772   :  { %v1497_v48 = vmul.f32 %v5653_v10, %v1474_v25  ;;  %v5195_v10 = vld [vmem:[#allocation8 + $0x30] ss:$0 sm:$0xff] }
 0x775   :  { %v1484_v59 = vpop.permute.xlu0 %1483  ;;  %v1469_v26 = vpop.permute.xlu1 %1468 }
 0x776   :  { %v1499_v28 = vmul.f32 %v5656_v11, %v1484_v59  ;;  %v1496_v56 = vmul.f32 %v1469_v26, %v6966_v12 }
 0x778   :  { %1514 = vrot.lane.b32.xlu0 %v1499_v28, %s6611_s28 }
 0x779   :  { %v1479_v29 = vpop.permute.xlu1 %1478 }
 0x77a   :  { %v1498_v61 = vmul.f32 %v1479_v29, %v6969_v20 }
 0x77e   :  { %v1489_v32 = vpop.permute.xlu1 %1488 }
 0x77f   :  { %v1500_v62 = vmul.f32 %v1489_v32, %v1451_v51 }
 0x782   :  { %v1494_v33 = vpop.permute.xlu1 %1493 }
 0x783   :  { %v1501_v35 = vmul.f32 %v5659_v14, %v1494_v33 }
 0x785   :  { %1518 = vrot.lane.b32.xlu0 %v1501_v35, %s6611_s28 }
 0x7ab   :  { %v5632_v36 = vpop.f32.mrb[8].mxu1 }
 0x7ac   :  { %v1102_v0 = vpop.f32.mrb[9].mxu1 }
 0x7ad   :  { %6292 = vrcp.f32 %v1102_v0 }
 0x7ae   :  { %6294 = vrcp.f32 %v5632_v36 }
 0x7b1   :  { %v5635_v57 = vpop.f32.mrb[10].mxu1 }
 0x7b2   :  { %v1112_v37 = vpop.f32.mrb[11].mxu1 }
 0x7b3   :  { %6296 = vrcp.f32 %v1112_v37 }
 0x7b4   :  { %6298 = vrcp.f32 %v5635_v57 }
 0x7b7   :  { %v6293_v39 = vpop.eup %6292 }
 0x7b8   :  { %1139 = vperm.xlu1 %6161, %v6293_v39   ;;  %v6295_v42 = vpop.eup %6294 }
 0x7b9   :  { %v5638_v40 = vpop.f32.mrb[12].mxu1 }
 0x7ba   :  { %v1122_v41 = vpop.f32.mrb[13].mxu1 }
 0x7bb   :  { %6300 = vrcp.f32 %v1122_v41 }
 0x7bc   :  { %1144 = vperm.xlu1 %6161, %v6295_v42   ;;  %6302 = vrcp.f32 %v5638_v40 }
 0x7bd   :  { %v6297_v43 = vpop.eup %6296 }
 0x7be   :  { %v6299_v44 = vpop.eup %6298 }
 0x7c0   :  { %1149 = vperm.xlu1 %6161, %v6297_v43  }
 0x7c4   :  { %1154 = vperm.xlu1 %6161, %v6299_v44  }
 0x7c5   :  { %v6301_v45 = vpop.eup %6300 }
 0x7c6   :  { %v6303_v47 = vpop.eup %6302 }
 0x7c8   :  { %1159 = vperm.xlu1 %6161, %v6301_v45  }
 0x7cc   :  { %1164 = vperm.xlu1 %6161, %v6303_v47  }
 0x7d0   :  { %1510 = vrot.lane.b32.xlu1 %v1497_v48, %s6611_s28 }
 0x7d1   :  { %6164 = vset.pattern.permute.xlu1 %v6619_v50 }
 0x7d4   :  { %1508 = vrot.lane.b32.xlu1 %v1496_v56, %s6611_s28 }
 0x7d8   :  { %1512 = vrot.lane.b32.xlu1 %v1498_v61, %s6611_s28 }
 0x7dc   :  { %1516 = vrot.lane.b32.xlu1 %v1500_v62, %s6611_s28 }
 0x7ea   :  { %v1515_v20 = vpop.permute.xlu0 %1514 }
 0x7f7   :  { %v1519_v24 = vpop.permute.xlu0 %1518 }
 0x837   :  { %v1140_v15 = vpop.permute.xlu1 %1139 }
 0x838   :  { %v1167_v3 = vmul.f32 %v1140_v15, %v1102_v0 }
 0x83b   :  { %v1145_v16 = vpop.permute.xlu1 %1144 }
 0x83c   :  { %v1168_v2 = vmul.f32 %v5632_v36, %v1145_v16 }
 0x83f   :  { %v1150_v17 = vpop.permute.xlu1 %1149 }
 0x840   :  { %v1169_v21 = vmul.f32 %v1150_v17, %v1112_v37 }
 0x843   :  { %v1155_v18 = vpop.permute.xlu1 %1154 }
 0x844   :  { %v1170_v7 = vmul.f32 %v5635_v57, %v1155_v18 }
 0x846   :  { %v1529_v51 = vsel %vm641_vm5, %v1170_v7, %v1515_v20 }
 0x847   :  { %v1160_v19 = vpop.permute.xlu1 %1159  ;;  %v1539_v25 = vadd.f32 %v5195_v10, %v1529_v51  ;;  %v7084_v51 = vld [vmem:[#allocation3 + $0x30] sm:$0xff] }
 0x848   :  { %v1171_v59 = vmul.f32 %v1160_v19, %v1122_v41  ;;  %vm1863_vm4 = vcmp.gt.f32.partialorder %v7084_v51, 0.0 }
 0x84b   :  { %v1165_v60 = vpop.permute.xlu1 %1164 }
 0x84c   :  { %v1172_v54 = vmul.f32 %v5638_v40, %v1165_v60 }
 0x84e   :  { %v1531_v26 = vsel %vm641_vm5, %v1172_v54, %v1519_v24 }
 0x84f   :  { %v1511_v63 = vpop.permute.xlu1 %1510  ;;  %v1541_v33 = vadd.f32 %v5195_v10, %v1531_v26 }
 0x850   :  { %v1527_v8 = vsel %vm641_vm5, %v1168_v2, %v1511_v63 }
 0x851   :  { %v1537_v14 = vadd.f32 %v5195_v10, %v1527_v8 }
 0x853   :  { %v1509_v9 = vpop.permute.xlu1 %1508 }
 0x854   :  { %v1526_v12 = vsel %vm641_vm5, %v1167_v3, %v1509_v9 }
 0x855   :  { %v1536_v11 = vadd.f32 %v5195_v10, %v1526_v12 }
 0x857   :  { %5664 = vmatprep.mubr.msk.f32.mxu1 %vm68_vm2, %v1536_v11  ;;  %v1513_v53 = vpop.permute.xlu1 %1512 }
 0x858   :  { %v1528_v22 = vsel %vm641_vm5, %v1169_v21, %v1513_v53  ;;  %5665 = vmatmul.mubr.msk.f32.vlgmr.msra.gmra.mrb[14].mxu1 %vm68_vm2, %v1537_v14  ;;  %v7082_v14 = vld [vmem:[#allocation3 + $0x38] sm:$0xff] }
 0x859   :  { %v1538_v23 = vadd.f32 %v5195_v10, %v1528_v22  ;;  %v7086_v22 = vld [vmem:[#allocation3 + $0x40] sm:$0xff]  ;;  %vm1864_vm0 = vcmp.gt.f32.partialorder %v7082_v14, 0.0 }
 0x85a   :  { %vm1865_vm11 = vcmp.gt.f32.partialorder %v7086_v22, 0.0 }
 0x85b   :  { %5667 = vmatprep.mubr.msk.f32.mxu1 %vm68_vm2, %v1538_v23  ;;  %v1517_v28 = vpop.permute.xlu1 %1516 }
 0x85c   :  { %v1530_v29 = vsel %vm641_vm5, %v1171_v59, %v1517_v28  ;;  %5668 = vmatmul.mubr.msk.f32.gmra.mrb[16].mxu1 %vm68_vm2, %v1539_v25 }
 0x85d   :  { %v1540_v32 = vadd.f32 %v5195_v10, %v1530_v29 }
 0x85f   :  { %5670 = vmatprep.mubr.msk.f32.mxu1 %vm68_vm2, %v1540_v32 }
 0x860   :  { %5671 = vmatmul.mubr.msk.f32.gmra.mrb[18].mxu1 %vm68_vm2, %v1541_v33 }
 0x92b   :  { %v6994_v35 = vpop.f32.mrb[14].mxu1 }
 0x92c   :  { %v1918_v36 = vsel %vm641_vm5, %v6994_v35, 1.0  ;;  %v6998_v0 = vpop.f32.mrb[15].mxu1 }
 0x92d   :  { %v6169_v57 = vpack.i.bf16 %v6994_v35, %v6998_v0  ;;  %v1917_v37 = vsel %vm641_vm5, %v6998_v0, 1.0  ;;  %5677 = vmatprep.mubr.msk.f32.mxu0 %vm68_vm2, %v6998_v0 }
 0x92e   :  { %5678 = vmatmul.mubr.msk.f32.vlgmr.msra.gmra.mrb[20].mxu0 %vm68_vm2, %v6994_v35  ;;  %v6003_v39 = vpack.c.bf16 %v1918_v36, %v1917_v37 }
 0x92f   :  { %v7008_v40 = vpop.f32.mrb[16].mxu1 }
 0x930   :  { %v1920_v41 = vsel %vm641_vm5, %v7008_v40, 1.0  ;;  %v7012_v42 = vpop.f32.mrb[17].mxu1  ;;  %6004 = vmatprep.subr.bf16.mxu1 %v6003_v39 }
 0x931   :  { %v6174_v43 = vpack.i.bf16 %v7008_v40, %v7012_v42  ;;  %v1919_v44 = vsel %vm641_vm5, %v7012_v42, 1.0  ;;  %5680 = vmatprep.mubr.msk.f32.mxu0 %vm68_vm2, %v7012_v42  ;;  %6006 = vmatpush3.bf16.msra.mxu1 %v6003_v39 }
 0x932   :  { %5681 = vmatmul.mubr.msk.f32.gmra.mrb[22].mxu0 %vm68_vm2, %v7008_v40  ;;  %v6007_v45 = vpack.c.bf16 %v1920_v41, %v1919_v44  ;;  %v7095_v41 = vld [vmem:[#allocation3 + $0x48] sm:$0xff] }
 0x933   :  { %v7022_v47 = vpop.f32.mrb[18].mxu1 }
 0x934   :  { %v1922_v48 = vsel %vm641_vm5, %v7022_v47, 1.0  ;;  %v7026_v49 = vpop.f32.mrb[19].mxu1  ;;  %6008 = vmatprep.subr.bf16.mxu1 %v6007_v45 }
 0x935   :  { %v6179_v52 = vpack.i.bf16 %v7022_v47, %v7026_v49  ;;  %v1921_v55 = vsel %vm641_vm5, %v7026_v49, 1.0  ;;  %5683 = vmatprep.mubr.msk.f32.mxu0 %vm68_vm2, %v7026_v49  ;;  %6010 = vmatpush3.bf16.msra.mxu1 %v6007_v45 }
 0x936   :  { %5684 = vmatmul.mubr.msk.f32.gmra.mrb[24].mxu0 %vm68_vm2, %v7022_v47  ;;  %v6011_v56 = vpack.c.bf16 %v1922_v48, %v1921_v55 }
 0x938   :  { %6012 = vmatprep.subr.bf16.mxu1 %v6011_v56 }
 0x939   :  { %6014 = vmatpush3.bf16.msra.mxu1 %v6011_v56 }
 0xa01   :  { %v7036_v61 = vpop.f32.mrb[20].mxu0 }
 0xa02   :  { %1812 = vperm.xlu1 %6164, %v7036_v61   ;;  %2080 = vrot.lane.b32.xlu0 %v7036_v61, %s6621_s27  ;;  %v7041_v62 = vpop.f32.mrb[21].mxu0 }
 0xa05   :  { %v7043_v1 = vpop.f32.mrb[22].mxu0 }
 0xa06   :  { %2133 = vperm.xlu0 %6163, %v7036_v61   ;;  %2078 = vrot.lane.b32.xlu1 %v7041_v62, %s6621_s27  ;;  %v7048_v4 = vpop.f32.mrb[23].mxu0 }
 0xa07   :  { %6165 = vset.pattern.permute.xlu1 %v6620_v6 }
 0xa09   :  { %v7051_v13 = vpop.f32.mrb[24].mxu0 }
 0xa0a   :  { %2129 = vperm.xlu1 %6165, %v7041_v62   ;;  %2084 = vrot.lane.b32.xlu0 %v7043_v1, %s6621_s27  ;;  %v7056_v15 = vpop.f32.mrb[25].mxu0 }
 0xa0e   :  { %6166 = vset.pattern.permute.xlu1 %v6619_v50  ;;  %2088 = vrot.lane.b32.xlu0 %v7051_v13, %s6621_s27 }
 0xa0f   :  { %1807 = vperm.xlu1 %6166, %v7041_v62  }
 0xa12   :  { %2145 = vperm.xlu0 %6163, %v7056_v15  }
 0xa13   :  { %6167 = vset.pattern.permute.xlu1 %v6620_v6 }
 0xa14   :  { %2141 = vperm.xlu1 %6167, %v7043_v1  }
 0xa18   :  { %2082 = vrot.lane.b32.xlu1 %v7048_v4, %s6621_s27 }
 0xa1c   :  { %2137 = vperm.xlu1 %6167, %v7048_v4  }
 0xa20   :  { %2149 = vperm.xlu1 %6167, %v7051_v13  }
 0xa24   :  { %2086 = vrot.lane.b32.xlu1 %v7056_v15, %s6621_s27 }
 0xa25   :  { %6168 = vset.pattern.permute.xlu1 %v6619_v50 }
 0xa28   :  { %1817 = vperm.xlu1 %6168, %v7048_v4  }
 0xa2c   :  { %1822 = vperm.xlu1 %6168, %v7043_v1  }
 0xa30   :  { %1832 = vperm.xlu1 %6168, %v7051_v13  }
 0xa34   :  { %1827 = vperm.xlu1 %6168, %v7056_v15  }
 0xa74   :  { %v2081_v18 = vpop.permute.xlu0 %2080 }
 0xa81   :  { %v7076_v16 = vpop.permute.xlu1 %1812 }
 0xa85   :  { %v2079_v17 = vpop.permute.xlu1 %2078  ;;  %v2134_v2 = vpop.permute.xlu0 %2133 }
 0xa86   :  { %2096 = vxpose.xlu0.b32.start [1/6] (short) (narrow) %v2079_v17, 8 }
 0xa89   :  { %v2130_v19 = vpop.permute.xlu1 %2129  ;;  %v2085_v7 = vpop.permute.xlu0 %2084 }
 0xa8a   :  { %2097 = vxpose.xlu0.b32.cont [2/6] (short) (narrow) %v2081_v18, 8  ;;  %v7102_v18 = vld [vmem:[#allocation3 + $0x50] sm:$0xff] }
 0xa8d   :  { %v2089_v12 = vpop.permute.xlu0 %2088 }
 0xa8e   :  { %v7078_v60 = vpop.permute.xlu1 %1807 }
 0xa91   :  { %v2146_v11 = vpop.permute.xlu0 %2145 }
 0xa93   :  { %v2142_v63 = vpop.permute.xlu1 %2141 }
 0xa97   :  { %v2083_v3 = vpop.permute.xlu1 %2082 }
 0xa98   :  { %2098 = vxpose.xlu0.b32.cont [3/6] (short) (narrow) %v2083_v3, 8 }
 0xa9b   :  { %v2138_v8 = vpop.permute.xlu1 %2137 }
 0xa9c   :  { %2099 = vxpose.xlu0.b32.cont [4/6] (short) (narrow) %v2085_v7, 8  ;;  %v7108_v7 = vld [vmem:[#allocation3 + $0x58] sm:$0xff] }
 0xa9f   :  { %v2150_v9 = vpop.permute.xlu1 %2149 }
 0xaa3   :  { %v2087_v10 = vpop.permute.xlu1 %2086 }
 0xaa4   :  { %2100 = vxpose.xlu0.b32.cont [5/6] (short) (narrow) %v2087_v10, 8 }
 0xaa7   :  { %v7140_v35 = vpop.permute.xlu1 %1817 }
 0xaa8   :  { %2101 = vxpose.xlu0.b32.end [6/6] (short) (narrow) %v2089_v12, 8 }
 0xaab   :  { %v7142_v0 = vpop.permute.xlu1 %1822 }
 0xad1   :  { %6184 = vset.pattern.permute.xlu0 %v6623_v38 }
 0xb14   :  { %v2112_v20 = vpop.trf.xlu0 }
 0xb15   :  { %v2155_v21 = vrot.slane %v2112_v20, %v6838_v27 }
 0xb17   :  { %v2157_v54 = vadd.f32 %v2155_v21, %v2134_v2  ;;  %v2156_v53 = vadd.f32 %v2155_v21, %v2130_v19  ;;  %v2158_v23 = vadd.f32 %v2155_v21, %v2138_v8  ;;  %v2159_v24 = vadd.f32 %v2155_v21, %v2142_v63 }
 0xb18   :  { %v2160_v33 = vadd.f32 %v2155_v21, %v2146_v11  ;;  %v2161_v17 = vadd.f32 %v2155_v21, %v2150_v9 }
 0xb19   :  { %vm2163_vm8 = vcmp.ge.f32.partialorder %v2157_v54, 0.0  ;;  %v2169_v25 = vmul.f32 0.2, %v2157_v54  ;;  %vm2162_vm9 = vcmp.ge.f32.partialorder %v2156_v53, 0.0  ;;  %v2168_v59 = vmul.f32 0.2, %v2156_v53 }
 0xb1a   :  { %vm2164_vm12 = vcmp.ge.f32.partialorder %v2158_v23, 0.0  ;;  %v2170_v26 = vmul.f32 0.2, %v2158_v23  ;;  %v2171_v32 = vmul.f32 0.2, %v2159_v24  ;;  %vm2165_vm14 = vcmp.ge.f32.partialorder %v2159_v24, 0.0 }
 0xb1b   :  { %v2175_v28 = vsel %vm2163_vm8, %v2157_v54, %v2169_v25  ;;  %v2174_v29 = vsel %vm2162_vm9, %v2156_v53, %v2168_v59  ;;  %vm1866_vm8 = vcmp.gt.f32.partialorder %v7095_v41, 0.0  ;;  %v2172_v56 = vmul.f32 0.2, %v2160_v33 }
 0xb1c   :  { %v2181_v36 = vsel %vm1864_vm0, %v2175_v28, -1e+30  ;;  %v2180_v37 = vsel %vm1863_vm4, %v2174_v29, -1e+30  ;;  %v2176_v39 = vsel %vm2164_vm12, %v2158_v23, %v2170_v26  ;;  %v2177_v55 = vsel %vm2165_vm14, %v2159_v24, %v2171_v32 }
 0xb1d   :  { %v2189_v44 = vsel %vm211_vm3, %v2181_v36, -inf  ;;  %v2186_v45 = vsel %vm211_vm3, %v2180_v37, -inf  ;;  %v2182_v48 = vsel %vm1865_vm11, %v2176_v39, -1e+30  ;;  %vm2166_vm9 = vcmp.ge.f32.partialorder %v2160_v33, 0.0 }
 0xb1e   :  { %2190 = vmax.xlane.f32.xlu0 %v2189_v44  ;;  %2187 = vmax.xlane.f32.xlu1 %v2186_v45  ;;  %v2192_v19 = vsel %vm211_vm3, %v2182_v48, -inf  ;;  %v2183_v63 = vsel %vm1866_vm8, %v2177_v55, -1e+30  ;;  %vm1867_vm12 = vcmp.gt.f32.partialorder %v7102_v18, 0.0  ;;  %v2178_v2 = vsel %vm2166_vm9, %v2160_v33, %v2172_v56 }
 0xb1f   :  { %v2173_v3 = vmul.f32 0.2, %v2161_v17  ;;  %vm2167_vm1 = vcmp.ge.f32.partialorder %v2161_v17, 0.0  ;;  %v2195_v8 = vsel %vm211_vm3, %v2183_v63, -inf  ;;  %v2184_v9 = vsel %vm1867_vm12, %v2178_v2, -1e+30 }
 0xb20   :  { %vm7928_vm14 = vcmp.gt.f32.partialorder %v7108_v7, 0.0  ;;  %v2198_v12 = vsel %vm211_vm3, %v2184_v9, -inf }
 0xb21   :  { %v2179_v10 = vsel %vm2167_vm1, %v2161_v17, %v2173_v3 }
 0xb22   :  { %2193 = vmax.xlane.f32.xlu1 %v2192_v19  ;;  %v7117_v11 = vsel %vm7928_vm14, %v2179_v10, -1e+30 }
 0xb23   :  { %v2201_v20 = vsel %vm211_vm3, %v7117_v11, -inf }
 0xb26   :  { %2196 = vmax.xlane.f32.xlu1 %v2195_v8 }
 0xb2a   :  { %2199 = vmax.xlane.f32.xlu1 %v2198_v12 }
 0xb2e   :  { %2202 = vmax.xlane.f32.xlu1 %v2201_v20 }
 0xb34   :  { %6170 = vrot.lane.b32.xlu0 %v6169_v57, %s6622_s29  ;;  %v7144_v57 = vpop.permute.xlu1 %1832 }
 0xb38   :  { %6175 = vrot.lane.b32.xlu0 %v6174_v43, %s6622_s29  ;;  %v7146_v40 = vpop.permute.xlu1 %1827 }
 0xb3c   :  { %6180 = vrot.lane.b32.xlu0 %v6179_v52, %s6622_s29 }
 0xb61   :  { %1773 = vxpose.xlu1.b32.start [1/6] (short) (narrow) %v7041_v62, 8 }
 0xb65   :  { %1774 = vxpose.xlu1.b32.cont [2/6] (short) (narrow) %v7036_v61, 8 }
 0xb69   :  { %1775 = vxpose.xlu1.b32.cont [3/6] (short) (narrow) %v7048_v4, 8 }
 0xb6d   :  { %1776 = vxpose.xlu1.b32.cont [4/6] (short) (narrow) %v7043_v1, 8 }
 0xb71   :  { %1777 = vxpose.xlu1.b32.cont [5/6] (short) (narrow) %v7056_v15, 8 }
 0xb75   :  { %1778 = vxpose.xlu1.b32.end [6/6] (short) (narrow) %v7051_v13, 8 }
 0xb93   :  { %6185 = vset.pattern.permute.xlu1 %v6623_v38 }
 0xbab   :  { %v2191_v42 = vpop.xlane.xlu0 %2190  ;;  %v2188_v43 = vpop.xlane.xlu1 %2187 }
 0xbac   :  { %v2205_v47 = vsub.f32 %v2181_v36, %v2191_v42  ;;  %v2204_v49 = vsub.f32 %v2180_v37, %v2188_v43 }
 0xbae   :  { %v2212_v52 = vmul.f32 1.442695, %v2205_v47  ;;  %v2210_v61 = vmul.f32 1.442695, %v2204_v49 }
 0xbaf   :  { %v6171_v62 = vpop.permute.xlu0 %6170  ;;  %v2194_v1 = vpop.xlane.xlu1 %2193 }
 0xbb0   :  { %v6173_v4 = vunpack.i.h.bf16 %v6171_v62  ;;  %v6172_v13 = vunpack.i.l.bf16 %v6171_v62  ;;  %v2206_v15 = vsub.f32 %v2182_v48, %v2194_v1  ;;  %6304 = vpow2.f32 %v2210_v61 }
 0xbb1   :  { %6306 = vpow2.f32 %v2212_v52 }
 0xbb2   :  { %v2214_v21 = vmul.f32 1.442695, %v2206_v15  ;;  %v2246_v54 = vsel %vm641_vm5, %v6172_v13, 1.0  ;;  %v2247_v53 = vsel %vm641_vm5, %v6173_v4, 1.0 }
 0xbb3   :  { %v6176_v23 = vpop.permute.xlu0 %6175  ;;  %v2197_v24 = vpop.xlane.xlu1 %2196  ;;  %v6015_v25 = vpack.c.bf16 %v2247_v53, %v2246_v54 }
 0xbb4   :  { %6308 = vpow2.f32 %v2214_v21  ;;  %v6178_v59 = vunpack.i.h.bf16 %v6176_v23  ;;  %v6177_v26 = vunpack.i.l.bf16 %v6176_v23  ;;  %v2207_v28 = vsub.f32 %v2183_v63, %v2197_v24 }
 0xbb5   :  { %6016 = vmatprep.subr.bf16.mxu0 %v6015_v25 }
 0xbb6   :  { %v2216_v29 = vmul.f32 1.442695, %v2207_v28  ;;  %6018 = vmatpush3.bf16.msra.mxu0 %v6015_v25  ;;  %v2248_v32 = vsel %vm641_vm5, %v6177_v26, 1.0  ;;  %v2249_v33 = vsel %vm641_vm5, %v6178_v59, 1.0 }
 0xbb7   :  { %v6181_v36 = vpop.permute.xlu0 %6180  ;;  %v2200_v37 = vpop.xlane.xlu1 %2199  ;;  %v6019_v39 = vpack.c.bf16 %v2249_v33, %v2248_v32 }
 0xbb8   :  { %6310 = vpow2.f32 %v2216_v29  ;;  %v6183_v44 = vunpack.i.h.bf16 %v6181_v36  ;;  %v6182_v45 = vunpack.i.l.bf16 %v6181_v36  ;;  %v2208_v48 = vsub.f32 %v2184_v9, %v2200_v37 }
 0xbb9   :  { %6020 = vmatprep.subr.bf16.mxu0 %v6019_v39 }
 0xbba   :  { %v2218_v55 = vmul.f32 1.442695, %v2208_v48  ;;  %6022 = vmatpush3.bf16.msra.mxu0 %v6019_v39  ;;  %v2250_v56 = vsel %vm641_vm5, %v6182_v45, 1.0  ;;  %v2251_v17 = vsel %vm641_vm5, %v6183_v44, 1.0  ;;  %v6305_v19 = vpop.eup %6304 }
 0xbbb   :  { %v2203_v63 = vpop.xlane.xlu1 %2202  ;;  %v6023_v2 = vpack.c.bf16 %v2251_v17, %v2250_v56  ;;  %v6307_v3 = vpop.eup %6306  ;;  %v2222_v10 = vmul.f32 %v6305_v19, %v7084_v51 }
 0xbbc   :  { %6312 = vpow2.f32 %v2218_v55  ;;  %v2209_v8 = vsub.f32 %v7117_v11, %v2203_v63  ;;  %v2223_v9 = vmul.f32 %v6307_v3, %v7082_v14 }
 0xbbd   :  { %6024 = vmatprep.subr.bf16.mxu0 %v6023_v2  ;;  %5719 = vmatprep.mubr.msk.f32.mxu0 %vm211_vm3, %v2222_v10 }
 0xbbe   :  { %v6309_v12 = vpop.eup %6308  ;;  %v2220_v20 = vmul.f32 1.442695, %v2209_v8  ;;  %6026 = vmatpush3.bf16.msra.mxu0 %v6023_v2 }
 0xbbf   :  { %v2224_v42 = vmul.f32 %v6309_v12, %v7086_v22 }
 0xbc0   :  { %6314 = vpow2.f32 %v2220_v20 }
 0xbc1   :  { %5720 = vmatmul.mubr.msk.f32.vlgmr.msra.gmra.mrb[26].mxu0 %vm211_vm3, %v2223_v9 }
 0xbc2   :  { %v6311_v43 = vpop.eup %6310  ;;  %5722 = vmatprep.mubr.msk.f32.mxu0 %vm211_vm3, %v2224_v42 }
 0xbc3   :  { %v2225_v11 = vmul.f32 %v6311_v43, %v7095_v41 }
 0xbc5   :  { %5723 = vmatmul.mubr.msk.f32.gmra.mrb[28].mxu0 %vm211_vm3, %v2225_v11 }
 0xbc6   :  { %v6313_v47 = vpop.eup %6312 }
 0xbc7   :  { %v2226_v49 = vmul.f32 %v6313_v47, %v7102_v18 }
 0xbc9   :  { %5725 = vmatprep.mubr.msk.f32.mxu0 %vm211_vm3, %v2226_v49 }
 0xbca   :  { %v6315_v52 = vpop.eup %6314 }
 0xbcb   :  { %v2227_v61 = vmul.f32 %v6315_v52, %v7108_v7 }
 0xbcd   :  { %5726 = vmatmul.mubr.msk.f32.gmra.mrb[30].mxu0 %vm211_vm3, %v2227_v61 }
 0xbe1   :  { %v1789_v62 = vpop.trf.xlu1 }
 0xbe2   :  { %v1838_v1 = vrot.slane %v1789_v62, %v6838_v27 }
 0xbe4   :  { %v1840_v4 = vadd.f32 %v1838_v1, %v7076_v16  ;;  %v1839_v13 = vadd.f32 %v1838_v1, %v7078_v60  ;;  %v1841_v15 = vadd.f32 %v1838_v1, %v7140_v35  ;;  %v1842_v21 = vadd.f32 %v1838_v1, %v7142_v0 }
 0xbe5   :  { %v1843_v26 = vadd.f32 %v1838_v1, %v7146_v40  ;;  %v1844_v40 = vadd.f32 %v1838_v1, %v7144_v57 }
 0xbe6   :  { %vm1846_vm1 = vcmp.ge.f32.partialorder %v1840_v4, 0.0  ;;  %v1852_v54 = vmul.f32 0.2, %v1840_v4  ;;  %vm1845_vm9 = vcmp.ge.f32.partialorder %v1839_v13, 0.0  ;;  %v1851_v53 = vmul.f32 0.2, %v1839_v13 }
 0xbe7   :  { %vm1847_vm15 = vcmp.ge.f32.partialorder %v1841_v15, 0.0  ;;  %v1853_v23 = vmul.f32 0.2, %v1841_v15  ;;  %v1854_v59 = vmul.f32 0.2, %v1842_v21  ;;  %vm1848_vm13 = vcmp.ge.f32.partialorder %v1842_v21, 0.0 }
 0xbe8   :  { %v1858_v24 = vsel %vm1846_vm1, %v1840_v4, %v1852_v54  ;;  %v1857_v25 = vsel %vm1845_vm9, %v1839_v13, %v1851_v53  ;;  %v1855_v33 = vmul.f32 0.2, %v1843_v26  ;;  %vm1849_vm1 = vcmp.ge.f32.partialorder %v1843_v26, 0.0 }
 0xbe9   :  { %v1870_v16 = vsel %vm1864_vm0, %v1858_v24, -1e+30  ;;  %v1869_v60 = vsel %vm1863_vm4, %v1857_v25, -1e+30  ;;  %v1859_v35 = vsel %vm1847_vm15, %v1841_v15, %v1853_v23  ;;  %v1860_v32 = vsel %vm1848_vm13, %v1842_v21, %v1854_v59 }
 0xbea   :  { %v1878_v0 = vsel %vm211_vm3, %v1870_v16, -inf  ;;  %v1875_v28 = vsel %vm211_vm3, %v1869_v60, -inf  ;;  %v1871_v29 = vsel %vm1865_vm11, %v1859_v35, -1e+30  ;;  %v1872_v37 = vsel %vm1866_vm8, %v1860_v32, -1e+30 }
 0xbeb   :  { %1879 = vmax.xlane.f32.xlu1 %v1878_v0  ;;  %1876 = vmax.xlane.f32.xlu0 %v1875_v28  ;;  %v1881_v36 = vsel %vm211_vm3, %v1871_v29, -inf  ;;  %v1861_v39 = vsel %vm1849_vm1, %v1843_v26, %v1855_v33  ;;  %v1856_v44 = vmul.f32 0.2, %v1844_v40  ;;  %vm1850_vm15 = vcmp.ge.f32.partialorder %v1844_v40, 0.0 }
 0xbec   :  { %v1884_v45 = vsel %vm211_vm3, %v1872_v37, -inf  ;;  %v1873_v48 = vsel %vm1867_vm12, %v1861_v39, -1e+30 }
 0xbed   :  { %v1862_v55 = vsel %vm1850_vm15, %v1844_v40, %v1856_v44  ;;  %v1887_v56 = vsel %vm211_vm3, %v1873_v48, -inf }
 0xbee   :  { %v1874_v57 = vsel %vm7928_vm14, %v1862_v55, -1e+30  ;;  %vm7930_vm14 = vcmp.gt.f32.partialorder %v6861_v58, 0.0 }
 0xbef   :  { %1882 = vmax.xlane.f32.xlu0 %v1881_v36  ;;  %v1890_v17 = vsel %vm211_vm3, %v1874_v57, -inf }
 0xbf3   :  { %1885 = vmax.xlane.f32.xlu0 %v1884_v45 }
 0xbf7   :  { %1888 = vmax.xlane.f32.xlu0 %v1887_v56 }
 0xbfb   :  { %1891 = vmax.xlane.f32.xlu0 %v1890_v17 }
 0xc78   :  { %v1880_v19 = vpop.xlane.xlu1 %1879  ;;  %v1877_v63 = vpop.xlane.xlu0 %1876 }
 0xc79   :  { %v1894_v2 = vsub.f32 %v1870_v16, %v1880_v19  ;;  %v1893_v3 = vsub.f32 %v1869_v60, %v1877_v63 }
 0xc7b   :  { %v1901_v8 = vmul.f32 1.442695, %v1894_v2  ;;  %v1899_v10 = vmul.f32 1.442695, %v1893_v3 }
 0xc7c   :  { %v1883_v12 = vpop.xlane.xlu0 %1882 }
 0xc7d   :  { %6316 = vpow2.f32 %v1901_v8  ;;  %v1895_v20 = vsub.f32 %v1871_v29, %v1883_v12  ;;  %v2448_v12 = vld [vmem:[#allocation8 + $0x68] sm:$0xff] }
 0xc7e   :  { %6318 = vpow2.f32 %v1899_v10  ;;  %v2447_v10 = vld [vmem:[#allocation8 + $0x60] sm:$0xff] }
 0xc7f   :  { %v1903_v9 = vmul.f32 1.442695, %v1895_v20  ;;  %v6027_v20 = vpack.c.bf16 %v2448_v12, %v2447_v10 }
 0xc80   :  { %v1886_v42 = vpop.xlane.xlu0 %1885 }
 0xc81   :  { %6320 = vpow2.f32 %v1903_v9  ;;  %v1896_v43 = vsub.f32 %v1872_v37, %v1886_v42  ;;  %6028 = vmatprep.subr.bf16.mxu1 %v6027_v20 }
 0xc83   :  { %v1905_v11 = vmul.f32 1.442695, %v1896_v43 }
 0xc84   :  { %v1889_v47 = vpop.xlane.xlu0 %1888 }
 0xc85   :  { %6322 = vpow2.f32 %v1905_v11  ;;  %v1897_v49 = vsub.f32 %v1873_v48, %v1889_v47 }
 0xc87   :  { %v6317_v52 = vpop.eup %6316  ;;  %v1907_v61 = vmul.f32 1.442695, %v1897_v49 }
 0xc88   :  { %v6319_v62 = vpop.eup %6318  ;;  %v1912_v1 = vmul.f32 %v6317_v52, %v7082_v14  ;;  %v1892_v4 = vpop.xlane.xlu0 %1891 }
 0xc89   :  { %6324 = vpow2.f32 %v1907_v61  ;;  %v1898_v13 = vsub.f32 %v1874_v57, %v1892_v4  ;;  %v1911_v15 = vmul.f32 %v6319_v62, %v7084_v51 }
 0xc8b   :  { %v6321_v21 = vpop.eup %6320  ;;  %v1909_v54 = vmul.f32 1.442695, %v1898_v13  ;;  %5698 = vmatprep.mubr.msk.f32.mxu1 %vm211_vm3, %v1911_v15 }
 0xc8c   :  { %5699 = vmatmul.mubr.msk.f32.vlgmr.msra.gmra.mrb[20].mxu1 %vm211_vm3, %v1912_v1  ;;  %v1913_v53 = vmul.f32 %v6321_v21, %v7086_v22  ;;  %v2449_v21 = vld [vmem:[#allocation8 + $0x70] sm:$0xff] }
 0xc8d   :  { %6326 = vpow2.f32 %v1909_v54  ;;  %6030 = vmatpush3.bf16.msra.mxu1 %v6027_v20  ;;  %v2450_v54 = vld [vmem:[#allocation8 + $0x78] sm:$0xff] }
 0xc8e   :  { %5701 = vmatprep.mubr.msk.f32.mxu1 %vm211_vm3, %v1913_v53  ;;  %v6031_v53 = vpack.c.bf16 %v2450_v54, %v2449_v21 }
 0xc8f   :  { %v6323_v23 = vpop.eup %6322 }
 0xc90   :  { %v1914_v24 = vmul.f32 %v6323_v23, %v7095_v41  ;;  %6032 = vmatprep.subr.bf16.mxu0 %v6031_v53 }
 0xc91   :  { %6034 = vmatpush3.bf16.msra.mxu0 %v6031_v53 }
 0xc92   :  { %5702 = vmatmul.mubr.msk.f32.gmra.mrb[22].mxu1 %vm211_vm3, %v1914_v24 }
 0xc93   :  { %v6325_v25 = vpop.eup %6324 }
 0xc94   :  { %v5721_v59 = vpop.f32.mrb[26].mxu0  ;;  %v1915_v26 = vmul.f32 %v6325_v25, %v7102_v18 }
 0xc95   :  { %6328 = vrcp.f32 %v5721_v59  ;;  %v2336_v16 = vpop.f32.mrb[27].mxu0 }
 0xc96   :  { %6330 = vrcp.f32 %v2336_v16  ;;  %5704 = vmatprep.mubr.msk.f32.mxu1 %vm211_vm3, %v1915_v26 }
 0xc97   :  { %v6327_v60 = vpop.eup %6326 }
 0xc98   :  { %v5724_v35 = vpop.f32.mrb[28].mxu0  ;;  %v1916_v0 = vmul.f32 %v6327_v60, %v7108_v7 }
 0xc99   :  { %6332 = vrcp.f32 %v5724_v35  ;;  %v2346_v28 = vpop.f32.mrb[29].mxu0 }
 0xc9a   :  { %5705 = vmatmul.mubr.msk.f32.gmra.mrb[24].mxu1 %vm211_vm3, %v1916_v0  ;;  %6334 = vrcp.f32 %v2346_v28  ;;  %v5220_v0 = vld [vmem:[#allocation8 + $0x58] ss:$0 sm:$0xff] }
 0xc9f   :  { %v6329_v29 = vpop.eup %6328 }
 0xca0   :  { %v6331_v32 = vpop.eup %6330  ;;  %v5727_v33 = vpop.f32.mrb[30].mxu0  ;;  %2378 = vperm.xlu1 %6185, %v6329_v29  }
 0xca1   :  { %6336 = vrcp.f32 %v5727_v33  ;;  %v2356_v40 = vpop.f32.mrb[31].mxu0  ;;  %2373 = vperm.xlu0 %6184, %v6331_v32  }
 0xca2   :  { %6338 = vrcp.f32 %v2356_v40 }
 0xca3   :  { %v6333_v36 = vpop.eup %6332 }
 0xca4   :  { %2388 = vperm.xlu1 %6185, %v6333_v36   ;;  %v6335_v37 = vpop.eup %6334 }
 0xca8   :  { %2383 = vperm.xlu1 %6185, %v6335_v37  }
 0xcab   :  { %v6337_v39 = vpop.eup %6336 }
 0xcac   :  { %v6339_v44 = vpop.eup %6338  ;;  %2398 = vperm.xlu0 %6184, %v6337_v39  }
 0xcad   :  { %2393 = vperm.xlu1 %6185, %v6339_v44  }
 0xd1f   :  { %v2379_v2 = vpop.permute.xlu1 %2378 }
 0xd20   :  { %v2374_v11 = vpop.permute.xlu0 %2373  ;;  %v2402_v49 = vmul.f32 %v5721_v59, %v2379_v2 }
 0xd21   :  { %v2401_v52 = vmul.f32 %v2374_v11, %v2336_v16 }
 0xd23   :  { %v2389_v9 = vpop.permute.xlu1 %2388 }
 0xd24   :  { %v2404_v61 = vmul.f32 %v5724_v35, %v2389_v9 }
 0xd27   :  { %v2384_v47 = vpop.permute.xlu1 %2383 }
 0xd28   :  { %v2403_v62 = vmul.f32 %v2384_v47, %v2346_v28 }
 0xd2b   :  { %v2399_v1 = vpop.permute.xlu0 %2398 }
 0xd2c   :  { %v2394_v4 = vpop.permute.xlu1 %2393  ;;  %v2406_v13 = vmul.f32 %v5727_v33, %v2399_v1 }
 0xd2d   :  { %v2405_v15 = vmul.f32 %v2394_v4, %v2356_v40 }
 0xd5f   :  { %v5700_v45 = vpop.f32.mrb[20].mxu1 }
 0xd60   :  { %6340 = vrcp.f32 %v5700_v45  ;;  %v2007_v48 = vpop.f32.mrb[21].mxu1 }
 0xd61   :  { %6342 = vrcp.f32 %v2007_v48 }
 0xd65   :  { %v7204_v55 = vpop.f32.mrb[22].mxu1 }
 0xd66   :  { %6344 = vrcp.f32 %v7204_v55  ;;  %v7207_v56 = vpop.f32.mrb[23].mxu1 }
 0xd67   :  { %6346 = vrcp.f32 %v7207_v56 }
 0xd6a   :  { %v6341_v57 = vpop.eup %6340 }
 0xd6b   :  { %v6343_v17 = vpop.eup %6342  ;;  %2049 = vperm.xlu0 %6184, %v6341_v57  }
 0xd6c   :  { %2044 = vperm.xlu1 %6185, %v6343_v17  }
 0xd6d   :  { %v7210_v19 = vpop.f32.mrb[24].mxu1 }
 0xd6e   :  { %6348 = vrcp.f32 %v7210_v19  ;;  %v7213_v63 = vpop.f32.mrb[25].mxu1 }
 0xd6f   :  { %6350 = vrcp.f32 %v7213_v63 }
 0xd70   :  { %v6345_v3 = vpop.eup %6344 }
 0xd71   :  { %v6347_v8 = vpop.eup %6346  ;;  %2059 = vperm.xlu0 %6184, %v6345_v3  }
 0xd72   :  { %2054 = vperm.xlu1 %6185, %v6347_v8  }
 0xd78   :  { %v6349_v42 = vpop.eup %6348 }
 0xd79   :  { %v6351_v43 = vpop.eup %6350  ;;  %2069 = vperm.xlu0 %6184, %v6349_v42  }
 0xd7a   :  { %2064 = vperm.xlu1 %6185, %v6351_v43  }
 0xd7d   :  { %2415 = vrot.lane.b32.xlu0 %v2402_v49, %s6611_s28 }
 0xd7e   :  { %2413 = vrot.lane.b32.xlu1 %v2401_v52, %s6611_s28  ;;  %6186 = vset.pattern.permute.xlu0 %v6620_v6 }
 0xd7f   :  { %6187 = vset.pattern.permute.xlu1 %v6619_v50 }
 0xd81   :  { %2419 = vrot.lane.b32.xlu0 %v2404_v61, %s6611_s28 }
 0xd82   :  { %2417 = vrot.lane.b32.xlu1 %v2403_v62, %s6611_s28 }
 0xd85   :  { %2423 = vrot.lane.b32.xlu0 %v2406_v13, %s6611_s28 }
 0xd86   :  { %2421 = vrot.lane.b32.xlu1 %v2405_v15, %s6611_s28 }
 0xdea   :  { %v2050_v23 = vpop.permute.xlu0 %2049 }
 0xdeb   :  { %v2045_v24 = vpop.permute.xlu1 %2044  ;;  %v2073_v60 = vmul.f32 %v5700_v45, %v2050_v23 }
 0xdec   :  { %v2072_v35 = vmul.f32 %v2045_v24, %v2007_v48 }
 0xdf0   :  { %v2060_v25 = vpop.permute.xlu0 %2059 }
 0xdf1   :  { %v2055_v59 = vpop.permute.xlu1 %2054  ;;  %v2075_v40 = vmul.f32 %v7204_v55, %v2060_v25 }
 0xdf2   :  { %v2074_v37 = vmul.f32 %v2055_v59, %v7207_v56 }
 0xdf8   :  { %v2070_v26 = vpop.permute.xlu0 %2069 }
 0xdf9   :  { %v2065_v16 = vpop.permute.xlu1 %2064  ;;  %v2077_v17 = vmul.f32 %v7210_v19, %v2070_v26 }
 0xdfa   :  { %v2076_v3 = vmul.f32 %v2065_v16, %v7213_v63 }
 0xdfc   :  { %v2416_v28 = vpop.permute.xlu0 %2415 }
 0xdfd   :  { %v2432_v29 = vsel %vm641_vm5, %v2073_v60, %v2416_v28  ;;  %v2414_v32 = vpop.permute.xlu1 %2413 }
 0xdfe   :  { %v2431_v33 = vsel %vm641_vm5, %v2072_v35, %v2414_v32  ;;  %v2442_v39 = vadd.f32 %v5220_v0, %v2432_v29 }
 0xdff   :  { %v2441_v36 = vadd.f32 %v5220_v0, %v2431_v33 }
 0xe00   :  { %v2420_v44 = vpop.permute.xlu0 %2419 }
 0xe01   :  { %v2434_v57 = vsel %vm641_vm5, %v2075_v40, %v2420_v44  ;;  %5732 = vmatprep.mubr.msk.f32.mxu1 %vm68_vm2, %v2441_v36  ;;  %v2418_v45 = vpop.permute.xlu1 %2417 }
 0xe02   :  { %v2433_v48 = vsel %vm641_vm5, %v2074_v37, %v2418_v45  ;;  %5733 = vmatmul.mubr.msk.f32.vlgmr.msra.gmra.mrb[26].mxu1 %vm68_vm2, %v2442_v39  ;;  %v2444_v55 = vadd.f32 %v5220_v0, %v2434_v57 }
 0xe03   :  { %v2443_v2 = vadd.f32 %v5220_v0, %v2433_v48 }
 0xe04   :  { %v2424_v8 = vpop.permute.xlu0 %2423 }
 0xe05   :  { %v2436_v56 = vsel %vm641_vm5, %v2077_v17, %v2424_v8  ;;  %v2422_v10 = vpop.permute.xlu1 %2421  ;;  %5735 = vmatprep.mubr.msk.f32.mxu1 %vm68_vm2, %v2443_v2 }
 0xe06   :  { %v2435_v12 = vsel %vm641_vm5, %v2076_v3, %v2422_v10  ;;  %5736 = vmatmul.mubr.msk.f32.gmra.mrb[28].mxu1 %vm68_vm2, %v2444_v55  ;;  %v2446_v9 = vadd.f32 %v5220_v0, %v2436_v56 }
 0xe07   :  { %v2445_v20 = vadd.f32 %v5220_v0, %v2435_v12 }
 0xe09   :  { %5738 = vmatprep.mubr.msk.f32.mxu1 %vm68_vm2, %v2445_v20 }
 0xe0a   :  { %5739 = vmatmul.mubr.msk.f32.gmra.mrb[30].mxu1 %vm68_vm2, %v2446_v9 }
 0xed5   :  { %v7240_v19 = vpop.f32.mrb[26].mxu1 }
 0xed6   :  { %v2817_v63 = vsel %vm641_vm5, %v7240_v19, 1.0  ;;  %v7244_v42 = vpop.f32.mrb[27].mxu1 }
 0xed7   :  { %v6192_v43 = vpack.i.bf16 %v7240_v19, %v7244_v42  ;;  %v2816_v11 = vsel %vm641_vm5, %v7244_v42, 1.0  ;;  %5745 = vmatprep.mubr.msk.f32.mxu0 %vm68_vm2, %v7244_v42 }
 0xed8   :  { %5746 = vmatmul.mubr.msk.f32.vlgmr.msra.gmra.mrb[32].mxu0 %vm68_vm2, %v7240_v19  ;;  %v6035_v47 = vpack.c.bf16 %v2817_v63, %v2816_v11 }
 0xed9   :  { %v7254_v49 = vpop.f32.mrb[28].mxu1 }
 0xeda   :  { %v2819_v52 = vsel %vm641_vm5, %v7254_v49, 1.0  ;;  %v7258_v61 = vpop.f32.mrb[29].mxu1  ;;  %6036 = vmatprep.subr.bf16.mxu1 %v6035_v47 }
 0xedb   :  { %v6197_v62 = vpack.i.bf16 %v7254_v49, %v7258_v61  ;;  %v2818_v1 = vsel %vm641_vm5, %v7258_v61, 1.0  ;;  %5748 = vmatprep.mubr.msk.f32.mxu0 %vm68_vm2, %v7258_v61  ;;  %6038 = vmatpush3.bf16.msra.mxu1 %v6035_v47 }
 0xedc   :  { %5749 = vmatmul.mubr.msk.f32.gmra.mrb[34].mxu0 %vm68_vm2, %v7254_v49  ;;  %v6039_v4 = vpack.c.bf16 %v2819_v52, %v2818_v1 }
 0xedd   :  { %v7268_v13 = vpop.f32.mrb[30].mxu1 }
 0xede   :  { %v2821_v15 = vsel %vm641_vm5, %v7268_v13, 1.0  ;;  %v7272_v21 = vpop.f32.mrb[31].mxu1  ;;  %6040 = vmatprep.subr.bf16.mxu1 %v6039_v4 }
 0xedf   :  { %v6202_v54 = vpack.i.bf16 %v7268_v13, %v7272_v21  ;;  %v2820_v53 = vsel %vm641_vm5, %v7272_v21, 1.0  ;;  %5751 = vmatprep.mubr.msk.f32.mxu0 %vm68_vm2, %v7272_v21  ;;  %6042 = vmatpush3.bf16.msra.mxu1 %v6039_v4 }
 0xee0   :  { %5752 = vmatmul.mubr.msk.f32.gmra.mrb[36].mxu0 %vm68_vm2, %v7268_v13  ;;  %v6043_v23 = vpack.c.bf16 %v2821_v15, %v2820_v53 }
 0xee2   :  { %6044 = vmatprep.subr.bf16.mxu1 %v6043_v23 }
 0xee3   :  { %6046 = vmatpush3.bf16.msra.mxu1 %v6043_v23 }
 0xfab   :  { %v7282_v24 = vpop.f32.mrb[32].mxu0 }
 0xfac   :  { %2717 = vperm.xlu1 %6187, %v7282_v24   ;;  %2979 = vrot.lane.b32.xlu0 %v7282_v24, %s6621_s27  ;;  %v7287_v25 = vpop.f32.mrb[33].mxu0 }
 0xfaf   :  { %v7289_v59 = vpop.f32.mrb[34].mxu0 }
 0xfb0   :  { %3032 = vperm.xlu0 %6186, %v7282_v24   ;;  %2977 = vrot.lane.b32.xlu1 %v7287_v25, %s6621_s27  ;;  %v7294_v26 = vpop.f32.mrb[35].mxu0 }
 0xfb1   :  { %6188 = vset.pattern.permute.xlu1 %v6620_v6 }
 0xfb3   :  { %v7297_v16 = vpop.f32.mrb[36].mxu0 }
 0xfb4   :  { %3028 = vperm.xlu1 %6188, %v7287_v25   ;;  %2983 = vrot.lane.b32.xlu0 %v7289_v59, %s6621_s27  ;;  %v7302_v60 = vpop.f32.mrb[37].mxu0 }
 0xfb8   :  { %6189 = vset.pattern.permute.xlu1 %v6619_v50  ;;  %2987 = vrot.lane.b32.xlu0 %v7297_v16, %s6621_s27 }
 0xfb9   :  { %2712 = vperm.xlu1 %6189, %v7287_v25  }
 0xfbc   :  { %3044 = vperm.xlu0 %6186, %v7302_v60  }
 0xfbd   :  { %6190 = vset.pattern.permute.xlu1 %v6620_v6 }
 0xfbe   :  { %3040 = vperm.xlu1 %6190, %v7289_v59  }
 0xfc2   :  { %2981 = vrot.lane.b32.xlu1 %v7294_v26, %s6621_s27 }
 0xfc6   :  { %3036 = vperm.xlu1 %6190, %v7294_v26  }
 0xfca   :  { %3048 = vperm.xlu1 %6190, %v7297_v16  }
 0xfce   :  { %2985 = vrot.lane.b32.xlu1 %v7302_v60, %s6621_s27 }
 0xfcf   :  { %6191 = vset.pattern.permute.xlu1 %v6619_v50 }
 0xfd2   :  { %2722 = vperm.xlu1 %6191, %v7294_v26  }
 0xfd6   :  { %2727 = vperm.xlu1 %6191, %v7289_v59  }
 0xfda   :  { %2737 = vperm.xlu1 %6191, %v7297_v16  }
 0xfde   :  { %2732 = vperm.xlu1 %6191, %v7302_v60  }
0x101e   :  { %v2980_v28 = vpop.permute.xlu0 %2979 }
0x102b   :  { %v7322_v35 = vpop.permute.xlu1 %2717 }
0x102f   :  { %v2978_v0 = vpop.permute.xlu1 %2977  ;;  %v3033_v40 = vpop.permute.xlu0 %3032 }
0x1030   :  { %2995 = vxpose.xlu0.b32.start [1/6] (short) (narrow) %v2978_v0, 8 }
0x1033   :  { %v3029_v29 = vpop.permute.xlu1 %3028  ;;  %v2984_v37 = vpop.permute.xlu0 %2983 }
0x1034   :  { %2996 = vxpose.xlu0.b32.cont [2/6] (short) (narrow) %v2980_v28, 8 }
0x1037   :  { %v2988_v45 = vpop.permute.xlu0 %2987 }
0x1038   :  { %v7324_v32 = vpop.permute.xlu1 %2712 }
0x103b   :  { %v3045_v48 = vpop.permute.xlu0 %3044 }
0x103d   :  { %v3041_v33 = vpop.permute.xlu1 %3040 }
0x1041   :  { %v2982_v36 = vpop.permute.xlu1 %2981 }
0x1042   :  { %2997 = vxpose.xlu0.b32.cont [3/6] (short) (narrow) %v2982_v36, 8 }
0x1045   :  { %v3037_v39 = vpop.permute.xlu1 %3036 }
0x1046   :  { %2998 = vxpose.xlu0.b32.cont [4/6] (short) (narrow) %v2984_v37, 8 }
0x1049   :  { %v3049_v44 = vpop.permute.xlu1 %3048 }
0x104d   :  { %v2986_v57 = vpop.permute.xlu1 %2985 }
0x104e   :  { %2999 = vxpose.xlu0.b32.cont [5/6] (short) (narrow) %v2986_v57, 8 }
0x1051   :  { %v7368_v19 = vpop.permute.xlu1 %2722 }
0x1052   :  { %3000 = vxpose.xlu0.b32.end [6/6] (short) (narrow) %v2988_v45, 8 }
0x1055   :  { %v7370_v42 = vpop.permute.xlu1 %2727 }
0x107b   :  { %6207 = vset.pattern.permute.xlu0 %v6623_v38 }
0x10be   :  { %v3011_v17 = vpop.trf.xlu0 }
0x10bf   :  { %v3054_v2 = vrot.slane %v3011_v17, %v6838_v27 }
0x10c1   :  { %v3056_v3 = vadd.f32 %v3054_v2, %v3033_v40  ;;  %v3055_v55 = vadd.f32 %v3054_v2, %v3029_v29  ;;  %v3057_v8 = vadd.f32 %v3054_v2, %v3037_v39  ;;  %v3058_v56 = vadd.f32 %v3054_v2, %v3041_v33 }
0x10c2   :  { %v3059_v47 = vadd.f32 %v3054_v2, %v3045_v48  ;;  %v3060_v29 = vadd.f32 %v3054_v2, %v3049_v44 }
0x10c3   :  { %vm3062_vm13 = vcmp.ge.f32.partialorder %v3056_v3, 0.0  ;;  %v3068_v10 = vmul.f32 0.2, %v3056_v3  ;;  %vm3061_vm9 = vcmp.ge.f32.partialorder %v3055_v55, 0.0  ;;  %v3067_v12 = vmul.f32 0.2, %v3055_v55 }
0x10c4   :  { %vm3063_vm1 = vcmp.ge.f32.partialorder %v3057_v8, 0.0  ;;  %v3069_v20 = vmul.f32 0.2, %v3057_v8  ;;  %v3070_v11 = vmul.f32 0.2, %v3058_v56  ;;  %vm3064_vm15 = vcmp.ge.f32.partialorder %v3058_v56, 0.0 }
0x10c5   :  { %v3074_v9 = vsel %vm3062_vm13, %v3056_v3, %v3068_v10  ;;  %v3073_v63 = vsel %vm3061_vm9, %v3055_v55, %v3067_v12  ;;  %v3071_v28 = vmul.f32 0.2, %v3059_v47  ;;  %vm3065_vm13 = vcmp.ge.f32.partialorder %v3059_v47, 0.0 }
0x10c6   :  { %v3080_v52 = vsel %vm959_vm6, %v3074_v9, -1e+30  ;;  %v3079_v1 = vsel %vm958_vm7, %v3073_v63, -1e+30  ;;  %v3075_v4 = vsel %vm3063_vm1, %v3057_v8, %v3069_v20  ;;  %v3076_v0 = vsel %vm3064_vm15, %v3058_v56, %v3070_v11 }
0x10c7   :  { %v3088_v15 = vsel %vm211_vm3, %v3080_v52, -inf  ;;  %v3085_v53 = vsel %vm211_vm3, %v3079_v1, -inf  ;;  %v3081_v23 = vsel %vm960_vm10, %v3075_v4, -1e+30  ;;  %vm7929_vm9 = vcmp.gt.f32.partialorder %v6854_v46, 0.0 }
0x10c8   :  { %3089 = vmax.xlane.f32.xlu0 %v3088_v15  ;;  %3086 = vmax.xlane.f32.xlu1 %v3085_v53  ;;  %v3091_v33 = vsel %vm211_vm3, %v3081_v23, -inf  ;;  %v3082_v40 = vsel %vm7929_vm9, %v3076_v0, -1e+30  ;;  %v3077_v36 = vsel %vm3065_vm13, %v3059_v47, %v3071_v28  ;;  %v3072_v37 = vmul.f32 0.2, %v3060_v29 }
0x10c9   :  { %vm3066_vm1 = vcmp.ge.f32.partialorder %v3060_v29, 0.0  ;;  %v3094_v39 = vsel %vm211_vm3, %v3082_v40, -inf  ;;  %v3083_v57 = vsel %vm7930_vm14, %v3077_v36, -1e+30  ;;  %vm7931_vm15 = vcmp.gt.f32.partialorder %v6867_v5, 0.0 }
0x10ca   :  { %v3078_v45 = vsel %vm3066_vm1, %v3060_v29, %v3072_v37  ;;  %v3097_v48 = vsel %vm211_vm3, %v3083_v57, -inf }
0x10cb   :  { %v7345_v44 = vsel %vm7931_vm15, %v3078_v45, -1e+30  ;;  %v7383_v45 = vld [vmem:[#allocation3] sm:$0xff] }
0x10cc   :  { %3092 = vmax.xlane.f32.xlu1 %v3091_v33  ;;  %v3100_v17 = vsel %vm211_vm3, %v7345_v44, -inf }
0x10d0   :  { %3095 = vmax.xlane.f32.xlu1 %v3094_v39 }
0x10d4   :  { %3098 = vmax.xlane.f32.xlu1 %v3097_v48 }
0x10d8   :  { %3101 = vmax.xlane.f32.xlu1 %v3100_v17 }
0x10de   :  { %6193 = vrot.lane.b32.xlu0 %v6192_v43, %s6622_s29  ;;  %v7372_v43 = vpop.permute.xlu1 %2737 }
0x10e2   :  { %6198 = vrot.lane.b32.xlu0 %v6197_v62, %s6622_s29  ;;  %v7374_v49 = vpop.permute.xlu1 %2732 }
0x10e6   :  { %6203 = vrot.lane.b32.xlu0 %v6202_v54, %s6622_s29 }
0x110b   :  { %2678 = vxpose.xlu1.b32.start [1/6] (short) (narrow) %v7287_v25, 8 }
0x110f   :  { %2679 = vxpose.xlu1.b32.cont [2/6] (short) (narrow) %v7282_v24, 8 }
0x1113   :  { %2680 = vxpose.xlu1.b32.cont [3/6] (short) (narrow) %v7294_v26, 8 }
0x1117   :  { %2681 = vxpose.xlu1.b32.cont [4/6] (short) (narrow) %v7289_v59, 8 }
0x111b   :  { %2682 = vxpose.xlu1.b32.cont [5/6] (short) (narrow) %v7302_v60, 8 }
0x111f   :  { %2683 = vxpose.xlu1.b32.end [6/6] (short) (narrow) %v7297_v16, 8 }
0x113d   :  { %6208 = vset.pattern.permute.xlu1 %v6623_v38 }
0x1155   :  { %v3090_v61 = vpop.xlane.xlu0 %3089  ;;  %v3087_v62 = vpop.xlane.xlu1 %3086 }
0x1156   :  { %v3104_v13 = vsub.f32 %v3080_v52, %v3090_v61  ;;  %v3103_v21 = vsub.f32 %v3079_v1, %v3087_v62  ;;  %v7387_v61 = vld [vmem:[#allocation3 + $0x8] sm:$0xff] }
0x1158   :  { %v3111_v54 = vmul.f32 1.442695, %v3104_v13  ;;  %v3109_v24 = vmul.f32 1.442695, %v3103_v21  ;;  %v7390_v13 = vld [vmem:[#allocation3 + $0x10] sm:$0xff] }
0x1159   :  { %v6194_v25 = vpop.permute.xlu0 %6193  ;;  %v3093_v59 = vpop.xlane.xlu1 %3092 }
0x115a   :  { %v6196_v26 = vunpack.i.h.bf16 %v6194_v25  ;;  %v6195_v16 = vunpack.i.l.bf16 %v6194_v25  ;;  %v3105_v60 = vsub.f32 %v3081_v23, %v3093_v59  ;;  %6352 = vpow2.f32 %v3109_v24  ;;  %v7399_v59 = vld [vmem:[#allocation3 + $0x20] sm:$0xff] }
0x115b   :  { %6354 = vpow2.f32 %v3111_v54  ;;  %v7395_v54 = vld [vmem:[#allocation3 + $0x18] sm:$0xff] }
0x115c   :  { %v3113_v2 = vmul.f32 1.442695, %v3105_v60  ;;  %v3145_v3 = vsel %vm641_vm5, %v6195_v16, 1.0  ;;  %v3146_v55 = vsel %vm641_vm5, %v6196_v26, 1.0  ;;  %v7403_v60 = vld [vmem:[#allocation3 + $0x28] sm:$0xff] }
0x115d   :  { %v6199_v8 = vpop.permute.xlu0 %6198  ;;  %v3096_v56 = vpop.xlane.xlu1 %3095  ;;  %v6047_v10 = vpack.c.bf16 %v3146_v55, %v3145_v3 }
0x115e   :  { %6356 = vpow2.f32 %v3113_v2  ;;  %v6201_v12 = vunpack.i.h.bf16 %v6199_v8  ;;  %v6200_v20 = vunpack.i.l.bf16 %v6199_v8  ;;  %v3106_v9 = vsub.f32 %v3082_v40, %v3096_v56 }
0x115f   :  { %6048 = vmatprep.subr.bf16.mxu0 %v6047_v10 }
0x1160   :  { %v3115_v63 = vmul.f32 1.442695, %v3106_v9  ;;  %6050 = vmatpush3.bf16.msra.mxu0 %v6047_v10  ;;  %v3147_v11 = vsel %vm641_vm5, %v6200_v20, 1.0  ;;  %v3148_v47 = vsel %vm641_vm5, %v6201_v12, 1.0 }
0x1161   :  { %v6204_v52 = vpop.permute.xlu0 %6203  ;;  %v3099_v1 = vpop.xlane.xlu1 %3098  ;;  %v6051_v4 = vpack.c.bf16 %v3148_v47, %v3147_v11 }
0x1162   :  { %6358 = vpow2.f32 %v3115_v63  ;;  %v6206_v15 = vunpack.i.h.bf16 %v6204_v52  ;;  %v6205_v53 = vunpack.i.l.bf16 %v6204_v52  ;;  %v3107_v23 = vsub.f32 %v3083_v57, %v3099_v1 }
0x1163   :  { %6052 = vmatprep.subr.bf16.mxu0 %v6051_v4 }
0x1164   :  { %v3117_v0 = vmul.f32 1.442695, %v3107_v23  ;;  %6054 = vmatpush3.bf16.msra.mxu0 %v6051_v4  ;;  %v3149_v28 = vsel %vm641_vm5, %v6205_v53, 1.0  ;;  %v3150_v29 = vsel %vm641_vm5, %v6206_v15, 1.0  ;;  %v6353_v33 = vpop.eup %6352 }
0x1165   :  { %v3102_v40 = vpop.xlane.xlu1 %3101  ;;  %v6055_v36 = vpack.c.bf16 %v3150_v29, %v3149_v28  ;;  %v6355_v37 = vpop.eup %6354  ;;  %v3121_v48 = vmul.f32 %v7383_v45, %v6353_v33 }
0x1166   :  { %6360 = vpow2.f32 %v3117_v0  ;;  %v3108_v39 = vsub.f32 %v7345_v44, %v3102_v40  ;;  %v3122_v62 = vmul.f32 %v7387_v61, %v6355_v37 }
0x1167   :  { %6056 = vmatprep.subr.bf16.mxu0 %v6055_v36  ;;  %5787 = vmatprep.mubr.msk.f32.mxu0 %vm211_vm3, %v3121_v48 }
0x1168   :  { %v6357_v57 = vpop.eup %6356  ;;  %v3119_v17 = vmul.f32 1.442695, %v3108_v39  ;;  %6058 = vmatpush3.bf16.msra.mxu0 %v6055_v36 }
0x1169   :  { %v3123_v21 = vmul.f32 %v7390_v13, %v6357_v57 }
0x116a   :  { %6362 = vpow2.f32 %v3119_v17 }
0x116b   :  { %5788 = vmatmul.mubr.msk.f32.vlgmr.msra.gmra.mrb[38].mxu0 %vm211_vm3, %v3122_v62 }
0x116c   :  { %v6359_v44 = vpop.eup %6358  ;;  %5790 = vmatprep.mubr.msk.f32.mxu0 %vm211_vm3, %v3123_v21 }
0x116d   :  { %v3124_v24 = vmul.f32 %v7395_v54, %v6359_v44 }
0x116f   :  { %5791 = vmatmul.mubr.msk.f32.gmra.mrb[40].mxu0 %vm211_vm3, %v3124_v24 }
0x1170   :  { %v6361_v25 = vpop.eup %6360 }
0x1171   :  { %v3125_v26 = vmul.f32 %v7399_v59, %v6361_v25 }
0x1173   :  { %5793 = vmatprep.mubr.msk.f32.mxu0 %vm211_vm3, %v3125_v26 }
0x1174   :  { %v6363_v16 = vpop.eup %6362 }
0x1175   :  { %v3126_v2 = vmul.f32 %v7403_v60, %v6363_v16 }
0x1177   :  { %5794 = vmatmul.mubr.msk.f32.gmra.mrb[42].mxu0 %vm211_vm3, %v3126_v2 }
0x118b   :  { %v2694_v3 = vpop.trf.xlu1 }
0x118c   :  { %v2743_v55 = vrot.slane %v2694_v3, %v6838_v27 }
0x118e   :  { %v2745_v8 = vadd.f32 %v2743_v55, %v7322_v35  ;;  %v2744_v56 = vadd.f32 %v2743_v55, %v7324_v32  ;;  %v2746_v10 = vadd.f32 %v2743_v55, %v7368_v19  ;;  %v2747_v12 = vadd.f32 %v2743_v55, %v7370_v42 }
0x118f   :  { %v2748_v1 = vadd.f32 %v2743_v55, %v7374_v49  ;;  %v2749_v49 = vadd.f32 %v2743_v55, %v7372_v43 }
0x1190   :  { %vm2751_vm14 = vcmp.ge.f32.partialorder %v2745_v8, 0.0  ;;  %v2757_v20 = vmul.f32 0.2, %v2745_v8  ;;  %vm2750_vm13 = vcmp.ge.f32.partialorder %v2744_v56, 0.0  ;;  %v2756_v9 = vmul.f32 0.2, %v2744_v56 }
0x1191   :  { %vm2752_vm9 = vcmp.ge.f32.partialorder %v2746_v10, 0.0  ;;  %v2758_v63 = vmul.f32 0.2, %v2746_v10  ;;  %v2759_v52 = vmul.f32 0.2, %v2747_v12  ;;  %vm2753_vm1 = vcmp.ge.f32.partialorder %v2747_v12, 0.0 }
0x1192   :  { %v2763_v11 = vsel %vm2751_vm14, %v2745_v8, %v2757_v20  ;;  %v2762_v47 = vsel %vm2750_vm13, %v2744_v56, %v2756_v9  ;;  %v2760_v23 = vmul.f32 0.2, %v2748_v1  ;;  %vm2754_vm15 = vcmp.ge.f32.partialorder %v2748_v1, 0.0 }
0x1193   :  { %v2769_v35 = vsel %vm959_vm6, %v2763_v11, -1e+30  ;;  %v2768_v32 = vsel %vm958_vm7, %v2762_v47, -1e+30  ;;  %v2764_v19 = vsel %vm2752_vm9, %v2746_v10, %v2758_v63  ;;  %v2765_v53 = vsel %vm2753_vm1, %v2747_v12, %v2759_v52 }
0x1194   :  { %v2777_v42 = vsel %vm211_vm3, %v2769_v35, -inf  ;;  %v2774_v4 = vsel %vm211_vm3, %v2768_v32, -inf  ;;  %v2770_v15 = vsel %vm960_vm10, %v2764_v19, -1e+30  ;;  %vm7932_vm14 = vcmp.gt.f32.partialorder %v6854_v46, 0.0 }
0x1195   :  { %2778 = vmax.xlane.f32.xlu1 %v2777_v42  ;;  %2775 = vmax.xlane.f32.xlu0 %v2774_v4  ;;  %v2780_v0 = vsel %vm211_vm3, %v2770_v15, -inf  ;;  %v2771_v28 = vsel %vm7932_vm14, %v2765_v53, -1e+30  ;;  %v2766_v29 = vsel %vm2754_vm15, %v2748_v1, %v2760_v23  ;;  %v2761_v33 = vmul.f32 0.2, %v2749_v49 }
0x1196   :  { %vm2755_vm13 = vcmp.ge.f32.partialorder %v2749_v49, 0.0  ;;  %v2783_v40 = vsel %vm211_vm3, %v2771_v28, -inf  ;;  %vm7933_vm9 = vcmp.gt.f32.partialorder %v6861_v58, 0.0  ;;  %vm7934_vm1 = vcmp.gt.f32.partialorder %v6867_v5, 0.0 }
0x1197   :  { %v2772_v36 = vsel %vm7933_vm9, %v2766_v29, -1e+30  ;;  %v2767_v37 = vsel %vm2755_vm13, %v2749_v49, %v2761_v33 }
0x1198   :  { %v2786_v39 = vsel %vm211_vm3, %v2772_v36, -inf  ;;  %v2773_v43 = vsel %vm7934_vm1, %v2767_v37, -1e+30 }
0x1199   :  { %2781 = vmax.xlane.f32.xlu0 %v2780_v0  ;;  %v2789_v48 = vsel %vm211_vm3, %v2773_v43, -inf }
0x119d   :  { %2784 = vmax.xlane.f32.xlu0 %v2783_v40 }
0x11a1   :  { %2787 = vmax.xlane.f32.xlu0 %v2786_v39 }
0x11a5   :  { %2790 = vmax.xlane.f32.xlu0 %v2789_v48 }
0x1222   :  { %v2779_v57 = vpop.xlane.xlu1 %2778  ;;  %v2776_v17 = vpop.xlane.xlu0 %2775 }
0x1223   :  { %v2793_v62 = vsub.f32 %v2769_v35, %v2779_v57  ;;  %v2792_v21 = vsub.f32 %v2768_v32, %v2776_v17 }
0x1225   :  { %v2800_v44 = vmul.f32 1.442695, %v2793_v62  ;;  %v2798_v24 = vmul.f32 1.442695, %v2792_v21 }
0x1226   :  { %v2782_v25 = vpop.xlane.xlu0 %2781 }
0x1227   :  { %6364 = vpow2.f32 %v2800_v44  ;;  %v2794_v26 = vsub.f32 %v2770_v15, %v2782_v25  ;;  %v3347_v25 = vld [vmem:[#allocation8 + $0x90] sm:$0xff] }
0x1228   :  { %6366 = vpow2.f32 %v2798_v24  ;;  %v3346_v24 = vld [vmem:[#allocation8 + $0x88] sm:$0xff] }
0x1229   :  { %v2802_v16 = vmul.f32 1.442695, %v2794_v26  ;;  %v6059_v26 = vpack.c.bf16 %v3347_v25, %v3346_v24 }
0x122a   :  { %v2785_v2 = vpop.xlane.xlu0 %2784 }
0x122b   :  { %6368 = vpow2.f32 %v2802_v16  ;;  %v2795_v3 = vsub.f32 %v2771_v28, %v2785_v2  ;;  %6060 = vmatprep.subr.bf16.mxu1 %v6059_v26 }
0x122d   :  { %v2804_v55 = vmul.f32 1.442695, %v2795_v3 }
0x122e   :  { %v2788_v8 = vpop.xlane.xlu0 %2787 }
0x122f   :  { %6370 = vpow2.f32 %v2804_v55  ;;  %v2796_v56 = vsub.f32 %v2772_v36, %v2788_v8 }
0x1231   :  { %v6365_v10 = vpop.eup %6364  ;;  %v2806_v12 = vmul.f32 1.442695, %v2796_v56 }
0x1232   :  { %v6367_v20 = vpop.eup %6366  ;;  %v2811_v9 = vmul.f32 %v7387_v61, %v6365_v10  ;;  %v2791_v63 = vpop.xlane.xlu0 %2790 }
0x1233   :  { %6372 = vpow2.f32 %v2806_v12  ;;  %v2797_v11 = vsub.f32 %v2773_v43, %v2791_v63  ;;  %v2810_v47 = vmul.f32 %v7383_v45, %v6367_v20 }
0x1235   :  { %v6369_v52 = vpop.eup %6368  ;;  %v2808_v1 = vmul.f32 1.442695, %v2797_v11  ;;  %5766 = vmatprep.mubr.msk.f32.mxu1 %vm211_vm3, %v2810_v47 }
0x1236   :  { %5767 = vmatmul.mubr.msk.f32.vlgmr.msra.gmra.mrb[32].mxu1 %vm211_vm3, %v2811_v9  ;;  %v2812_v35 = vmul.f32 %v7390_v13, %v6369_v52  ;;  %v3348_v52 = vld [vmem:[#allocation8 + $0x98] sm:$0xff] }
0x1237   :  { %6374 = vpow2.f32 %v2808_v1  ;;  %6062 = vmatpush3.bf16.msra.mxu1 %v6059_v26  ;;  %v3349_v1 = vld [vmem:[#allocation8 + $0xa0] sm:$0xff] }
0x1238   :  { %5769 = vmatprep.mubr.msk.f32.mxu1 %vm211_vm3, %v2812_v35  ;;  %v6063_v35 = vpack.c.bf16 %v3349_v1, %v3348_v52 }
0x1239   :  { %v6371_v32 = vpop.eup %6370 }
0x123a   :  { %v2813_v19 = vmul.f32 %v7395_v54, %v6371_v32  ;;  %6064 = vmatprep.subr.bf16.mxu0 %v6063_v35 }
0x123b   :  { %6066 = vmatpush3.bf16.msra.mxu0 %v6063_v35 }
0x123c   :  { %5770 = vmatmul.mubr.msk.f32.gmra.mrb[34].mxu1 %vm211_vm3, %v2813_v19 }
0x123d   :  { %v6373_v61 = vpop.eup %6372 }
0x123e   :  { %v5789_v42 = vpop.f32.mrb[38].mxu0  ;;  %v2814_v45 = vmul.f32 %v7399_v59, %v6373_v61 }
0x123f   :  { %6376 = vrcp.f32 %v5789_v42  ;;  %v3235_v4 = vpop.f32.mrb[39].mxu0 }
0x1240   :  { %6378 = vrcp.f32 %v3235_v4  ;;  %5772 = vmatprep.mubr.msk.f32.mxu1 %vm211_vm3, %v2814_v45 }
0x1241   :  { %v6375_v15 = vpop.eup %6374 }
0x1242   :  { %v5792_v53 = vpop.f32.mrb[40].mxu0  ;;  %v2815_v13 = vmul.f32 %v7403_v60, %v6375_v15 }
0x1243   :  { %6380 = vrcp.f32 %v5792_v53  ;;  %v3245_v23 = vpop.f32.mrb[41].mxu0 }
0x1244   :  { %5773 = vmatmul.mubr.msk.f32.gmra.mrb[36].mxu1 %vm211_vm3, %v2815_v13  ;;  %6382 = vrcp.f32 %v3245_v23  ;;  %v5245_v13 = vld [vmem:[#allocation8 + $0x80] ss:$0 sm:$0xff] }
0x1249   :  { %v6377_v54 = vpop.eup %6376 }
0x124a   :  { %v6379_v49 = vpop.eup %6378  ;;  %v5795_v0 = vpop.f32.mrb[42].mxu0  ;;  %3277 = vperm.xlu1 %6208, %v6377_v54  }
0x124b   :  { %6384 = vrcp.f32 %v5795_v0  ;;  %v3255_v59 = vpop.f32.mrb[43].mxu0  ;;  %3272 = vperm.xlu0 %6207, %v6379_v49  }
0x124c   :  { %6386 = vrcp.f32 %v3255_v59 }
0x124d   :  { %v6381_v28 = vpop.eup %6380 }
0x124e   :  { %3287 = vperm.xlu1 %6208, %v6381_v28   ;;  %v6383_v29 = vpop.eup %6382 }
0x1252   :  { %3282 = vperm.xlu1 %6208, %v6383_v29  }
0x1255   :  { %v6385_v33 = vpop.eup %6384 }
0x1256   :  { %v6387_v40 = vpop.eup %6386  ;;  %3297 = vperm.xlu0 %6207, %v6385_v33  }
0x1257   :  { %3292 = vperm.xlu1 %6208, %v6387_v40  }
0x12c9   :  { %v3278_v62 = vpop.permute.xlu1 %3277 }
0x12ca   :  { %v3273_v55 = vpop.permute.xlu0 %3272  ;;  %v3301_v8 = vmul.f32 %v5789_v42, %v3278_v62 }
0x12cb   :  { %v3300_v10 = vmul.f32 %v3273_v55, %v3235_v4 }
0x12cd   :  { %v3288_v16 = vpop.permute.xlu1 %3287 }
0x12ce   :  { %v3303_v12 = vmul.f32 %v5792_v53, %v3288_v16 }
0x12d1   :  { %v3283_v56 = vpop.permute.xlu1 %3282 }
0x12d2   :  { %v3302_v20 = vmul.f32 %v3283_v56, %v3245_v23 }
0x12d5   :  { %v3298_v9 = vpop.permute.xlu0 %3297 }
0x12d6   :  { %v3293_v63 = vpop.permute.xlu1 %3292  ;;  %v3305_v11 = vmul.f32 %v5795_v0, %v3298_v9 }
0x12d7   :  { %v3304_v47 = vmul.f32 %v3293_v63, %v3255_v59 }
0x1309   :  { %v5768_v60 = vpop.f32.mrb[32].mxu1 }
0x130a   :  { %6388 = vrcp.f32 %v5768_v60  ;;  %v2906_v36 = vpop.f32.mrb[33].mxu1 }
0x130b   :  { %6390 = vrcp.f32 %v2906_v36 }
0x130f   :  { %v7444_v37 = vpop.f32.mrb[34].mxu1 }
0x1310   :  { %6392 = vrcp.f32 %v7444_v37  ;;  %v7447_v39 = vpop.f32.mrb[35].mxu1 }
0x1311   :  { %6394 = vrcp.f32 %v7447_v39 }
0x1314   :  { %v6389_v43 = vpop.eup %6388 }
0x1315   :  { %v6391_v48 = vpop.eup %6390  ;;  %2948 = vperm.xlu0 %6207, %v6389_v43  }
0x1316   :  { %2943 = vperm.xlu1 %6208, %v6391_v48  }
0x1317   :  { %v7450_v57 = vpop.f32.mrb[36].mxu1 }
0x1318   :  { %6396 = vrcp.f32 %v7450_v57  ;;  %v7453_v17 = vpop.f32.mrb[37].mxu1 }
0x1319   :  { %6398 = vrcp.f32 %v7453_v17 }
0x131a   :  { %v6393_v21 = vpop.eup %6392 }
0x131b   :  { %v6395_v44 = vpop.eup %6394  ;;  %2958 = vperm.xlu0 %6207, %v6393_v21  }
0x131c   :  { %2953 = vperm.xlu1 %6208, %v6395_v44  }
0x1322   :  { %v6397_v2 = vpop.eup %6396 }
0x1323   :  { %v6399_v3 = vpop.eup %6398  ;;  %2968 = vperm.xlu0 %6207, %v6397_v2  }
0x1324   :  { %2963 = vperm.xlu1 %6208, %v6399_v3  }
0x1327   :  { %3314 = vrot.lane.b32.xlu0 %v3301_v8, %s6611_s28 }
0x1328   :  { %3312 = vrot.lane.b32.xlu1 %v3300_v10, %s6611_s28  ;;  %6209 = vset.pattern.permute.xlu0 %v6620_v6 }
0x1329   :  { %6210 = vset.pattern.permute.xlu1 %v6619_v50 }
0x132b   :  { %3318 = vrot.lane.b32.xlu0 %v3303_v12, %s6611_s28 }
0x132c   :  { %3316 = vrot.lane.b32.xlu1 %v3302_v20, %s6611_s28 }
0x132f   :  { %3322 = vrot.lane.b32.xlu0 %v3305_v11, %s6611_s28 }
0x1330   :  { %3320 = vrot.lane.b32.xlu1 %v3304_v47, %s6611_s28 }
0x1394   :  { %v2949_v32 = vpop.permute.xlu0 %2948 }
0x1395   :  { %v2944_v19 = vpop.permute.xlu1 %2943  ;;  %v2972_v15 = vmul.f32 %v5768_v60, %v2949_v32 }
0x1396   :  { %v2971_v53 = vmul.f32 %v2944_v19, %v2906_v36 }
0x139a   :  { %v2959_v61 = vpop.permute.xlu0 %2958 }
0x139b   :  { %v2954_v42 = vpop.permute.xlu1 %2953  ;;  %v2974_v59 = vmul.f32 %v7444_v37, %v2959_v61 }
0x139c   :  { %v2973_v29 = vmul.f32 %v2954_v42, %v7447_v39 }
0x13a2   :  { %v2969_v45 = vpop.permute.xlu0 %2968 }
0x13a3   :  { %v2964_v4 = vpop.permute.xlu1 %2963  ;;  %v2976_v48 = vmul.f32 %v7450_v57, %v2969_v45 }
0x13a4   :  { %v2975_v21 = vmul.f32 %v2964_v4, %v7453_v17 }
0x13a6   :  { %v3315_v23 = vpop.permute.xlu0 %3314 }
0x13a7   :  { %v3331_v54 = vsel %vm641_vm5, %v2972_v15, %v3315_v23  ;;  %v3313_v49 = vpop.permute.xlu1 %3312 }
0x13a8   :  { %v3330_v0 = vsel %vm641_vm5, %v2971_v53, %v3313_v49  ;;  %v3341_v33 = vadd.f32 %v5245_v13, %v3331_v54 }
0x13a9   :  { %v3340_v28 = vadd.f32 %v5245_v13, %v3330_v0 }
0x13aa   :  { %v3319_v40 = vpop.permute.xlu0 %3318 }
0x13ab   :  { %v3333_v43 = vsel %vm641_vm5, %v2974_v59, %v3319_v40  ;;  %5800 = vmatprep.mubr.msk.f32.mxu1 %vm68_vm2, %v3340_v28  ;;  %v3317_v60 = vpop.permute.xlu1 %3316 }
0x13ac   :  { %v3332_v36 = vsel %vm641_vm5, %v2973_v29, %v3317_v60  ;;  %5801 = vmatmul.mubr.msk.f32.vlgmr.msra.gmra.mrb[38].mxu1 %vm68_vm2, %v3341_v33  ;;  %v3343_v37 = vadd.f32 %v5245_v13, %v3333_v43 }
0x13ad   :  { %v3342_v62 = vadd.f32 %v5245_v13, %v3332_v36 }
0x13ae   :  { %v3323_v44 = vpop.permute.xlu0 %3322 }
0x13af   :  { %v3335_v39 = vsel %vm641_vm5, %v2976_v48, %v3323_v44  ;;  %v3321_v24 = vpop.permute.xlu1 %3320  ;;  %5803 = vmatprep.mubr.msk.f32.mxu1 %vm68_vm2, %v3342_v62 }
0x13b0   :  { %v3334_v25 = vsel %vm641_vm5, %v2975_v21, %v3321_v24  ;;  %5804 = vmatmul.mubr.msk.f32.gmra.mrb[40].mxu1 %vm68_vm2, %v3343_v37  ;;  %v3345_v16 = vadd.f32 %v5245_v13, %v3335_v39 }
0x13b1   :  { %v3344_v26 = vadd.f32 %v5245_v13, %v3334_v25 }
0x13b3   :  { %5806 = vmatprep.mubr.msk.f32.mxu1 %vm68_vm2, %v3344_v26 }
0x13b4   :  { %5807 = vmatmul.mubr.msk.f32.gmra.mrb[42].mxu1 %vm68_vm2, %v3345_v16 }
0x147f   :  { %v7480_v57 = vpop.f32.mrb[38].mxu1 }
0x1480   :  { %v3716_v17 = vsel %vm641_vm5, %v7480_v57, 1.0  ;;  %v7484_v2 = vpop.f32.mrb[39].mxu1 }
0x1481   :  { %v6215_v3 = vpack.i.bf16 %v7480_v57, %v7484_v2  ;;  %v3715_v55 = vsel %vm641_vm5, %v7484_v2, 1.0  ;;  %5813 = vmatprep.mubr.msk.f32.mxu0 %vm68_vm2, %v7484_v2 }
0x1482   :  { %5814 = vmatmul.mubr.msk.f32.vlgmr.msra.gmra.mrb[44].mxu0 %vm68_vm2, %v7480_v57  ;;  %v6067_v8 = vpack.c.bf16 %v3716_v17, %v3715_v55 }
0x1483   :  { %v7494_v56 = vpop.f32.mrb[40].mxu1 }
0x1484   :  { %v3718_v10 = vsel %vm641_vm5, %v7494_v56, 1.0  ;;  %v7498_v12 = vpop.f32.mrb[41].mxu1  ;;  %6068 = vmatprep.subr.bf16.mxu1 %v6067_v8 }
0x1485   :  { %v6220_v20 = vpack.i.bf16 %v7494_v56, %v7498_v12  ;;  %v3717_v9 = vsel %vm641_vm5, %v7498_v12, 1.0  ;;  %5816 = vmatprep.mubr.msk.f32.mxu0 %vm68_vm2, %v7498_v12  ;;  %6070 = vmatpush3.bf16.msra.mxu1 %v6067_v8 }
0x1486   :  { %5817 = vmatmul.mubr.msk.f32.gmra.mrb[46].mxu0 %vm68_vm2, %v7494_v56  ;;  %v6071_v63 = vpack.c.bf16 %v3718_v10, %v3717_v9 }
0x1487   :  { %v7508_v11 = vpop.f32.mrb[42].mxu1 }
0x1488   :  { %v3720_v47 = vsel %vm641_vm5, %v7508_v11, 1.0  ;;  %v7512_v52 = vpop.f32.mrb[43].mxu1  ;;  %6072 = vmatprep.subr.bf16.mxu1 %v6071_v63 }
0x1489   :  { %v6225_v1 = vpack.i.bf16 %v7508_v11, %v7512_v52  ;;  %v3719_v35 = vsel %vm641_vm5, %v7512_v52, 1.0  ;;  %5819 = vmatprep.mubr.msk.f32.mxu0 %vm68_vm2, %v7512_v52  ;;  %6074 = vmatpush3.bf16.msra.mxu1 %v6071_v63 }
0x148a   :  { %5820 = vmatmul.mubr.msk.f32.gmra.mrb[48].mxu0 %vm68_vm2, %v7508_v11  ;;  %v6075_v32 = vpack.c.bf16 %v3720_v47, %v3719_v35 }
0x148c   :  { %6076 = vmatprep.subr.bf16.mxu1 %v6075_v32 }
0x148d   :  { %6078 = vmatpush3.bf16.msra.mxu1 %v6075_v32 }
0x1555   :  { %v7522_v19 = vpop.f32.mrb[44].mxu0 }
0x1556   :  { %3616 = vperm.xlu1 %6210, %v7522_v19   ;;  %3878 = vrot.lane.b32.xlu0 %v7522_v19, %s6621_s27  ;;  %v7527_v61 = vpop.f32.mrb[45].mxu0 }
0x1559   :  { %v7529_v42 = vpop.f32.mrb[46].mxu0 }
0x155a   :  { %3931 = vperm.xlu0 %6209, %v7522_v19   ;;  %3876 = vrot.lane.b32.xlu1 %v7527_v61, %s6621_s27  ;;  %v7534_v45 = vpop.f32.mrb[47].mxu0 }
0x155b   :  { %6211 = vset.pattern.permute.xlu1 %v6620_v6 }
0x155d   :  { %v7537_v4 = vpop.f32.mrb[48].mxu0 }
0x155e   :  { %3927 = vperm.xlu1 %6211, %v7527_v61   ;;  %3882 = vrot.lane.b32.xlu0 %v7529_v42, %s6621_s27  ;;  %v7542_v15 = vpop.f32.mrb[49].mxu0 }
0x1562   :  { %6212 = vset.pattern.permute.xlu1 %v6619_v50  ;;  %3886 = vrot.lane.b32.xlu0 %v7537_v4, %s6621_s27 }
0x1563   :  { %3611 = vperm.xlu1 %6212, %v7527_v61  }
0x1566   :  { %3943 = vperm.xlu0 %6209, %v7542_v15  }
0x1567   :  { %6213 = vset.pattern.permute.xlu1 %v6620_v6 }
0x1568   :  { %3939 = vperm.xlu1 %6213, %v7529_v42  }
0x156c   :  { %3880 = vrot.lane.b32.xlu1 %v7534_v45, %s6621_s27 }
0x1570   :  { %3935 = vperm.xlu1 %6213, %v7534_v45  }
0x1574   :  { %3947 = vperm.xlu1 %6213, %v7537_v4  }
0x1578   :  { %3884 = vrot.lane.b32.xlu1 %v7542_v15, %s6621_s27 }
0x1579   :  { %6214 = vset.pattern.permute.xlu1 %v6619_v50 }
0x157c   :  { %3621 = vperm.xlu1 %6214, %v7534_v45  }
0x1580   :  { %3626 = vperm.xlu1 %6214, %v7529_v42  }
0x1584   :  { %3636 = vperm.xlu1 %6214, %v7537_v4  }
0x1588   :  { %3631 = vperm.xlu1 %6214, %v7542_v15  }
0x15c8   :  { %v3879_v23 = vpop.permute.xlu0 %3878 }
0x15d5   :  { %v7562_v53 = vpop.permute.xlu1 %3616 }
0x15d9   :  { %v3877_v13 = vpop.permute.xlu1 %3876  ;;  %v3932_v59 = vpop.permute.xlu0 %3931 }
0x15da   :  { %3894 = vxpose.xlu0.b32.start [1/6] (short) (narrow) %v3877_v13, 8 }
0x15dd   :  { %v3928_v54 = vpop.permute.xlu1 %3927  ;;  %v3883_v29 = vpop.permute.xlu0 %3882 }
0x15de   :  { %3895 = vxpose.xlu0.b32.cont [2/6] (short) (narrow) %v3879_v23, 8 }
0x15e1   :  { %v3887_v60 = vpop.permute.xlu0 %3886 }
0x15e2   :  { %v7564_v49 = vpop.permute.xlu1 %3611 }
0x15e5   :  { %v3944_v36 = vpop.permute.xlu0 %3943 }
0x15e7   :  { %v3940_v0 = vpop.permute.xlu1 %3939 }
0x15eb   :  { %v3881_v28 = vpop.permute.xlu1 %3880 }
0x15ec   :  { %3896 = vxpose.xlu0.b32.cont [3/6] (short) (narrow) %v3881_v28, 8 }
0x15ef   :  { %v3936_v33 = vpop.permute.xlu1 %3935 }
0x15f0   :  { %3897 = vxpose.xlu0.b32.cont [4/6] (short) (narrow) %v3883_v29, 8 }
0x15f3   :  { %v3948_v40 = vpop.permute.xlu1 %3947 }
0x15f7   :  { %v3885_v43 = vpop.permute.xlu1 %3884 }
0x15f8   :  { %3898 = vxpose.xlu0.b32.cont [5/6] (short) (narrow) %v3885_v43, 8 }
0x15fb   :  { %v7608_v57 = vpop.permute.xlu1 %3621 }
0x15fc   :  { %3899 = vxpose.xlu0.b32.end [6/6] (short) (narrow) %v3887_v60, 8 }
0x15ff   :  { %v7610_v2 = vpop.permute.xlu1 %3626 }
0x1625   :  { %6230 = vset.pattern.permute.xlu0 %v6623_v38 }
0x1668   :  { %v3910_v48 = vpop.trf.xlu0 }
0x1669   :  { %v3953_v62 = vrot.slane %v3910_v48, %v6838_v27 }
0x166b   :  { %v3955_v21 = vadd.f32 %v3953_v62, %v3932_v59  ;;  %v3954_v37 = vadd.f32 %v3953_v62, %v3928_v54  ;;  %v3956_v44 = vadd.f32 %v3953_v62, %v3936_v33  ;;  %v3957_v39 = vadd.f32 %v3953_v62, %v3940_v0 }
0x166c   :  { %v3958_v8 = vadd.f32 %v3953_v62, %v3944_v36  ;;  %v3959_v54 = vadd.f32 %v3953_v62, %v3948_v40 }
0x166d   :  { %vm3961_vm15 = vcmp.ge.f32.partialorder %v3955_v21, 0.0  ;;  %v3967_v24 = vmul.f32 0.2, %v3955_v21  ;;  %vm3960_vm14 = vcmp.ge.f32.partialorder %v3954_v37, 0.0  ;;  %v3966_v25 = vmul.f32 0.2, %v3954_v37 }
0x166e   :  { %vm3962_vm13 = vcmp.ge.f32.partialorder %v3956_v44, 0.0  ;;  %v3968_v26 = vmul.f32 0.2, %v3956_v44  ;;  %v3969_v55 = vmul.f32 0.2, %v3957_v39  ;;  %vm3963_vm9 = vcmp.ge.f32.partialorder %v3957_v39, 0.0 }
0x166f   :  { %v3973_v16 = vsel %vm3961_vm15, %v3955_v21, %v3967_v24  ;;  %v3972_v17 = vsel %vm3960_vm14, %v3954_v37, %v3966_v25  ;;  %v3970_v23 = vmul.f32 0.2, %v3958_v8  ;;  %vm3964_vm1 = vcmp.ge.f32.partialorder %v3958_v8, 0.0 }
0x1670   :  { %v3979_v10 = vsel %vm1864_vm0, %v3973_v16, -1e+30  ;;  %v3978_v9 = vsel %vm1863_vm4, %v3972_v17, -1e+30  ;;  %v3974_v63 = vsel %vm3962_vm13, %v3956_v44, %v3968_v26  ;;  %v3975_v13 = vsel %vm3963_vm9, %v3957_v39, %v3969_v55 }
0x1671   :  { %v3987_v47 = vsel %vm211_vm3, %v3979_v10, -inf  ;;  %v3984_v35 = vsel %vm211_vm3, %v3978_v9, -inf  ;;  %v3980_v32 = vsel %vm1865_vm11, %v3974_v63, -1e+30  ;;  %v3981_v59 = vsel %vm1866_vm8, %v3975_v13, -1e+30 }
0x1672   :  { %3988 = vmax.xlane.f32.xlu0 %v3987_v47  ;;  %3985 = vmax.xlane.f32.xlu1 %v3984_v35  ;;  %v3990_v0 = vsel %vm211_vm3, %v3980_v32, -inf  ;;  %v3976_v28 = vsel %vm3964_vm1, %v3958_v8, %v3970_v23  ;;  %v3971_v29 = vmul.f32 0.2, %v3959_v54  ;;  %vm3965_vm15 = vcmp.ge.f32.partialorder %v3959_v54, 0.0 }
0x1673   :  { %v3993_v33 = vsel %vm211_vm3, %v3981_v59, -inf  ;;  %v3982_v43 = vsel %vm1867_vm12, %v3976_v28, -1e+30  ;;  %vm7935_vm14 = vcmp.gt.f32.partialorder %v7108_v7, 0.0 }
0x1674   :  { %v3977_v60 = vsel %vm3965_vm15, %v3959_v54, %v3971_v29  ;;  %v3996_v36 = vsel %vm211_vm3, %v3982_v43, -inf }
0x1675   :  { %v7585_v40 = vsel %vm7935_vm14, %v3977_v60, -1e+30 }
0x1676   :  { %3991 = vmax.xlane.f32.xlu1 %v3990_v0  ;;  %v3999_v48 = vsel %vm211_vm3, %v7585_v40, -inf }
0x167a   :  { %3994 = vmax.xlane.f32.xlu1 %v3993_v33  ;;  %v7623_v33 = vld [vmem:[#allocation3 + $0x30] sm:$0xff] }
0x167e   :  { %3997 = vmax.xlane.f32.xlu1 %v3996_v36 }
0x1682   :  { %4000 = vmax.xlane.f32.xlu1 %v3999_v48  ;;  %v7627_v48 = vld [vmem:[#allocation3 + $0x38] sm:$0xff] }
0x1688   :  { %6216 = vrot.lane.b32.xlu0 %v6215_v3, %s6622_s29  ;;  %v7612_v3 = vpop.permute.xlu1 %3636 }
0x168c   :  { %6221 = vrot.lane.b32.xlu0 %v6220_v20, %s6622_s29  ;;  %v7614_v56 = vpop.permute.xlu1 %3631 }
0x1690   :  { %6226 = vrot.lane.b32.xlu0 %v6225_v1, %s6622_s29 }
0x16b5   :  { %3577 = vxpose.xlu1.b32.start [1/6] (short) (narrow) %v7527_v61, 8 }
0x16b9   :  { %3578 = vxpose.xlu1.b32.cont [2/6] (short) (narrow) %v7522_v19, 8 }
0x16bd   :  { %3579 = vxpose.xlu1.b32.cont [3/6] (short) (narrow) %v7534_v45, 8 }
0x16c1   :  { %3580 = vxpose.xlu1.b32.cont [4/6] (short) (narrow) %v7529_v42, 8 }
0x16c5   :  { %3581 = vxpose.xlu1.b32.cont [5/6] (short) (narrow) %v7542_v15, 8 }
0x16c9   :  { %3582 = vxpose.xlu1.b32.end [6/6] (short) (narrow) %v7537_v4, 8 }
0x16e7   :  { %6231 = vset.pattern.permute.xlu1 %v6623_v38 }
0x16ff   :  { %v3989_v12 = vpop.xlane.xlu0 %3988  ;;  %v3986_v20 = vpop.xlane.xlu1 %3985 }
0x1700   :  { %v4003_v11 = vsub.f32 %v3979_v10, %v3989_v12  ;;  %v4002_v52 = vsub.f32 %v3978_v9, %v3986_v20  ;;  %v7630_v20 = vld [vmem:[#allocation3 + $0x40] sm:$0xff] }
0x1702   :  { %v4010_v1 = vmul.f32 1.442695, %v4003_v11  ;;  %v4008_v19 = vmul.f32 1.442695, %v4002_v52  ;;  %v7635_v52 = vld [vmem:[#allocation3 + $0x48] sm:$0xff] }
0x1703   :  { %v6217_v61 = vpop.permute.xlu0 %6216  ;;  %v3992_v42 = vpop.xlane.xlu1 %3991 }
0x1704   :  { %v6219_v45 = vunpack.i.h.bf16 %v6217_v61  ;;  %v6218_v4 = vunpack.i.l.bf16 %v6217_v61  ;;  %v4004_v15 = vsub.f32 %v3980_v32, %v3992_v42  ;;  %6400 = vpow2.f32 %v4008_v19  ;;  %v7639_v61 = vld [vmem:[#allocation3 + $0x50] sm:$0xff] }
0x1705   :  { %6402 = vpow2.f32 %v4010_v1 }
0x1706   :  { %v4045_v38 = vsel %vm641_vm5, %v6219_v45, 1.0  ;;  %v4044_v62 = vsel %vm641_vm5, %v6218_v4, 1.0  ;;  %v4012_v21 = vmul.f32 1.442695, %v4004_v15  ;;  %v7643_v4 = vld [vmem:[#allocation3 + $0x58] sm:$0xff] }
0x1707   :  { %v6222_v37 = vpop.permute.xlu0 %6221  ;;  %v3995_v44 = vpop.xlane.xlu1 %3994  ;;  %v6079_v39 = vpack.c.bf16 %v4045_v38, %v4044_v62 }
0x1708   :  { %6404 = vpow2.f32 %v4012_v21  ;;  %v6224_v24 = vunpack.i.h.bf16 %v6222_v37  ;;  %v6223_v25 = vunpack.i.l.bf16 %v6222_v37  ;;  %v4005_v26 = vsub.f32 %v3981_v59, %v3995_v44 }
0x1709   :  { %6080 = vmatprep.subr.bf16.mxu0 %v6079_v39 }
0x170a   :  { %v4047_v16 = vsel %vm641_vm5, %v6224_v24, 1.0  ;;  %v4046_v17 = vsel %vm641_vm5, %v6223_v25, 1.0  ;;  %v4014_v55 = vmul.f32 1.442695, %v4005_v26  ;;  %6082 = vmatpush3.bf16.msra.mxu0 %v6079_v39 }
0x170b   :  { %v6227_v8 = vpop.permute.xlu0 %6226  ;;  %v3998_v10 = vpop.xlane.xlu1 %3997  ;;  %v6083_v9 = vpack.c.bf16 %v4047_v16, %v4046_v17 }
0x170c   :  { %6406 = vpow2.f32 %v4014_v55  ;;  %v6229_v63 = vunpack.i.h.bf16 %v6227_v8  ;;  %v6228_v47 = vunpack.i.l.bf16 %v6227_v8  ;;  %v4006_v35 = vsub.f32 %v3982_v43, %v3998_v10 }
0x170d   :  { %6084 = vmatprep.subr.bf16.mxu0 %v6083_v9 }
0x170e   :  { %v4049_v32 = vsel %vm641_vm5, %v6229_v63, 1.0  ;;  %v4048_v13 = vsel %vm641_vm5, %v6228_v47, 1.0  ;;  %v4016_v23 = vmul.f32 1.442695, %v4006_v35  ;;  %6086 = vmatpush3.bf16.msra.mxu0 %v6083_v9  ;;  %v6401_v54 = vpop.eup %6400 }
0x170f   :  { %v4001_v0 = vpop.xlane.xlu1 %4000  ;;  %v6087_v59 = vpack.c.bf16 %v4049_v32, %v4048_v13  ;;  %v6403_v28 = vpop.eup %6402  ;;  %v4020_v60 = vmul.f32 %v7623_v33, %v6401_v54 }
0x1710   :  { %6408 = vpow2.f32 %v4016_v23  ;;  %v4007_v29 = vsub.f32 %v7585_v40, %v4001_v0  ;;  %v4021_v12 = vmul.f32 %v7627_v48, %v6403_v28 }
0x1711   :  { %6088 = vmatprep.subr.bf16.mxu0 %v6087_v59  ;;  %5855 = vmatprep.mubr.msk.f32.mxu0 %vm211_vm3, %v4020_v60 }
0x1712   :  { %v6405_v43 = vpop.eup %6404  ;;  %v4018_v36 = vmul.f32 1.442695, %v4007_v29  ;;  %6090 = vmatpush3.bf16.msra.mxu0 %v6087_v59 }
0x1713   :  { %v4022_v11 = vmul.f32 %v7630_v20, %v6405_v43 }
0x1714   :  { %6410 = vpow2.f32 %v4018_v36 }
0x1715   :  { %5856 = vmatmul.mubr.msk.f32.vlgmr.msra.gmra.mrb[50].mxu0 %vm211_vm3, %v4021_v12 }
0x1716   :  { %v6407_v40 = vpop.eup %6406  ;;  %5858 = vmatprep.mubr.msk.f32.mxu0 %vm211_vm3, %v4022_v11 }
0x1717   :  { %v4023_v1 = vmul.f32 %v7635_v52, %v6407_v40 }
0x1719   :  { %5859 = vmatmul.mubr.msk.f32.gmra.mrb[52].mxu0 %vm211_vm3, %v4023_v1 }
0x171a   :  { %v6409_v19 = vpop.eup %6408 }
0x171b   :  { %v4024_v42 = vmul.f32 %v7639_v61, %v6409_v19 }
0x171d   :  { %5861 = vmatprep.mubr.msk.f32.mxu0 %vm211_vm3, %v4024_v42 }
0x171e   :  { %v6411_v45 = vpop.eup %6410 }
0x171f   :  { %v4025_v15 = vmul.f32 %v7643_v4, %v6411_v45 }
0x1721   :  { %5862 = vmatmul.mubr.msk.f32.gmra.mrb[54].mxu0 %vm211_vm3, %v4025_v15 }
0x1735   :  { %v3593_v38 = vpop.trf.xlu1 }
0x1736   :  { %v3642_v62 = vrot.slane %v3593_v38, %v6838_v27 }
0x1738   :  { %v3644_v21 = vadd.f32 %v3642_v62, %v7562_v53  ;;  %v3643_v37 = vadd.f32 %v3642_v62, %v7564_v49  ;;  %v3645_v44 = vadd.f32 %v3642_v62, %v7608_v57  ;;  %v3646_v39 = vadd.f32 %v3642_v62, %v7610_v2 }
0x1739   :  { %v3647_v8 = vadd.f32 %v3642_v62, %v7614_v56  ;;  %v3648_v56 = vadd.f32 %v3642_v62, %v7612_v3 }
0x173a   :  { %vm3650_vm13 = vcmp.ge.f32.partialorder %v3644_v21, 0.0  ;;  %v3656_v24 = vmul.f32 0.2, %v3644_v21  ;;  %vm3649_vm9 = vcmp.ge.f32.partialorder %v3643_v37, 0.0  ;;  %v3655_v25 = vmul.f32 0.2, %v3643_v37 }
0x173b   :  { %vm3651_vm1 = vcmp.ge.f32.partialorder %v3645_v44, 0.0  ;;  %v3657_v26 = vmul.f32 0.2, %v3645_v44  ;;  %v3658_v55 = vmul.f32 0.2, %v3646_v39  ;;  %vm3652_vm15 = vcmp.ge.f32.partialorder %v3646_v39, 0.0 }
0x173c   :  { %v3662_v16 = vsel %vm3650_vm13, %v3644_v21, %v3656_v24  ;;  %v3661_v17 = vsel %vm3649_vm9, %v3643_v37, %v3655_v25  ;;  %v3659_v47 = vmul.f32 0.2, %v3647_v8  ;;  %vm3653_vm14 = vcmp.ge.f32.partialorder %v3647_v8, 0.0 }
0x173d   :  { %v3668_v53 = vsel %vm1864_vm0, %v3662_v16, -1e+30  ;;  %v3667_v49 = vsel %vm1863_vm4, %v3661_v17, -1e+30  ;;  %v3663_v57 = vsel %vm3651_vm1, %v3645_v44, %v3657_v26  ;;  %v3664_v63 = vsel %vm3652_vm15, %v3646_v39, %v3658_v55 }
0x173e   :  { %v3676_v2 = vsel %vm211_vm3, %v3668_v53, -inf  ;;  %v3673_v10 = vsel %vm211_vm3, %v3667_v49, -inf  ;;  %v3669_v9 = vsel %vm1865_vm11, %v3663_v57, -1e+30  ;;  %v3670_v51 = vsel %vm1866_vm8, %v3664_v63, -1e+30 }
0x173f   :  { %3677 = vmax.xlane.f32.xlu1 %v3676_v2  ;;  %3674 = vmax.xlane.f32.xlu0 %v3673_v10  ;;  %v3679_v14 = vsel %vm211_vm3, %v3669_v9, -inf  ;;  %v3665_v35 = vsel %vm3653_vm14, %v3647_v8, %v3659_v47  ;;  %v3660_v32 = vmul.f32 0.2, %v3648_v56  ;;  %vm3654_vm0 = vcmp.ge.f32.partialorder %v3648_v56, 0.0 }
0x1740   :  { %v3682_v13 = vsel %vm211_vm3, %v3670_v51, -inf  ;;  %v3671_v22 = vsel %vm1867_vm12, %v3665_v35, -1e+30  ;;  %vm7936_vm4 = vcmp.gt.f32.partialorder %v7108_v7, 0.0  ;;  %vm4381_vm11 = vcmask 1041408  }
0x1741   :  { %v3666_v23 = vsel %vm3654_vm0, %v3648_v56, %v3660_v32  ;;  %v3685_v54 = vsel %vm211_vm3, %v3671_v22, -inf  ;;  %vm4618_vm8 = vcmask 7168   ;;  %vm4362_vm12 = vcmask 15360  }
0x1742   :  { %v3672_v3 = vsel %vm7936_vm4, %v3666_v23, -1e+30  ;;  %vm7937_vm1 = vcmp.gt.f32.partialorder %v6854_v46, 0.0  ;;  %vm7938_vm0 = vcmp.gt.f32.partialorder %v6867_v5, 0.0  ;;  %vm7939_vm4 = vcmp.gt.f32.partialorder %v6861_v58, 0.0 }
0x1743   :  { %3680 = vmax.xlane.f32.xlu0 %v3679_v14  ;;  %v3688_v0 = vsel %vm211_vm3, %v3672_v3, -inf }
0x1747   :  { %3683 = vmax.xlane.f32.xlu0 %v3682_v13 }
0x174b   :  { %3686 = vmax.xlane.f32.xlu0 %v3685_v54 }
0x174f   :  { %3689 = vmax.xlane.f32.xlu0 %v3688_v0  ;;  %v4246_v0 = vld [vmem:[#allocation8 + $0xb8] sm:$0xff] }
0x17cc   :  { %v3678_v41 = vpop.xlane.xlu1 %3677  ;;  %v3675_v59 = vpop.xlane.xlu0 %3674 }
0x17cd   :  { %v3692_v28 = vsub.f32 %v3668_v53, %v3678_v41  ;;  %v3691_v29 = vsub.f32 %v3667_v49, %v3675_v59 }
0x17cf   :  { %v3699_v60 = vmul.f32 1.442695, %v3692_v28  ;;  %v3697_v43 = vmul.f32 1.442695, %v3691_v29 }
0x17d0   :  { %v3681_v36 = vpop.xlane.xlu0 %3680 }
0x17d1   :  { %6412 = vpow2.f32 %v3699_v60  ;;  %v3693_v18 = vsub.f32 %v3669_v9, %v3681_v36 }
0x17d2   :  { %6414 = vpow2.f32 %v3697_v43 }
0x17d3   :  { %v3701_v12 = vmul.f32 1.442695, %v3693_v18 }
0x17d4   :  { %v3684_v11 = vpop.xlane.xlu0 %3683 }
0x17d5   :  { %6416 = vpow2.f32 %v3701_v12  ;;  %v3694_v40 = vsub.f32 %v3670_v51, %v3684_v11 }
0x17d7   :  { %v3703_v1 = vmul.f32 1.442695, %v3694_v40 }
0x17d8   :  { %v3687_v7 = vpop.xlane.xlu0 %3686 }
0x17d9   :  { %6418 = vpow2.f32 %v3703_v1  ;;  %v3695_v19 = vsub.f32 %v3671_v22, %v3687_v7 }
0x17db   :  { %v6413_v42 = vpop.eup %6412  ;;  %v3705_v45 = vmul.f32 1.442695, %v3695_v19 }
0x17dc   :  { %v6415_v15 = vpop.eup %6414  ;;  %v3710_v38 = vmul.f32 %v7627_v48, %v6413_v42  ;;  %v3690_v62 = vpop.xlane.xlu0 %3689  ;;  %v4247_v42 = vld [vmem:[#allocation8 + $0xc0] sm:$0x3] }
0x17dd   :  { %6420 = vpow2.f32 %v3705_v45  ;;  %v3696_v21 = vsub.f32 %v3672_v3, %v3690_v62  ;;  %v3709_v37 = vmul.f32 %v7623_v33, %v6415_v15  ;;  %v4245_v3 = vld [vmem:[#allocation8 + $0xb0] sm:$0xff]  ;;  %5877 = vmatprep.subr.msk.mxu0 %vm4381_vm11, %v4247_v42 }
0x17de   :  { %v6091_v41 = vpack.c.bf16 %v4246_v0, %v4245_v3  ;;  %5878 = vmatpush3.msk.msra.mxu0 %vm4381_vm11, %v4247_v42 }
0x17df   :  { %v6417_v44 = vpop.eup %6416  ;;  %v3707_v39 = vmul.f32 1.442695, %v3696_v21  ;;  %5834 = vmatprep.mubr.msk.f32.mxu1 %vm211_vm3, %v3709_v37 }
0x17e0   :  { %5835 = vmatmul.mubr.msk.f32.vlgmr.msra.gmra.mrb[44].mxu1 %vm211_vm3, %v3710_v38  ;;  %v3711_v24 = vmul.f32 %v7630_v20, %v6417_v44  ;;  %6092 = vmatprep.subr.bf16.mxu1 %v6091_v41 }
0x17e1   :  { %6422 = vpow2.f32 %v3707_v39  ;;  %6094 = vmatpush3.bf16.msra.mxu1 %v6091_v41 }
0x17e2   :  { %5837 = vmatprep.mubr.msk.f32.mxu1 %vm211_vm3, %v3711_v24  ;;  %v5270_v24 = vld [vmem:[#allocation8 + $0xa8] ss:$0 sm:$0xff] }
0x17e3   :  { %v6419_v25 = vpop.eup %6418 }
0x17e4   :  { %v3712_v26 = vmul.f32 %v7635_v52, %v6419_v25 }
0x17e6   :  { %5838 = vmatmul.mubr.msk.f32.gmra.mrb[46].mxu1 %vm211_vm3, %v3712_v26 }
0x17e7   :  { %v6421_v48 = vpop.eup %6420 }
0x17e8   :  { %v5857_v16 = vpop.f32.mrb[50].mxu0  ;;  %v3713_v33 = vmul.f32 %v7639_v61, %v6421_v48 }
0x17e9   :  { %6424 = vrcp.f32 %v5857_v16  ;;  %v4134_v17 = vpop.f32.mrb[51].mxu0 }
0x17ea   :  { %6426 = vrcp.f32 %v4134_v17  ;;  %5840 = vmatprep.mubr.msk.f32.mxu1 %vm211_vm3, %v3713_v33 }
0x17eb   :  { %v6423_v55 = vpop.eup %6422 }
0x17ec   :  { %v5860_v8 = vpop.f32.mrb[52].mxu0  ;;  %v3714_v20 = vmul.f32 %v7643_v4, %v6423_v55 }
0x17ed   :  { %6428 = vrcp.f32 %v5860_v8  ;;  %v4144_v53 = vpop.f32.mrb[53].mxu0 }
0x17ee   :  { %5841 = vmatmul.mubr.msk.f32.gmra.mrb[48].mxu1 %vm211_vm3, %v3714_v20  ;;  %6430 = vrcp.f32 %v4144_v53 }
0x17f3   :  { %v6425_v52 = vpop.eup %6424 }
0x17f4   :  { %v6427_v49 = vpop.eup %6426  ;;  %v5863_v57 = vpop.f32.mrb[54].mxu0  ;;  %4176 = vperm.xlu1 %6231, %v6425_v52  }
0x17f5   :  { %6432 = vrcp.f32 %v5863_v57  ;;  %v4154_v61 = vpop.f32.mrb[55].mxu0  ;;  %4171 = vperm.xlu0 %6230, %v6427_v49  }
0x17f6   :  { %6434 = vrcp.f32 %v4154_v61 }
0x17f7   :  { %v6429_v2 = vpop.eup %6428 }
0x17f8   :  { %4186 = vperm.xlu1 %6231, %v6429_v2   ;;  %v6431_v10 = vpop.eup %6430 }
0x17fc   :  { %4181 = vperm.xlu1 %6231, %v6431_v10  }
0x17ff   :  { %v6433_v9 = vpop.eup %6432 }
0x1800   :  { %v6435_v63 = vpop.eup %6434  ;;  %4196 = vperm.xlu0 %6230, %v6433_v9  }
0x1801   :  { %4191 = vperm.xlu1 %6231, %v6435_v63  }
0x1873   :  { %v4177_v22 = vpop.permute.xlu1 %4176 }
0x1874   :  { %v4172_v60 = vpop.permute.xlu0 %4171  ;;  %v4200_v43 = vmul.f32 %v5857_v16, %v4177_v22 }
0x1875   :  { %v4199_v18 = vmul.f32 %v4172_v60, %v4134_v17 }
0x1877   :  { %v4187_v59 = vpop.permute.xlu1 %4186 }
0x1878   :  { %v4202_v12 = vmul.f32 %v5860_v8, %v4187_v59 }
0x187b   :  { %v4182_v36 = vpop.permute.xlu1 %4181 }
0x187c   :  { %v4201_v11 = vmul.f32 %v4182_v36, %v4144_v53 }
0x187f   :  { %v4197_v40 = vpop.permute.xlu0 %4196 }
0x1880   :  { %v4192_v1 = vpop.permute.xlu1 %4191  ;;  %v4204_v7 = vmul.f32 %v5863_v57, %v4197_v40 }
0x1881   :  { %v4203_v19 = vmul.f32 %v4192_v1, %v4154_v61 }
0x18b3   :  { %v5836_v4 = vpop.f32.mrb[44].mxu1 }
0x18b4   :  { %6436 = vrcp.f32 %v5836_v4  ;;  %v3805_v47 = vpop.f32.mrb[45].mxu1 }
0x18b5   :  { %6438 = vrcp.f32 %v3805_v47 }
0x18b9   :  { %v7684_v56 = vpop.f32.mrb[46].mxu1 }
0x18ba   :  { %6440 = vrcp.f32 %v7684_v56  ;;  %v3815_v14 = vpop.f32.mrb[47].mxu1 }
0x18bb   :  { %6442 = vrcp.f32 %v3815_v14 }
0x18be   :  { %v6437_v51 = vpop.eup %6436 }
0x18bf   :  { %v6439_v35 = vpop.eup %6438  ;;  %3847 = vperm.xlu0 %6230, %v6437_v51  }
0x18c0   :  { %3842 = vperm.xlu1 %6231, %v6439_v35  }
0x18c1   :  { %v7687_v32 = vpop.f32.mrb[48].mxu1 }
0x18c2   :  { %6444 = vrcp.f32 %v7687_v32  ;;  %v7690_v13 = vpop.f32.mrb[49].mxu1 }
0x18c3   :  { %6446 = vrcp.f32 %v7690_v13 }
0x18c4   :  { %v6441_v23 = vpop.eup %6440 }
0x18c5   :  { %v6443_v54 = vpop.eup %6442  ;;  %3857 = vperm.xlu0 %6230, %v6441_v23  }
0x18c6   :  { %3852 = vperm.xlu1 %6231, %v6443_v54  }
0x18cc   :  { %v6445_v28 = vpop.eup %6444 }
0x18cd   :  { %v6447_v29 = vpop.eup %6446  ;;  %3867 = vperm.xlu0 %6230, %v6445_v28  }
0x18ce   :  { %3862 = vperm.xlu1 %6231, %v6447_v29  }
0x18d1   :  { %4213 = vrot.lane.b32.xlu0 %v4200_v43, %s6611_s28 }
0x18d2   :  { %4211 = vrot.lane.b32.xlu1 %v4199_v18, %s6611_s28  ;;  %6235 = vset.pattern.permute.xlu0 %v6620_v6 }
0x18d3   :  { %6232 = vset.pattern.permute.xlu1 %v6619_v50 }
0x18d5   :  { %4217 = vrot.lane.b32.xlu0 %v4202_v12, %s6611_s28 }
0x18d6   :  { %4215 = vrot.lane.b32.xlu1 %v4201_v11, %s6611_s28 }
0x18d9   :  { %4221 = vrot.lane.b32.xlu0 %v4204_v7, %s6611_s28 }
0x18da   :  { %4219 = vrot.lane.b32.xlu1 %v4203_v19, %s6611_s28  ;;  %s6624_s28 = smov 127  }
0x193e   :  { %v3848_v45 = vpop.permute.xlu0 %3847 }
0x193f   :  { %v3843_v15 = vpop.permute.xlu1 %3842  ;;  %v3871_v44 = vmul.f32 %v5836_v4, %v3848_v45 }
0x1940   :  { %v3870_v39 = vmul.f32 %v3843_v15, %v3805_v47 }
0x1944   :  { %v3858_v38 = vpop.permute.xlu0 %3857 }
0x1945   :  { %v3853_v62 = vpop.permute.xlu1 %3852  ;;  %v3873_v33 = vmul.f32 %v7684_v56, %v3858_v38 }
0x1946   :  { %v3872_v55 = vmul.f32 %v3853_v62, %v3815_v14 }
0x194c   :  { %v3868_v21 = vpop.permute.xlu0 %3867 }
0x194d   :  { %v3863_v37 = vpop.permute.xlu1 %3862  ;;  %v3875_v57 = vmul.f32 %v7687_v32, %v3868_v21 }
0x194e   :  { %v3874_v2 = vmul.f32 %v3863_v37, %v7690_v13 }
0x1950   :  { %v4214_v25 = vpop.permute.xlu0 %4213 }
0x1951   :  { %v4230_v26 = vsel %vm641_vm5, %v3871_v44, %v4214_v25  ;;  %v4212_v48 = vpop.permute.xlu1 %4211 }
0x1952   :  { %v4229_v16 = vsel %vm641_vm5, %v3870_v39, %v4212_v48  ;;  %v4240_v8 = vadd.f32 %v5270_v24, %v4230_v26 }
0x1953   :  { %v4239_v17 = vadd.f32 %v5270_v24, %v4229_v16 }
0x1954   :  { %v4218_v20 = vpop.permute.xlu0 %4217 }
0x1955   :  { %v4232_v53 = vsel %vm641_vm5, %v3873_v33, %v4218_v20  ;;  %5868 = vmatprep.mubr.msk.f32.mxu1 %vm68_vm2, %v4239_v17  ;;  %v4216_v52 = vpop.permute.xlu1 %4215 }
0x1956   :  { %v4231_v49 = vsel %vm641_vm5, %v3872_v55, %v4216_v52  ;;  %5869 = vmatmul.mubr.msk.f32.vlgmr.msra.gmra.mrb[50].mxu1 %vm68_vm2, %v4240_v8  ;;  %v4242_v10 = vadd.f32 %v5270_v24, %v4232_v53 }
0x1957   :  { %v4241_v61 = vadd.f32 %v5270_v24, %v4231_v49 }
0x1958   :  { %v4222_v9 = vpop.permute.xlu0 %4221 }
0x1959   :  { %v4234_v63 = vsel %vm641_vm5, %v3875_v57, %v4222_v9  ;;  %v4220_v4 = vpop.permute.xlu1 %4219  ;;  %5871 = vmatprep.mubr.msk.f32.mxu1 %vm68_vm2, %v4241_v61 }
0x195a   :  { %v4233_v47 = vsel %vm641_vm5, %v3874_v2, %v4220_v4  ;;  %5872 = vmatmul.mubr.msk.f32.gmra.mrb[52].mxu1 %vm68_vm2, %v4242_v10  ;;  %v4244_v14 = vadd.f32 %v5270_v24, %v4234_v63 }
0x195b   :  { %v4243_v56 = vadd.f32 %v5270_v24, %v4233_v47 }
0x195d   :  { %5874 = vmatprep.mubr.msk.f32.mxu1 %vm68_vm2, %v4243_v56 }
0x195e   :  { %5875 = vmatmul.mubr.msk.f32.gmra.mrb[54].mxu1 %vm68_vm2, %v4244_v14 }
0x1a29   :  { %v7716_v51 = vpop.f32.mrb[50].mxu1 }
0x1a2a   :  { %v4620_v35 = vsel %vm4618_vm8, %v7716_v51, 1.0  ;;  %v7720_v32 = vpop.f32.mrb[51].mxu1 }
0x1a2b   :  { %v6240_v13 = vpack.i.bf16 %v7716_v51, %v7720_v32  ;;  %v4619_v22 = vsel %vm4618_vm8, %v7720_v32, 1.0  ;;  %5879 = vmatprep.mubr.msk.f32.mxu0 %vm4362_vm12, %v7720_v32 }
0x1a2c   :  { %5880 = vmatmul.mubr.msk.f32.vlgmr.msra.gmra.mrb[56].mxu0 %vm4362_vm12, %v7716_v51  ;;  %v6095_v23 = vpack.c.bf16 %v4620_v35, %v4619_v22 }
0x1a2d   :  { %v5873_v54 = vpop.f32.mrb[52].mxu1 }
0x1a2e   :  { %v4622_v3 = vsel %vm4618_vm8, %v5873_v54, 1.0  ;;  %v4343_v0 = vpop.f32.mrb[53].mxu1  ;;  %6096 = vmatprep.subr.bf16.mxu1 %v6095_v23 }
0x1a2f   :  { %v6245_v41 = vpack.i.bf16 %v5873_v54, %v4343_v0  ;;  %v4621_v59 = vsel %vm4618_vm8, %v4343_v0, 1.0  ;;  %5882 = vmatprep.mubr.msk.f32.mxu0 %vm4362_vm12, %v4343_v0  ;;  %6098 = vmatpush3.bf16.msra.mxu1 %v6095_v23 }
0x1a30   :  { %5883 = vmatmul.mubr.msk.f32.gmra.mrb[58].mxu0 %vm4362_vm12, %v5873_v54  ;;  %v6099_v28 = vpack.c.bf16 %v4622_v3, %v4621_v59 }
0x1a31   :  { %v7734_v29 = vpop.f32.mrb[54].mxu1 }
0x1a32   :  { %v4624_v60 = vsel %vm4618_vm8, %v7734_v29, 1.0  ;;  %v7738_v43 = vpop.f32.mrb[55].mxu1  ;;  %6100 = vmatprep.subr.bf16.mxu1 %v6099_v28 }
0x1a33   :  { %v6250_v36 = vpack.i.bf16 %v7734_v29, %v7738_v43  ;;  %v4623_v18 = vsel %vm4618_vm8, %v7738_v43, 1.0  ;;  %5885 = vmatprep.mubr.msk.f32.mxu0 %vm4362_vm12, %v7738_v43  ;;  %6102 = vmatpush3.bf16.msra.mxu1 %v6099_v28 }
0x1a34   :  { %5886 = vmatmul.mubr.msk.f32.gmra.mrb[60].mxu0 %vm4362_vm12, %v7734_v29  ;;  %v6103_v12 = vpack.c.bf16 %v4624_v60, %v4623_v18 }
0x1a36   :  { %6104 = vmatprep.subr.bf16.mxu1 %v6103_v12 }
0x1a37   :  { %6106 = vmatpush3.bf16.msra.mxu1 %v6103_v12 }
0x1aff   :  { %v5881_v11 = vpop.f32.mrb[56].mxu0 }
0x1b00   :  { %4519 = vperm.xlu1 %6232, %v5881_v11   ;;  %4776 = vrot.lane.b32.xlu0 %v5881_v11, %s6621_s27  ;;  %v4451_v40 = vpop.f32.mrb[57].mxu0 }
0x1b03   :  { %v5884_v1 = vpop.f32.mrb[58].mxu0 }
0x1b04   :  { %6233 = vset.pattern.permute.xlu1 %v6620_v6  ;;  %4825 = vperm.xlu0 %6235, %v4451_v40   ;;  %v4461_v7 = vpop.f32.mrb[59].mxu0 }
0x1b05   :  { %4829 = vperm.xlu1 %6233, %v5881_v11  }
0x1b07   :  { %v5887_v19 = vpop.f32.mrb[60].mxu0 }
0x1b08   :  { %4780 = vrot.lane.b32.xlu0 %v5884_v1, %s6621_s27  ;;  %v4471_v42 = vpop.f32.mrb[61].mxu0 }
0x1b09   :  { %4774 = vrot.lane.b32.xlu1 %v4451_v40, %s6621_s27 }
0x1b0a   :  { %6234 = vset.pattern.permute.xlu1 %v6619_v50 }
0x1b0c   :  { %4837 = vperm.xlu0 %6235, %v5884_v1  }
0x1b0d   :  { %4514 = vperm.xlu1 %6234, %v4451_v40  }
0x1b10   :  { %6236 = vset.pattern.permute.xlu0 %v6619_v50 }
0x1b11   :  { %4529 = vperm.xlu1 %6234, %v5884_v1   ;;  %4524 = vperm.xlu0 %6236, %v4461_v7  }
0x1b15   :  { %4778 = vrot.lane.b32.xlu1 %v4461_v7, %s6621_s27  ;;  %4784 = vrot.lane.b32.xlu0 %v5887_v19, %s6621_s27 }
0x1b16   :  { %6237 = vset.pattern.permute.xlu1 %v6620_v6 }
0x1b19   :  { %4833 = vperm.xlu1 %6237, %v4461_v7   ;;  %4539 = vperm.xlu0 %6236, %v5887_v19  }
0x1b1d   :  { %4845 = vperm.xlu1 %6237, %v5887_v19  }
0x1b21   :  { %4782 = vrot.lane.b32.xlu1 %v4471_v42, %s6621_s27 }
0x1b22   :  { %6238 = vset.pattern.permute.xlu1 %v6619_v50 }
0x1b25   :  { %4534 = vperm.xlu1 %6238, %v4471_v42  }
0x1b29   :  { %6239 = vset.pattern.permute.xlu1 %v6620_v6 }
0x1b2a   :  { %4841 = vperm.xlu1 %6239, %v4471_v42  }
0x1b53   :  { %4480 = vxpose.xlu1.b32.start [1/6] (short) (narrow) %v4451_v40, 8 }
0x1b57   :  { %4481 = vxpose.xlu1.b32.cont [2/6] (short) (narrow) %v5881_v11, 8 }
0x1b5b   :  { %4482 = vxpose.xlu1.b32.cont [3/6] (short) (narrow) %v4461_v7, 8 }
0x1b5f   :  { %4483 = vxpose.xlu1.b32.cont [4/6] (short) (narrow) %v5884_v1, 8 }
0x1b63   :  { %4484 = vxpose.xlu1.b32.cont [5/6] (short) (narrow) %v4471_v42, 8 }
0x1b67   :  { %4485 = vxpose.xlu1.b32.end [6/6] (short) (narrow) %v5887_v19, 8 }
0x1b72   :  { %v4777_v53 = vpop.permute.xlu0 %4776 }
0x1b7f   :  { %v4520_v45 = vpop.permute.xlu1 %4519 }
0x1b83   :  { %v4826_v52 = vpop.permute.xlu0 %4825 }
0x1b84   :  { %v7761_v15 = vpop.permute.xlu1 %4829 }
0x1b85   :  { %6246 = vrot.lane.b32.xlu1 %v6245_v41, %s6624_s28 }
0x1b87   :  { %v4781_v49 = vpop.permute.xlu0 %4780 }
0x1b88   :  { %v4775_v38 = vpop.permute.xlu1 %4774 }
0x1b8b   :  { %v4838_v57 = vpop.permute.xlu0 %4837 }
0x1b8c   :  { %v4515_v62 = vpop.permute.xlu1 %4514 }
0x1b90   :  { %v4530_v21 = vpop.permute.xlu1 %4529  ;;  %v4525_v61 = vpop.permute.xlu0 %4524 }
0x1b94   :  { %v4779_v50 = vpop.permute.xlu1 %4778  ;;  %v4785_v2 = vpop.permute.xlu0 %4784 }
0x1b98   :  { %v7763_v37 = vpop.permute.xlu1 %4833  ;;  %v4540_v14 = vpop.permute.xlu0 %4539 }
0x1b9c   :  { %v7765_v44 = vpop.permute.xlu1 %4845 }
0x1ba0   :  { %v4783_v39 = vpop.permute.xlu1 %4782 }
0x1ba4   :  { %v4535_v24 = vpop.permute.xlu1 %4534 }
0x1ba9   :  { %v7767_v25 = vpop.permute.xlu1 %4841 }
0x1bd3   :  { %v4496_v26 = vpop.trf.xlu1 }
0x1bd4   :  { %v4545_v48 = vrot.slane %v4496_v26, %v6838_v27 }
0x1bd6   :  { %v4547_v16 = vadd.f32 %v4545_v48, %v4520_v45  ;;  %v4550_v33 = vadd.f32 %v4545_v48, %v4535_v24  ;;  %v4546_v10 = vadd.f32 %v4545_v48, %v4515_v62  ;;  %v4549_v63 = vadd.f32 %v4545_v48, %v4530_v21 }
0x1bd7   :  { %v4548_v56 = vadd.f32 %v4545_v48, %v4525_v61  ;;  %v4551_v54 = vadd.f32 %v4545_v48, %v4540_v14 }
0x1bd8   :  { %vm4553_vm2 = vcmp.ge.f32.partialorder %v4547_v16, 0.0  ;;  %v4559_v17 = vmul.f32 0.2, %v4547_v16  ;;  %v4558_v9 = vmul.f32 0.2, %v4546_v10  ;;  %vm4552_vm5 = vcmp.ge.f32.partialorder %v4546_v10, 0.0 }
0x1bd9   :  { %v4561_v47 = vmul.f32 0.2, %v4549_v63  ;;  %vm4555_vm13 = vcmp.ge.f32.partialorder %v4549_v63, 0.0  ;;  %v4560_v23 = vmul.f32 0.2, %v4548_v56  ;;  %vm4554_vm9 = vcmp.ge.f32.partialorder %v4548_v56, 0.0 }
0x1bda   :  { %v4565_v55 = vsel %vm4553_vm2, %v4547_v16, %v4559_v17  ;;  %v4564_v4 = vsel %vm4552_vm5, %v4546_v10, %v4558_v9  ;;  %v4563_v59 = vmul.f32 0.2, %v4551_v54  ;;  %vm4557_vm15 = vcmp.ge.f32.partialorder %v4551_v54, 0.0 }
0x1bdb   :  { %v7772_v8 = vsel %vm959_vm6, %v4565_v55, -1e+30  ;;  %v7778_v35 = vsel %vm958_vm7, %v4564_v4, -1e+30  ;;  %v4567_v22 = vsel %vm4555_vm13, %v4549_v63, %v4561_v47  ;;  %v4566_v41 = vsel %vm4554_vm9, %v4548_v56, %v4560_v23  ;;  %vm7942_vm9 = vmmov %vm7938_vm0 }
0x1bdc   :  { %v4579_v20 = vsel %vm211_vm3, %v7772_v8, -inf  ;;  %v4576_v3 = vsel %vm211_vm3, %v7778_v35, -inf  ;;  %v7785_v0 = vsel %vm7937_vm1, %v4567_v22, -1e+30  ;;  %v4569_v60 = vsel %vm4557_vm15, %v4551_v54, %v4563_v59 }
0x1bdd   :  { %4580 = vmax.xlane.f32.xlu0 %v4579_v20  ;;  %v4585_v28 = vsel %vm211_vm3, %v7785_v0, -inf  ;;  %v4562_v18 = vmul.f32 0.2, %v4550_v33  ;;  %vm4556_vm14 = vcmp.ge.f32.partialorder %v4550_v33, 0.0  ;;  %v7797_v11 = vsel %vm7938_vm0, %v4569_v60, -1e+30 }
0x1bde   :  { %v4591_v1 = vsel %vm211_vm3, %v7797_v11, -inf }
0x1bdf   :  { %v4568_v40 = vsel %vm4556_vm14, %v4550_v33, %v4562_v18 }
0x1be0   :  { %v7803_v7 = vsel %vm7939_vm4, %v4568_v40, -1e+30 }
0x1be1   :  { %v4588_v19 = vsel %vm211_vm3, %v7803_v7, -inf }
0x1bf7   :  { %v6247_v54 = vpop.permute.xlu1 %6246 }
0x1bf8   :  { %v6248_v18 = vunpack.i.l.bf16 %v6247_v54 }
0x1c0a   :  { %4792 = vxpose.xlu0.b32.start [1/6] (short) (narrow) %v4775_v38, 8 }
0x1c0e   :  { %4793 = vxpose.xlu0.b32.cont [2/6] (short) (narrow) %v4777_v53, 8 }
0x1c12   :  { %4794 = vxpose.xlu0.b32.cont [3/6] (short) (narrow) %v4779_v50, 8 }
0x1c16   :  { %4795 = vxpose.xlu0.b32.cont [4/6] (short) (narrow) %v4781_v49, 8 }
0x1c1a   :  { %4796 = vxpose.xlu0.b32.cont [5/6] (short) (narrow) %v4783_v39, 8 }
0x1c1e   :  { %4797 = vxpose.xlu0.b32.end [6/6] (short) (narrow) %v4785_v2, 8 }
0x1c47   :  { %6255 = vset.pattern.permute.xlu0 %v6620_v6  ;;  %v7791_v6 = vsel %vm960_vm10, %v4566_v41, -1e+30  ;;  %v6508_v41 = vld [vmem:[#allocation3] sm:$0xff] }
0x1c48   :  { %v4582_v12 = vsel %vm211_vm3, %v7791_v6, -inf }
0x1c4b   :  { %4577 = vmax.xlane.f32.xlu0 %v4576_v3 }
0x1c4f   :  { %4586 = vmax.xlane.f32.xlu0 %v4585_v28  ;;  %v7861_v28 = vld [vmem:[#allocation3 + $0x8] sm:$0xff] }
0x1c53   :  { %4583 = vmax.xlane.f32.xlu0 %v4582_v12 }
0x1c57   :  { %4592 = vmax.xlane.f32.xlu0 %v4591_v1 }
0x1c5b   :  { %4589 = vmax.xlane.f32.xlu0 %v4588_v19 }
0x1c6a   :  { %v4581_v42 = vpop.xlane.xlu0 %4580 }
0x1c6b   :  { %v4595_v58 = vsub.f32 %v7772_v8, %v4581_v42 }
0x1c6d   :  { %v4602_v10 = vmul.f32 1.442695, %v4595_v58 }
0x1c6f   :  { %6448 = vpow2.f32 %v4602_v10 }
0x1c71   :  { %6241 = vrot.lane.b32.xlu0 %v6240_v13, %s6624_s28 }
0x1c8a   :  { %v4808_v45 = vpop.trf.xlu0 }
0x1c8b   :  { %v4851_v38 = vrot.slane %v4808_v45, %v6838_v27 }
0x1c8d   :  { %v4852_v62 = vadd.f32 %v4851_v38, %v4826_v52  ;;  %v4853_v21 = vadd.f32 %v4851_v38, %v7761_v15  ;;  %v4854_v50 = vadd.f32 %v4851_v38, %v7763_v37  ;;  %v4855_v33 = vadd.f32 %v4851_v38, %v4838_v57 }
0x1c8e   :  { %v4856_v37 = vadd.f32 %v4851_v38, %v7767_v25  ;;  %v4857_v53 = vadd.f32 %v4851_v38, %v7765_v44  ;;  %v4944_v38 = vsel %vm4618_vm8, %v6248_v18, 1.0 }
0x1c8f   :  { %vm4858_vm11 = vcmp.ge.f32.partialorder %v4852_v62, 0.0  ;;  %v4864_v39 = vmul.f32 0.2, %v4852_v62  ;;  %vm4859_vm12 = vcmp.ge.f32.partialorder %v4853_v21, 0.0  ;;  %v4865_v24 = vmul.f32 0.2, %v4853_v21 }
0x1c90   :  { %v4866_v16 = vmul.f32 0.2, %v4854_v50  ;;  %vm4860_vm2 = vcmp.ge.f32.partialorder %v4854_v50, 0.0  ;;  %v4867_v15 = vmul.f32 0.2, %v4855_v33  ;;  %vm4861_vm5 = vcmp.ge.f32.partialorder %v4855_v33, 0.0 }
0x1c91   :  { %v4870_v26 = vsel %vm4858_vm11, %v4852_v62, %v4864_v39  ;;  %v4871_v48 = vsel %vm4859_vm12, %v4853_v21, %v4865_v24  ;;  %v4868_v20 = vmul.f32 0.2, %v4856_v37  ;;  %v4869_v49 = vmul.f32 0.2, %v4857_v53  ;;  %v6510_v21 = vld [vmem:[#allocation3 + $0x10] sm:$0xff]  ;;  %v6511_v24 = vld [vmem:[#allocation3 + $0x18] sm:$0xff] }
0x1c92   :  { %v7816_v51 = vsel %vm958_vm7, %v4870_v26, -1e+30  ;;  %v7822_v32 = vsel %vm959_vm6, %v4871_v48, -1e+30  ;;  %v4872_v13 = vsel %vm4860_vm2, %v4854_v50, %v4866_v16  ;;  %v4873_v55 = vsel %vm4861_vm5, %v4855_v33, %v4867_v15  ;;  %vm7940_vm6 = vmmov %vm7937_vm1  ;;  %v6513_v15 = vld [vmem:[#allocation3 + $0x28] sm:$0xff] }
0x1c93   :  { %v4882_v27 = vsel %vm211_vm3, %v7816_v51, -inf  ;;  %v4885_v17 = vsel %vm211_vm3, %v7822_v32, -inf  ;;  %v7829_v31 = vsel %vm960_vm10, %v4872_v13, -1e+30  ;;  %vm4862_vm7 = vcmp.ge.f32.partialorder %v4856_v37, 0.0  ;;  %vm7941_vm10 = vmmov %vm7939_vm4 }
0x1c94   :  { %4883 = vmax.xlane.f32.xlu1 %v4882_v27  ;;  %v4888_v30 = vsel %vm211_vm3, %v7829_v31, -inf  ;;  %v7836_v25 = vsel %vm7940_vm6, %v4873_v55, -1e+30  ;;  %v4874_v52 = vsel %vm4862_vm7, %v4856_v37, %v4868_v20  ;;  %vm4863_vm13 = vcmp.ge.f32.partialorder %v4857_v53, 0.0  ;;  %v6512_v27 = vld [vmem:[#allocation3 + $0x20] sm:$0xff] }
0x1c95   :  { %v4891_v34 = vsel %vm211_vm3, %v7836_v25, -inf  ;;  %v7842_v57 = vsel %vm7941_vm10, %v4874_v52, -1e+30  ;;  %v4875_v44 = vsel %vm4863_vm13, %v4857_v53, %v4869_v49 }
0x1c96   :  { %v4894_v61 = vsel %vm211_vm3, %v7842_v57, -inf  ;;  %v7848_v46 = vsel %vm7942_vm9, %v4875_v44, -1e+30 }
0x1c97   :  { %v4897_v2 = vsel %vm211_vm3, %v7848_v46, -inf }
0x1c98   :  { %4886 = vmax.xlane.f32.xlu1 %v4885_v17 }
0x1c9c   :  { %4889 = vmax.xlane.f32.xlu1 %v4888_v30 }
0x1ca0   :  { %4892 = vmax.xlane.f32.xlu1 %v4891_v34 }
0x1ca4   :  { %4895 = vmax.xlane.f32.xlu1 %v4894_v61 }
0x1ca8   :  { %4898 = vmax.xlane.f32.xlu1 %v4897_v2 }
0x1cb9   :  { %6251 = vrot.lane.b32.xlu1 %v6250_v36, %s6624_s28  ;;  %v6449_v36 = vpop.eup %6448 }
0x1cd8   :  { %v4578_v9 = vpop.xlane.xlu0 %4577 }
0x1cd9   :  { %v4594_v63 = vsub.f32 %v7778_v35, %v4578_v9 }
0x1cdb   :  { %v4600_v4 = vmul.f32 1.442695, %v4594_v63 }
0x1cdc   :  { %v4587_v5 = vpop.xlane.xlu0 %4586 }
0x1cdd   :  { %6450 = vpow2.f32 %v4600_v4  ;;  %v4597_v47 = vsub.f32 %v7785_v0, %v4587_v5  ;;  %v4613_v0 = vmul.f32 %v7861_v28, %v6449_v36 }
0x1cdf   :  { %v4606_v56 = vmul.f32 1.442695, %v4597_v47 }
0x1ce0   :  { %v4584_v14 = vpop.xlane.xlu0 %4583 }
0x1ce1   :  { %v4596_v22 = vsub.f32 %v7791_v6, %v4584_v14  ;;  %6452 = vpow2.f32 %v4606_v56  ;;  %v6249_v6 = vunpack.i.h.bf16 %v6247_v54 }
0x1ce3   :  { %v4604_v23 = vmul.f32 1.442695, %v4596_v22  ;;  %v4945_v45 = vsel %vm4618_vm8, %v6249_v6, 1.0 }
0x1ce4   :  { %v4593_v29 = vpop.xlane.xlu0 %4592  ;;  %v6111_v48 = vpack.c.bf16 %v4945_v45, %v4944_v38 }
0x1ce5   :  { %6454 = vpow2.f32 %v4604_v23  ;;  %v4599_v43 = vsub.f32 %v7797_v11, %v4593_v29 }
0x1ce7   :  { %v6451_v8 = vpop.eup %6450  ;;  %v4610_v35 = vmul.f32 1.442695, %v4599_v43 }
0x1ce8   :  { %v4590_v3 = vpop.xlane.xlu0 %4589  ;;  %v4612_v59 = vmul.f32 %v6508_v41, %v6451_v8 }
0x1ce9   :  { %v4598_v60 = vsub.f32 %v7803_v7, %v4590_v3  ;;  %6456 = vpow2.f32 %v4610_v35 }
0x1cea   :  { %5900 = vmatprep.mubr.msk.f32.mxu1 %vm211_vm3, %v4612_v59 }
0x1ceb   :  { %v4608_v12 = vmul.f32 1.442695, %v4598_v60  ;;  %5901 = vmatmul.mubr.msk.f32.vlgmr.msra.gmra.mrb[56].mxu1 %vm211_vm3, %v4613_v0  ;;  %v6453_v19 = vpop.eup %6452 }
0x1cec   :  { %v6242_v11 = vpop.permute.xlu0 %6241  ;;  %v4615_v26 = vmul.f32 %v6511_v24, %v6453_v19 }
0x1ced   :  { %6458 = vpow2.f32 %v4608_v12  ;;  %v6244_v40 = vunpack.i.h.bf16 %v6242_v11  ;;  %v6243_v1 = vunpack.i.l.bf16 %v6242_v11 }
0x1cef   :  { %v6455_v42 = vpop.eup %6454  ;;  %v4943_v7 = vsel %vm4618_vm8, %v6244_v40, 1.0  ;;  %v4942_v62 = vsel %vm4618_vm8, %v6243_v1, 1.0 }
0x1cf0   :  { %v4614_v50 = vmul.f32 %v6510_v21, %v6455_v42  ;;  %v6107_v39 = vpack.c.bf16 %v4943_v7, %v4942_v62 }
0x1cf2   :  { %5903 = vmatprep.mubr.msk.f32.mxu1 %vm211_vm3, %v4614_v50  ;;  %6108 = vmatprep.subr.bf16.mxu0 %v6107_v39 }
0x1cf3   :  { %5904 = vmatmul.mubr.msk.f32.gmra.mrb[58].mxu1 %vm211_vm3, %v4615_v26  ;;  %6110 = vmatpush3.bf16.msra.mxu0 %v6107_v39  ;;  %v6457_v16 = vpop.eup %6456 }
0x1cf4   :  { %6112 = vmatprep.subr.bf16.mxu0 %v6111_v48  ;;  %v4617_v37 = vmul.f32 %v6513_v15, %v6457_v16 }
0x1cf7   :  { %v6459_v33 = vpop.eup %6458  ;;  %6114 = vmatpush3.bf16.msra.mxu0 %v6111_v48 }
0x1cf8   :  { %v4616_v13 = vmul.f32 %v6512_v27, %v6459_v33 }
0x1cfa   :  { %5906 = vmatprep.mubr.msk.f32.mxu1 %vm211_vm3, %v4616_v13 }
0x1cfb   :  { %5907 = vmatmul.mubr.msk.f32.gmra.mrb[60].mxu1 %vm211_vm3, %v4617_v37 }
0x1d21   :  { %v4884_v17 = vpop.xlane.xlu1 %4883 }
0x1d22   :  { %v4900_v55 = vsub.f32 %v7816_v51, %v4884_v17 }
0x1d24   :  { %v4906_v20 = vmul.f32 1.442695, %v4900_v55 }
0x1d25   :  { %v4887_v53 = vpop.xlane.xlu1 %4886 }
0x1d26   :  { %6460 = vpow2.f32 %v4906_v20  ;;  %v4901_v52 = vsub.f32 %v7822_v32, %v4887_v53 }
0x1d28   :  { %v4908_v61 = vmul.f32 1.442695, %v4901_v52 }
0x1d29   :  { %v4890_v30 = vpop.xlane.xlu1 %4889 }
0x1d2a   :  { %v4902_v49 = vsub.f32 %v7829_v31, %v4890_v30  ;;  %6462 = vpow2.f32 %v4908_v61 }
0x1d2c   :  { %v4910_v58 = vmul.f32 1.442695, %v4902_v49 }
0x1d2d   :  { %v4893_v34 = vpop.xlane.xlu1 %4892 }
0x1d2e   :  { %v4903_v2 = vsub.f32 %v7836_v25, %v4893_v34  ;;  %6464 = vpow2.f32 %v4910_v58 }
0x1d30   :  { %v6461_v44 = vpop.eup %6460  ;;  %v4912_v51 = vmul.f32 1.442695, %v4903_v2 }
0x1d31   :  { %v4896_v10 = vpop.xlane.xlu1 %4895  ;;  %v4918_v9 = vmul.f32 %v6508_v41, %v6461_v44 }
0x1d32   :  { %v4904_v63 = vsub.f32 %v7842_v57, %v4896_v10  ;;  %6466 = vpow2.f32 %v4912_v51 }
0x1d33   :  { %5921 = vmatprep.mubr.msk.f32.mxu0 %vm211_vm3, %v4918_v9 }
0x1d34   :  { %v4914_v4 = vmul.f32 1.442695, %v4904_v63  ;;  %v6463_v23 = vpop.eup %6462 }
0x1d35   :  { %v4899_v5 = vpop.xlane.xlu1 %4898  ;;  %v4919_v43 = vmul.f32 %v7861_v28, %v6463_v23 }
0x1d36   :  { %v4905_v32 = vsub.f32 %v7848_v46, %v4899_v5  ;;  %6468 = vpow2.f32 %v4914_v4 }
0x1d38   :  { %v4916_v31 = vmul.f32 1.442695, %v4905_v32  ;;  %v6465_v29 = vpop.eup %6464  ;;  %v5296_v32 = vld [vmem:[#allocation8 + $0xc8] ss:$0 sm:$0xff] }
0x1d39   :  { %v6252_v47 = vpop.permute.xlu1 %6251  ;;  %v4920_v46 = vmul.f32 %v6510_v21, %v6465_v29 }
0x1d3a   :  { %v6254_v56 = vunpack.i.h.bf16 %v6252_v47  ;;  %v6253_v25 = vunpack.i.l.bf16 %v6252_v47  ;;  %6470 = vpow2.f32 %v4916_v31 }
0x1d3c   :  { %v4947_v14 = vsel %vm4618_vm8, %v6254_v56, 1.0  ;;  %v4946_v57 = vsel %vm4618_vm8, %v6253_v25, 1.0  ;;  %v6467_v36 = vpop.eup %6466 }
0x1d3d   :  { %v6115_v22 = vpack.c.bf16 %v4947_v14, %v4946_v57  ;;  %v4921_v54 = vmul.f32 %v6511_v24, %v6467_v36 }
0x1d3f   :  { %6116 = vmatprep.subr.bf16.mxu0 %v6115_v22 }
0x1d40   :  { %6118 = vmatpush3.bf16.msra.mxu0 %v6115_v22  ;;  %v6469_v8 = vpop.eup %6468 }
0x1d41   :  { %v4922_v3 = vmul.f32 %v6512_v27, %v6469_v8 }
0x1d43   :  { %5922 = vmatmul.mubr.msk.f32.vlgmr.msra.gmra.mrb[62].mxu0 %vm211_vm3, %v4919_v43 }
0x1d44   :  { %5924 = vmatprep.mubr.msk.f32.mxu0 %vm211_vm3, %v4920_v46  ;;  %v6471_v35 = vpop.eup %6470 }
0x1d45   :  { %v4923_v41 = vmul.f32 %v6513_v15, %v6471_v35 }
0x1d47   :  { %5925 = vmatmul.mubr.msk.f32.gmra.mrb[64].mxu0 %vm211_vm3, %v4921_v54 }
0x1d48   :  { %5927 = vmatprep.mubr.msk.f32.mxu0 %vm211_vm3, %v4922_v3 }
0x1d4b   :  { %5928 = vmatmul.mubr.msk.f32.gmra.mrb[66].mxu0 %vm211_vm3, %v4923_v41  ;;  %vm5136_vm3 = vcmask 0  }
0x1dbe   :  { %v5902_v59 = vpop.f32.mrb[56].mxu1 }
0x1dbf   :  { %6472 = vrcp.f32 %v5902_v59  ;;  %v4709_v28 = vpop.f32.mrb[57].mxu1 }
0x1dc0   :  { %6474 = vrcp.f32 %v4709_v28 }
0x1dc6   :  { %v5905_v0 = vpop.f32.mrb[58].mxu1 }
0x1dc7   :  { %6476 = vrcp.f32 %v5905_v0  ;;  %v4719_v60 = vpop.f32.mrb[59].mxu1 }
0x1dc8   :  { %6478 = vrcp.f32 %v4719_v60 }
0x1dc9   :  { %v6473_v6 = vpop.eup %6472 }
0x1dca   :  { %v6475_v18 = vpop.eup %6474  ;;  %4752 = vrot.lane.b32.xlu1 %v6473_v6, %s6624_s28 }
0x1dcb   :  { %4750 = vrot.lane.b32.xlu0 %v6475_v18, %s6624_s28 }
0x1dce   :  { %v5908_v12 = vpop.f32.mrb[60].mxu1 }
0x1dcf   :  { %6480 = vrcp.f32 %v5908_v12  ;;  %v7892_v11 = vpop.f32.mrb[61].mxu1 }
0x1dd0   :  { %6482 = vrcp.f32 %v7892_v11 }
0x1dd1   :  { %v6477_v40 = vpop.eup %6476 }
0x1dd2   :  { %v6479_v1 = vpop.eup %6478  ;;  %4756 = vrot.lane.b32.xlu1 %v6477_v40, %s6624_s28 }
0x1dd3   :  { %4754 = vrot.lane.b32.xlu0 %v6479_v1, %s6624_s28 }
0x1dd9   :  { %v6481_v19 = vpop.eup %6480 }
0x1dda   :  { %v6483_v42 = vpop.eup %6482  ;;  %4760 = vrot.lane.b32.xlu1 %v6481_v19, %s6624_s28 }
0x1ddb   :  { %4758 = vrot.lane.b32.xlu0 %v6483_v42, %s6624_s28 }
0x1e16   :  { %v5923_v45 = vpop.f32.mrb[62].mxu0 }
0x1e17   :  { %6484 = vrcp.f32 %v5923_v45  ;;  %v5032_v38 = vpop.f32.mrb[63].mxu0 }
0x1e18   :  { %6486 = vrcp.f32 %v5032_v38 }
0x1e1a   :  { %v5926_v7 = vpop.f32.mrb[64].mxu0 }
0x1e1b   :  { %6488 = vrcp.f32 %v5926_v7  ;;  %v5042_v62 = vpop.f32.mrb[65].mxu0 }
0x1e1c   :  { %6490 = vrcp.f32 %v5042_v62 }
0x1e1e   :  { %v5929_v21 = vpop.f32.mrb[66].mxu0 }
0x1e1f   :  { %6492 = vrcp.f32 %v5929_v21  ;;  %v5052_v50 = vpop.f32.mrb[67].mxu0 }
0x1e20   :  { %6494 = vrcp.f32 %v5052_v50 }
0x1e21   :  { %v6485_v39 = vpop.eup %6484 }
0x1e22   :  { %v6487_v24 = vpop.eup %6486  ;;  %5075 = vrot.lane.b32.xlu1 %v6485_v39, %s6624_s28 }
0x1e23   :  { %5073 = vrot.lane.b32.xlu0 %v6487_v24, %s6624_s28 }
0x1e25   :  { %v6489_v26 = vpop.eup %6488 }
0x1e26   :  { %v6491_v48 = vpop.eup %6490  ;;  %5079 = vrot.lane.b32.xlu1 %v6489_v26, %s6624_s28 }
0x1e27   :  { %5077 = vrot.lane.b32.xlu0 %v6491_v48, %s6624_s28 }
0x1e29   :  { %v6493_v16 = vpop.eup %6492 }
0x1e2a   :  { %v6495_v33 = vpop.eup %6494  ;;  %5083 = vrot.lane.b32.xlu1 %v6493_v16, %s6624_s28 }
0x1e2b   :  { %5081 = vrot.lane.b32.xlu0 %v6495_v33, %s6624_s28 }
0x1e3c   :  { %v4753_v27 = vpop.permute.xlu1 %4752 }
0x1e3d   :  { %v4751_v13 = vpop.permute.xlu0 %4750  ;;  %v4769_v53 = vmul.f32 %v5902_v59, %v4753_v27 }
0x1e3e   :  { %v4768_v49 = vmul.f32 %v4751_v13, %v4709_v28 }
0x1e44   :  { %v4757_v15 = vpop.permute.xlu1 %4756 }
0x1e45   :  { %v4755_v37 = vpop.permute.xlu0 %4754  ;;  %v4771_v58 = vmul.f32 %v5905_v0, %v4757_v15 }
0x1e46   :  { %v4770_v63 = vmul.f32 %v4755_v37, %v4719_v60 }
0x1e4c   :  { %v4761_v17 = vpop.permute.xlu1 %4760 }
0x1e4d   :  { %v4759_v55 = vpop.permute.xlu0 %4758  ;;  %v4773_v25 = vmul.f32 %v5908_v12, %v4761_v17 }
0x1e4e   :  { %v4772_v23 = vmul.f32 %v4759_v55, %v7892_v11 }
0x1e94   :  { %v5076_v20 = vpop.permute.xlu1 %5075 }
0x1e95   :  { %v5092_v30 = vmul.f32 %v5923_v45, %v5076_v20  ;;  %v5074_v52 = vpop.permute.xlu0 %5073 }
0x1e96   :  { %v5091_v34 = vmul.f32 %v5074_v52, %v5032_v38 }
0x1e97   :  { %v5098_v44 = vadd.f32 %v5092_v30, %v4769_v53 }
0x1e98   :  { %v5097_v61 = vadd.f32 %v5091_v34, %v4768_v49  ;;  %v5080_v2 = vpop.permute.xlu1 %5079 }
0x1e99   :  { %v5094_v10 = vmul.f32 %v5926_v7, %v5080_v2  ;;  %v5078_v9 = vpop.permute.xlu0 %5077  ;;  %v5104_v4 = vmul.f32 0.5, %v5098_v44 }
0x1e9a   :  { %v5093_v51 = vmul.f32 %v5078_v9, %v5042_v62  ;;  %v5103_v31 = vmul.f32 0.5, %v5097_v61 }
0x1e9b   :  { %v5100_v5 = vadd.f32 %v5094_v10, %v4771_v58  ;;  %v5114_v36 = vadd.f32 %v5296_v32, %v5104_v4 }
0x1e9c   :  { %v5099_v47 = vadd.f32 %v5093_v51, %v4770_v63  ;;  %v5084_v56 = vpop.permute.xlu1 %5083  ;;  %v5113_v54 = vadd.f32 %v5296_v32, %v5103_v31 }
0x1e9d   :  { %v5106_v14 = vmul.f32 0.5, %v5100_v5  ;;  %v5096_v57 = vmul.f32 %v5929_v21, %v5084_v56  ;;  %v5082_v22 = vpop.permute.xlu0 %5081 }
0x1e9e   :  { %v5105_v29 = vmul.f32 0.5, %v5099_v47  ;;  %v5095_v43 = vmul.f32 %v5082_v22, %v5052_v50  ;;  %v5134_v50 = vld [vmem:[#allocation8 + $0x10] sm:$0x1] }
0x1e9f   :  { %v5116_v46 = vadd.f32 %v5296_v32, %v5106_v14  ;;  %v5102_v8 = vadd.f32 %v5096_v57, %v4773_v25 }
0x1ea0   :  { %v5115_v35 = vadd.f32 %v5296_v32, %v5105_v29  ;;  %v5101_v3 = vadd.f32 %v5095_v43, %v4772_v23 }
0x1ea1   :  { %v5120_v41 = vmin.f32 %v5114_v36, %v5116_v46  ;;  %v5108_v59 = vmul.f32 0.5, %v5102_v8 }
0x1ea2   :  { %v5119_v28 = vmin.f32 %v5113_v54, %v5115_v35  ;;  %v5107_v0 = vmul.f32 0.5, %v5101_v3 }
0x1ea3   :  { %v5118_v60 = vadd.f32 %v5296_v32, %v5108_v59 }
0x1ea4   :  { %v5117_v6 = vadd.f32 %v5296_v32, %v5107_v0 }
0x1ea5   :  { %v5122_v18 = vmin.f32 %v5120_v41, %v5118_v60 }
0x1ea6   :  { %v5121_v12 = vmin.f32 %v5119_v28, %v5117_v6 }
0x1ea7   :  { %v5124_v40 = vmax.f32 %v5122_v18, 0.0 }
0x1ea8   :  { %v5123_v1 = vmax.f32 %v5121_v12, 0.0 }
0x1ea9   :  { %v5126_v11 = vsel %vm4618_vm8, %v5124_v40, -inf }
0x1eaa   :  { %v5125_v19 = vsel %vm4618_vm8, %v5123_v1, -inf }
0x1eab   :  { %v5127_v42 = vmax.f32 %v5125_v19, %v5126_v11 }
0x1ead   :  { %v5128_v45 = vrot.slane %v5127_v42, 4 }
0x1eaf   :  { %v5129_v38 = vmax.f32 %v5127_v42, %v5128_v45 }
0x1eb1   :  { %v5130_v7 = vrot.slane %v5129_v38, 2 }
0x1eb3   :  { %v5131_v62 = vmax.f32 %v5129_v38, %v5130_v7 }
0x1eb5   :  { %v5132_v21 = vrot.slane %v5131_v62, 1 }
0x1eb7   :  { %v5133_v39 = vmax.f32 %v5131_v62, %v5132_v21 }
0x1eb9   :  { %v5135_v24 = vmul.f32 %v5134_v50, %v5133_v39 }
0x1ebb   :  { %5137 = vst.msk [vmem:[#allocation9] sm:$0x1] %vm5136_vm3, %v5135_v24 }
0x1ebc   :  { %6591 = shalt.err (!%p6588_p0)
}
0x1ebd   :  { %s6592_s10 = scalar_lea.hbm %s7924_s4, 16 }
0x1ebe   :  { %p6593_p1 = scmp.ne.s32.totalorder %s7924_s4, %s6592_s10  ;;  %p6596_p2 = scmp.lt.u32.totalorder %s6592_s10, %s7924_s4 }
0x1ec0   :  { %p6598_p3 = pnand %p6596_p2, %p6593_p1 }
0x1ec2   :  { %6601 = shalt.err (!%p6598_p3)
}
0x1ec3   :  { %5147 = dma.vmem_to_hbm [thread:$0]  %s5145_s5, 16, %s7924_s4, [#allocation5]  }
0x1ec4   :  { %6606 = dma.done.wait [#allocation5], 16  }
0x1ec5   :  { %6607 = vsyncadd [#allocation5], 4294967280 }
0x1ec6   :  { %5151 = vsyncpa [#allocation4], 1 }
0x1ec7   :  { %5152 = vsyncpa [#allocation7], 1 }
0x1ec8   :  { %5153 = vsyncpa [#allocation5], 1 }

</bundles_post_ra>
